<compile_context>
chip_gen: v7x
topology: tpu7x:2x2x1
jax: 0.10.0
libtpu: 0.0.40
codegen_flags: <defaults>
</compile_context>

<pallas_src>
import functools

import jax
import jax.numpy as jnp
from jax import lax
from jax.experimental import pallas as pl
from jax.experimental.pallas import tpu as pltpu


def _round_up(x, m):
    return (x + m - 1) // m * m


# ---------------------------------------------------------------------------
# Fused forward kernel (single invocation, whole-array VMEM blocks).
# Inputs:
#   pooled  : (Bp, Kp)  batch/lane padded pooled 3x3 patches        (bf16)
#   w_conv  : (Kp, F)   conv-proxy weight, F == LSTM hidden         (bf16)
#   x_seq   : (T*Bp, Ep) time-major flattened question embeddings   (bf16)
#   per LSTM layer l: w_ih (Dinp, 4H) bf16, w_hh (H, 4H) bf16, b (1, 4H) f32
#                     gate column order (i, f, o, g)
#   wq_all  : (D, L*M) bf16, bq_all : (1, L*M) f32   (image feature branch)
#   wv_all  : (D, L*M) bf16, bv_all : (1, L*M) f32   (question LSTM branch)
#   w_pred  : (M, Ap) bf16,  b_pred : (1, Ap) f32    (Ap = vocab padded, -1e30)
# Output: (Bp, Ap) f32 softmax probabilities (padded lanes exactly 0).
# Scratch: gx (T*Bp, 4H) hoisted gate projections, seq (T*Bp, H) layer outputs.
# ---------------------------------------------------------------------------
def _fused_forward_kernel(n_lstm_layers, mutan_layers, mutan_out,
                          pooled_ref, wconv_ref, x_ref, *args):
    lstm_refs = args[:3 * n_lstm_layers]
    (wq_ref, bq_ref, wv_ref, bv_ref, wpred_ref, bpred_ref) = \
        args[3 * n_lstm_layers:3 * n_lstm_layers + 6]
    out_ref = args[3 * n_lstm_layers + 6]
    gx_ref = args[3 * n_lstm_layers + 7]
    seq_ref = args[3 * n_lstm_layers + 8]

    Bp = pooled_ref.shape[0]
    T = x_ref.shape[0] // Bp
    Hh = seq_ref.shape[-1]
    M = mutan_out
    L = mutan_layers
    cdt = wconv_ref.dtype            # MXU operand dtype (bf16); accum is f32

    # ---------------- image branch (global pool already applied) ------------
    img_feat = jnp.dot(pooled_ref[...], wconv_ref[...],
                       preferred_element_type=jnp.float32)          # (Bp, Hh)

    # ---------------- stacked LSTM, gate layout (i, f, o, g) ---------------
    h = jnp.zeros((Bp, Hh), jnp.float32)
    for layer in range(n_lstm_layers):
        w_ih_ref = lstm_refs[3 * layer]
        w_hh_ref = lstm_refs[3 * layer + 1]
        bias = lstm_refs[3 * layer + 2][...]                        # (1,4H) f32

        seq_in = x_ref[...] if layer == 0 else seq_ref[...].astype(cdt)
        # Hoisted input projection (+ combined bias): one matmul per layer.
        gx_ref[...] = jnp.dot(seq_in, w_ih_ref[...],
                              preferred_element_type=jnp.float32) + bias

        write_seq = layer + 1 < n_lstm_layers
        h = jnp.zeros((Bp, Hh), jnp.float32)
        c = jnp.zeros((Bp, Hh), jnp.float32)
        for t in range(T):       # static unroll; only h @ W_hh is serial
            r0 = t * Bp          # Bp % 8 == 0 -> full-tile, unmasked accesses
            # W_hh streams from its VMEM ref inside the step; it is never held
            # live in vregs across the unrolled loop.
            gates = gx_ref[r0:r0 + Bp, :] + jnp.dot(
                h.astype(cdt), w_hh_ref[...],
                preferred_element_type=jnp.float32)                 # (Bp, 4H)
            ifo = jax.nn.sigmoid(gates[:, 0:3 * Hh])   # one wide EUP slice
            g = jnp.tanh(gates[:, 3 * Hh:4 * Hh])
            i_g = ifo[:, 0 * Hh:1 * Hh]
            f_g = ifo[:, 1 * Hh:2 * Hh]
            o_g = ifo[:, 2 * Hh:3 * Hh]
            c = f_g * c + i_g * g
            h = o_g * jnp.tanh(c)
            if write_seq:
                seq_ref[r0:r0 + Bp, :] = h
    ques_lstm = h                                                   # (Bp, Hh)
    # Dropout(p=0.3) / Dropout(p=0.5): identity in eval mode.

    # ---------------- Mutan fusion: two collapsed matmuls + rank sum --------
    xq = jnp.tanh(jnp.dot(img_feat.astype(cdt), wq_ref[...],
                          preferred_element_type=jnp.float32) + bq_ref[...])
    xv = jnp.tanh(jnp.dot(ques_lstm.astype(cdt), wv_ref[...],
                          preferred_element_type=jnp.float32) + bv_ref[...])
    prod = xq * xv                                                  # (Bp, L*M)
    acc = prod[:, 0:M]
    for l in range(1, L):                                           # rank sum
        acc = acc + prod[:, l * M:(l + 1) * M]
    fused = jnp.tanh(acc)                                           # (Bp, M)

    # ---------------- head: signed sqrt, L2 norm, predict, softmax ----------
    s = jnp.sqrt(jnp.maximum(fused, 0.0)) - jnp.sqrt(jnp.maximum(-fused, 0.0))
    # 1 / max(||s||_2, 1e-12)  ==  rsqrt(max(sum(s^2), 1e-24))
    inv_norm = lax.rsqrt(jnp.maximum(jnp.sum(s * s, axis=1, keepdims=True),
                                     1e-24))
    s = s * inv_norm
    logits = jnp.dot(s.astype(cdt), wpred_ref[...],
                     preferred_element_type=jnp.float32) + bpred_ref[...]
    m = jnp.max(logits, axis=1, keepdims=True)
    e = jnp.exp(logits - m)                  # padded lanes: exp(-1e30) = 0
    out_ref[...] = e * pl.reciprocal(jnp.sum(e, axis=1, keepdims=True),
                                     approx=True)


# ---------------------------------------------------------------------------
# One-time parameter preprocessing (hoisted out of the per-forward wrapper).
# ---------------------------------------------------------------------------
def preprocess_params(params, compute_dtype=jnp.bfloat16):
    """Gate reorder, Mutan collapse, lane padding and bf16 casts, done once."""
    cdt = compute_dtype
    prep = {}

    # Conv-proxy weight: pad the contraction (9*Cin) dim to a lane multiple.
    w_conv = params["w_conv"]                                       # (9C, F)
    K = w_conv.shape[0]
    Kp = _round_up(K, 128)
    prep["w_conv"] = jnp.pad(w_conv, ((0, Kp - K), (0, 0))).astype(cdt)

    # LSTM: reorder gate columns (i, f, g, o) -> (i, f, o, g); pad the layer-0
    # input dim to a lane multiple; weights bf16, combined bias f32.
    lstm = []
    for w_ih, w_hh, b in params["lstm"]:
        Hh = w_hh.shape[0]
        din = w_ih.shape[0]
        dp = _round_up(din, 128)
        w_ih = jnp.pad(w_ih, ((0, dp - din), (0, 0)))

        def reorder(w):
            return jnp.concatenate(
                [w[..., 0:2 * Hh], w[..., 3 * Hh:4 * Hh],
                 w[..., 2 * Hh:3 * Hh]], axis=-1)

        lstm.append((reorder(w_ih).astype(cdt),
                     reorder(w_hh).astype(cdt),
                     reorder(b).astype(jnp.float32)))
    prep["lstm"] = lstm

    # Collapse the L per-rank Mutan linears into (D, L*M) weights.
    wq = params["mutan_wq"]                                         # (L, D, M)
    L, D, M = wq.shape
    prep["wq_all"] = jnp.transpose(wq, (1, 0, 2)).reshape(D, L * M).astype(cdt)
    prep["bq_all"] = jnp.transpose(params["mutan_bq"],
                                   (1, 0, 2)).reshape(1, L * M).astype(jnp.float32)
    prep["wv_all"] = jnp.transpose(params["mutan_wv"],
                                   (1, 0, 2)).reshape(D, L * M).astype(cdt)
    prep["bv_all"] = jnp.transpose(params["mutan_bv"],
                                   (1, 0, 2)).reshape(1, L * M).astype(jnp.float32)

    # Pad the answer-vocab lane dim; padded logits get a -1e30 bias (kept f32)
    # so they contribute exactly 0 to the softmax.
    w_pred, b_pred = params["w_pred"], params["b_pred"]
    A = w_pred.shape[1]
    Ap = _round_up(A, 128)
    prep["w_pred"] = jnp.pad(w_pred, ((0, 0), (0, Ap - A))).astype(cdt)
    prep["b_pred"] = jnp.pad(b_pred, ((0, 0), (0, Ap - A)),
                             constant_values=-1e30).astype(jnp.float32)
    return prep


# ---------------------------------------------------------------------------
# Full MUTAN_baseline forward (wrapper does only cheap layout/pool/pad work).
# ---------------------------------------------------------------------------
@functools.partial(jax.jit, static_argnames=("mutan_layers", "mutan_out",
                                             "ans_vocab_size"))
def mutan_baseline_forward(prep, ques_embed, img, *, mutan_layers, mutan_out,
                           ans_vocab_size):
    # TODO(synk): the pretrained ResNet50 trunk has no clean Pallas equivalent;
    # it is replaced by a single bias-free 3x3 SAME conv proxy.  Because the
    # proxy is linear with no bias, AdaptiveAvgPool2d((1,1)) commutes with it,
    # so we pool first and never build an im2col slab.
    B, C, Hi, Wi = img.shape
    cdt = prep["w_conv"].dtype
    Bp = _round_up(B, 8)          # sublane-pad batch -> full (8,128) tiles

    # Single pass over the image: the 9 zero-padded 3x3 shift-window means are
    # recovered from total / first-last row / first-last col / corner sums by
    # inclusion-exclusion (identical semantics to the 9 shifted-view means).
    x = jnp.transpose(img, (0, 2, 3, 1)).astype(jnp.float32)        # (B,H,W,C)
    s_all = jnp.sum(x, axis=(1, 2))                                 # (B, C)
    r_first = jnp.sum(x[:, 0, :, :], axis=1)
    r_last = jnp.sum(x[:, Hi - 1, :, :], axis=1)
    c_first = jnp.sum(x[:, :, 0, :], axis=1)
    c_last = jnp.sum(x[:, :, Wi - 1, :], axis=1)
    corner = {(0, 0): x[:, Hi - 1, Wi - 1, :], (0, 2): x[:, Hi - 1, 0, :],
              (2, 0): x[:, 0, Wi - 1, :], (2, 2): x[:, 0, 0, :]}
    row_excl = [r_last, None, r_first]    # dh = 0, 1, 2
    col_excl = [c_last, None, c_first]    # dw = 0, 1, 2
    parts = []
    for dh in range(3):
        for dw in range(3):
            v = s_all
            if row_excl[dh] is not None:
                v = v - row_excl[dh]
            if col_excl[dw] is not None:
                v = v - col_excl[dw]
            if (dh, dw) in corner:
                v = v + corner[(dh, dw)]
            parts.append(v)
    pooled = jnp.concatenate(parts, axis=-1) * (1.0 / float(Hi * Wi))  # (B,9C)

    w_conv = prep["w_conv"]
    K = pooled.shape[1]
    Kp = w_conv.shape[0]
    pooled = jnp.pad(pooled, ((0, Bp - B), (0, Kp - K))).astype(cdt)

    # ques_embed (B,T,E) -> batch-pad -> permute(1,0,2) -> time-major (T*Bp,Ep)
    T = ques_embed.shape[1]
    E = ques_embed.shape[2]
    Ep = prep["lstm"][0][0].shape[0]
    q = jnp.pad(ques_embed, ((0, Bp - B), (0, 0), (0, 0)))
    x_seq = jnp.pad(jnp.transpose(q, (1, 0, 2)).reshape(T * Bp, E),
                    ((0, 0), (0, Ep - E))).astype(cdt)

    lstm_w = [w for layer in prep["lstm"] for w in layer]
    n_lstm = len(prep["lstm"])
    Hh = prep["lstm"][0][1].shape[0]
    H4 = 4 * Hh
    LM = prep["wq_all"].shape[1]
    F = w_conv.shape[1]
    Ap = prep["w_pred"].shape[1]

    # ---- cost estimate & VMEM budget for the fused call ---------------------
    flops = 2 * Bp * Kp * F
    din = Ep
    for _ in range(n_lstm):
        flops += 2 * T * Bp * din * H4 + 2 * T * Bp * Hh * H4
        din = Hh
    flops += 2 * (2 * Bp * Hh * LM) + 2 * Bp * mutan_out * Ap
    transcendentals = (n_lstm * T * Bp * (H4 + Hh) + 2 * Bp * LM
                       + 3 * Bp * mutan_out + Bp * Ap + Bp)
    operands = [pooled, w_conv, x_seq] + lstm_w + [
        prep["wq_all"], prep["bq_all"], prep["wv_all"], prep["bv_all"],
        prep["w_pred"], prep["b_pred"]]
    in_bytes = sum(int(a.size) * a.dtype.itemsize for a in operands)
    out_bytes = Bp * Ap * 4
    scratch_bytes = (T * Bp * H4 + T * Bp * Hh) * 4
    vmem_limit = min(64 * 1024 * 1024,
                     max(32 * 1024 * 1024,
                         2 * (in_bytes + out_bytes) + scratch_bytes
                         + 4 * 1024 * 1024))

    kernel = functools.partial(_fused_forward_kernel, n_lstm, mutan_layers,
                               mutan_out)
    # NOTE: at production sizes (D~1024, L*M~5k, vocab~3k, large batch) the
    # Mutan / predict weights should be N-tiled with a grid + BlockSpecs and a
    # "parallel" batch axis added for v7x's two TensorCores; at these demo
    # shapes whole-array VMEM blocks are correct and fastest.
    out_p = pl.pallas_call(
        kernel,
        out_shape=jax.ShapeDtypeStruct((Bp, Ap), jnp.float32),
        scratch_shapes=[
            pltpu.VMEM((T * Bp, H4), jnp.float32),   # hoisted gate projection
            pltpu.VMEM((T * Bp, Hh), jnp.float32),   # inter-layer sequence
        ],
        compiler_params=pltpu.CompilerParams(vmem_limit_bytes=int(vmem_limit)),
        cost_estimate=pl.CostEstimate(flops=int(flops),
                                      transcendentals=int(transcendentals),
                                      bytes_accessed=int(in_bytes + out_bytes)),
    )(pooled, w_conv, x_seq, *lstm_w,
      prep["wq_all"], prep["bq_all"], prep["wv_all"], prep["bv_all"],
      prep["w_pred"], prep["b_pred"])
    return out_p[:B, :ans_vocab_size]


# ---------------------------------------------------------------------------
# Parameter init (PyTorch-style layouts; gate order i, f, g, o — reordered by
# preprocess_params).
# ---------------------------------------------------------------------------
def init_params(key, *, c_in, feat_size, embedding_size, lstm_units,
                lstm_layers, mutan_layers, mutan_out, ans_vocab_size):
    ks = iter(jax.random.split(key, 32))

    def u(k, shape, scale):
        return jax.random.uniform(k, shape, jnp.float32, -scale, scale)

    params = {}
    params["w_conv"] = u(next(ks), (9 * c_in, feat_size), 0.1)

    lstm = []
    in_dim = embedding_size
    for _ in range(lstm_layers):
        scale = 1.0 / float(lstm_units) ** 0.5
        w_ih = u(next(ks), (in_dim, 4 * lstm_units), scale)
        w_hh = u(next(ks), (lstm_units, 4 * lstm_units), scale)
        b = u(next(ks), (1, 4 * lstm_units), scale)    # b_ih + b_hh combined
        lstm.append((w_ih, w_hh, b))
        in_dim = lstm_units
    params["lstm"] = lstm

    sc = 1.0 / float(lstm_units) ** 0.5
    params["mutan_wq"] = u(next(ks), (mutan_layers, lstm_units, mutan_out), sc)
    params["mutan_bq"] = u(next(ks), (mutan_layers, 1, mutan_out), sc)
    params["mutan_wv"] = u(next(ks), (mutan_layers, lstm_units, mutan_out), sc)
    params["mutan_bv"] = u(next(ks), (mutan_layers, 1, mutan_out), sc)

    sp = 1.0 / float(mutan_out) ** 0.5
    params["w_pred"] = u(next(ks), (mutan_out, ans_vocab_size), sp)
    params["b_pred"] = u(next(ks), (1, ans_vocab_size), sp)
    return params


if __name__ == "__main__":
    # Small, self-consistent demo shapes.
    B = 2                  # batch (padded to 8 sublanes inside the wrapper)
    C_IN, HI, WI = 3, 16, 16
    T = 8                  # sequence length
    E = 32                 # embedding_size
    LSTM_UNITS = 128       # multiple of 128 -> lane-aligned gate slices
    LSTM_LAYERS = 2
    FEAT = LSTM_UNITS      # image feature dim == LSTM_units (fusion requirement)
    MUTAN_LAYERS = 5
    MUTAN_OUT = 128        # stand-in for mutan_out = 1000 (pad to 1024 in prod)
    ANS_VOCAB = 64         # sub-128 on purpose: exercises lane padding/masking

    key = jax.random.PRNGKey(0)
    k_p, k_img, k_q = jax.random.split(key, 3)

    params = init_params(
        k_p, c_in=C_IN, feat_size=FEAT, embedding_size=E,
        lstm_units=LSTM_UNITS, lstm_layers=LSTM_LAYERS,
        mutan_layers=MUTAN_LAYERS, mutan_out=MUTAN_OUT,
        ans_vocab_size=ANS_VOCAB)
    prep = preprocess_params(params)          # one-time, hoisted out of forward

    img = jax.random.normal(k_img, (B, C_IN, HI, WI), jnp.float32)
    ques_embed = jax.random.normal(k_q, (B, T, E), jnp.float32)

    pred = jax.block_until_ready(
        mutan_baseline_forward(prep, ques_embed, img,
                               mutan_layers=MUTAN_LAYERS,
                               mutan_out=MUTAN_OUT,
                               ans_vocab_size=ANS_VOCAB))

    assert pred.shape == (B, ANS_VOCAB)
    assert bool(jnp.all(jnp.isfinite(pred)))
    assert bool(jnp.all(pred >= 0.0))
    row_sums = jnp.sum(pred, axis=1)
    # Softmax denominator uses the EUP approximate reciprocal -> allow a small
    # tolerance on the row sums.
    assert bool(jnp.all(jnp.abs(row_sums - 1.0) < 5e-3)), row_sums
    print("KERNEL_OK")
</pallas_src>

<mosaic_0001>
module attributes {stable_mosaic.version = 11 : i64} {
  func.func @_fused_forward_kernel(%arg0: memref<8x128xbf16, #tpu.memory_space<vmem>>, %arg1: memref<128x128xbf16, #tpu.memory_space<vmem>>, %arg2: memref<64x128xbf16, #tpu.memory_space<vmem>>, %arg3: memref<128x512xbf16, #tpu.memory_space<vmem>>, %arg4: memref<128x512xbf16, #tpu.memory_space<vmem>>, %arg5: memref<1x512xf32, #tpu.memory_space<vmem>>, %arg6: memref<128x512xbf16, #tpu.memory_space<vmem>>, %arg7: memref<128x512xbf16, #tpu.memory_space<vmem>>, %arg8: memref<1x512xf32, #tpu.memory_space<vmem>>, %arg9: memref<128x640xbf16, #tpu.memory_space<vmem>>, %arg10: memref<1x640xf32, #tpu.memory_space<vmem>>, %arg11: memref<128x640xbf16, #tpu.memory_space<vmem>>, %arg12: memref<1x640xf32, #tpu.memory_space<vmem>>, %arg13: memref<128x128xbf16, #tpu.memory_space<vmem>>, %arg14: memref<1x128xf32, #tpu.memory_space<vmem>>, %arg15: memref<8x128xf32, #tpu.memory_space<vmem>>, %arg16: memref<64x512xf32, #tpu.memory_space<vmem>>, %arg17: memref<64x128xf32, #tpu.memory_space<vmem>>) attributes {dimension_semantics = [], scalar_prefetch = 0 : i64, scratch_operands = 2 : i64, tpu.core_type = #tpu.core_type<tc>} {
    %c0 = arith.constant 0 : index
    %c0_0 = arith.constant 0 : index
    %0 = vector.load %arg0[%c0, %c0_0] : memref<8x128xbf16, #tpu.memory_space<vmem>>, vector<8x128xbf16>
    %c0_1 = arith.constant 0 : index
    %c0_2 = arith.constant 0 : index
    %1 = vector.load %arg1[%c0_1, %c0_2] : memref<128x128xbf16, #tpu.memory_space<vmem>>, vector<128x128xbf16>
    %cst = arith.constant dense<0.000000e+00> : vector<8x128xf32>
    %2 = tpu.matmul %0, %1, %cst {dimension_numbers = #tpu.dot_dimension_numbers<[1], [0], [0], [1], [0, 0, 1, 1], [], []>} : vector<8x128xbf16>, vector<128x128xbf16>, vector<8x128xf32> -> vector<8x128xf32>
    %c0_3 = arith.constant 0 : index
    %c0_4 = arith.constant 0 : index
    %3 = vector.load %arg5[%c0_3, %c0_4] : memref<1x512xf32, #tpu.memory_space<vmem>>, vector<1x512xf32>
    %c0_5 = arith.constant 0 : index
    %c0_6 = arith.constant 0 : index
    %4 = vector.load %arg2[%c0_5, %c0_6] : memref<64x128xbf16, #tpu.memory_space<vmem>>, vector<64x128xbf16>
    %c0_7 = arith.constant 0 : index
    %c0_8 = arith.constant 0 : index
    %5 = vector.load %arg3[%c0_7, %c0_8] : memref<128x512xbf16, #tpu.memory_space<vmem>>, vector<128x512xbf16>
    %cst_9 = arith.constant dense<0.000000e+00> : vector<64x512xf32>
    %6 = tpu.matmul %4, %5, %cst_9 {dimension_numbers = #tpu.dot_dimension_numbers<[1], [0], [0], [1], [0, 0, 1, 1], [], []>} : vector<64x128xbf16>, vector<128x512xbf16>, vector<64x512xf32> -> vector<64x512xf32>
    %7 = vector.broadcast %3 : vector<1x512xf32> to vector<64x512xf32>
    %8 = arith.addf %6, %7 : vector<64x512xf32>
    %c0_10 = arith.constant 0 : index
    %c0_11 = arith.constant 0 : index
    %9 = vector.load %arg16[%c0_10, %c0_11] : memref<64x512xf32, #tpu.memory_space<vmem>>, vector<64x512xf32>
    tpu.vector_store %arg16[%c0_10, %c0_11], %8 {strides = array<i32>} : memref<64x512xf32, #tpu.memory_space<vmem>>, vector<64x512xf32>,
    %cst_12 = arith.constant 0.000000e+00 : f32
    %10 = vector.broadcast %cst_12 : f32 to vector<8x128xf32>
    %cst_13 = arith.constant 0.000000e+00 : f32
    %11 = vector.broadcast %cst_13 : f32 to vector<8x128xf32>
    %c0_14 = arith.constant 0 : index
    %c0_15 = arith.constant 0 : index
    %12 = vector.load %arg16[%c0_14, %c0_15] : memref<64x512xf32, #tpu.memory_space<vmem>>, vector<8x512xf32>
    %13 = arith.truncf %10 : vector<8x128xf32> to vector<8x128xbf16>
    %c0_16 = arith.constant 0 : index
    %c0_17 = arith.constant 0 : index
    %14 = vector.load %arg4[%c0_16, %c0_17] : memref<128x512xbf16, #tpu.memory_space<vmem>>, vector<128x512xbf16>
    %cst_18 = arith.constant dense<0.000000e+00> : vector<8x512xf32>
    %15 = tpu.matmul %13, %14, %cst_18 {dimension_numbers = #tpu.dot_dimension_numbers<[1], [0], [0], [1], [0, 0, 1, 1], [], []>} : vector<8x128xbf16>, vector<128x512xbf16>, vector<8x512xf32> -> vector<8x512xf32>
    %16 = arith.addf %12, %15 : vector<8x512xf32>
    %17 = vector.extract_strided_slice %16 {offsets = [0, 0], sizes = [8, 384], strides = [1, 1]} : vector<8x512xf32> to vector<8x384xf32>
    %18 = arith.negf %17 : vector<8x384xf32>
    %19 = math.exp %18 : vector<8x384xf32>
    %cst_19 = arith.constant 1.000000e+00 : f32
    %20 = vector.broadcast %cst_19 : f32 to vector<8x384xf32>
    %21 = arith.addf %20, %19 : vector<8x384xf32>
    %22 = arith.divf %20, %21 : vector<8x384xf32>
    %23 = vector.extract_strided_slice %16 {offsets = [0, 384], sizes = [8, 128], strides = [1, 1]} : vector<8x512xf32> to vector<8x128xf32>
    %24 = math.tanh %23 : vector<8x128xf32>
    %25 = vector.extract_strided_slice %22 {offsets = [0, 0], sizes = [8, 128], strides = [1, 1]} : vector<8x384xf32> to vector<8x128xf32>
    %26 = vector.extract_strided_slice %22 {offsets = [0, 128], sizes = [8, 128], strides = [1, 1]} : vector<8x384xf32> to vector<8x128xf32>
    %27 = vector.extract_strided_slice %22 {offsets = [0, 256], sizes = [8, 128], strides = [1, 1]} : vector<8x384xf32> to vector<8x128xf32>
    %28 = arith.mulf %26, %11 : vector<8x128xf32>
    %29 = arith.mulf %25, %24 : vector<8x128xf32>
    %30 = arith.addf %28, %29 : vector<8x128xf32>
    %31 = math.tanh %30 : vector<8x128xf32>
    %32 = arith.mulf %27, %31 : vector<8x128xf32>
    %c0_20 = arith.constant 0 : index
    %c0_21 = arith.constant 0 : index
    %33 = vector.load %arg17[%c0_20, %c0_21] : memref<64x128xf32, #tpu.memory_space<vmem>>, vector<8x128xf32>
    tpu.vector_store %arg17[%c0_20, %c0_21], %32 {strides = array<i32>} : memref<64x128xf32, #tpu.memory_space<vmem>>, vector<8x128xf32>,
    %c8 = arith.constant 8 : index
    %c0_22 = arith.constant 0 : index
    %34 = vector.load %arg16[%c8, %c0_22] : memref<64x512xf32, #tpu.memory_space<vmem>>, vector<8x512xf32>
    %35 = arith.truncf %32 : vector<8x128xf32> to vector<8x128xbf16>
    %c0_23 = arith.constant 0 : index
    %c0_24 = arith.constant 0 : index
    %36 = vector.load %arg4[%c0_23, %c0_24] : memref<128x512xbf16, #tpu.memory_space<vmem>>, vector<128x512xbf16>
    %cst_25 = arith.constant dense<0.000000e+00> : vector<8x512xf32>
    %37 = tpu.matmul %35, %36, %cst_25 {dimension_numbers = #tpu.dot_dimension_numbers<[1], [0], [0], [1], [0, 0, 1, 1], [], []>} : vector<8x128xbf16>, vector<128x512xbf16>, vector<8x512xf32> -> vector<8x512xf32>
    %38 = arith.addf %34, %37 : vector<8x512xf32>
    %39 = vector.extract_strided_slice %38 {offsets = [0, 0], sizes = [8, 384], strides = [1, 1]} : vector<8x512xf32> to vector<8x384xf32>
    %40 = arith.negf %39 : vector<8x384xf32>
    %41 = math.exp %40 : vector<8x384xf32>
    %cst_26 = arith.constant 1.000000e+00 : f32
    %42 = vector.broadcast %cst_26 : f32 to vector<8x384xf32>
    %43 = arith.addf %42, %41 : vector<8x384xf32>
    %44 = arith.divf %42, %43 : vector<8x384xf32>
    %45 = vector.extract_strided_slice %38 {offsets = [0, 384], sizes = [8, 128], strides = [1, 1]} : vector<8x512xf32> to vector<8x128xf32>
    %46 = math.tanh %45 : vector<8x128xf32>
    %47 = vector.extract_strided_slice %44 {offsets = [0, 0], sizes = [8, 128], strides = [1, 1]} : vector<8x384xf32> to vector<8x128xf32>
    %48 = vector.extract_strided_slice %44 {offsets = [0, 128], sizes = [8, 128], strides = [1, 1]} : vector<8x384xf32> to vector<8x128xf32>
    %49 = vector.extract_strided_slice %44 {offsets = [0, 256], sizes = [8, 128], strides = [1, 1]} : vector<8x384xf32> to vector<8x128xf32>
    %50 = arith.mulf %48, %30 : vector<8x128xf32>
    %51 = arith.mulf %47, %46 : vector<8x128xf32>
    %52 = arith.addf %50, %51 : vector<8x128xf32>
    %53 = math.tanh %52 : vector<8x128xf32>
    %54 = arith.mulf %49, %53 : vector<8x128xf32>
    %c8_27 = arith.constant 8 : index
    %c0_28 = arith.constant 0 : index
    %55 = vector.load %arg17[%c8_27, %c0_28] : memref<64x128xf32, #tpu.memory_space<vmem>>, vector<8x128xf32>
    tpu.vector_store %arg17[%c8_27, %c0_28], %54 {strides = array<i32>} : memref<64x128xf32, #tpu.memory_space<vmem>>, vector<8x128xf32>,
    %c16 = arith.constant 16 : index
    %c0_29 = arith.constant 0 : index
    %56 = vector.load %arg16[%c16, %c0_29] : memref<64x512xf32, #tpu.memory_space<vmem>>, vector<8x512xf32>
    %57 = arith.truncf %54 : vector<8x128xf32> to vector<8x128xbf16>
    %c0_30 = arith.constant 0 : index
    %c0_31 = arith.constant 0 : index
    %58 = vector.load %arg4[%c0_30, %c0_31] : memref<128x512xbf16, #tpu.memory_space<vmem>>, vector<128x512xbf16>
    %cst_32 = arith.constant dense<0.000000e+00> : vector<8x512xf32>
    %59 = tpu.matmul %57, %58, %cst_32 {dimension_numbers = #tpu.dot_dimension_numbers<[1], [0], [0], [1], [0, 0, 1, 1], [], []>} : vector<8x128xbf16>, vector<128x512xbf16>, vector<8x512xf32> -> vector<8x512xf32>
    %60 = arith.addf %56, %59 : vector<8x512xf32>
    %61 = vector.extract_strided_slice %60 {offsets = [0, 0], sizes = [8, 384], strides = [1, 1]} : vector<8x512xf32> to vector<8x384xf32>
    %62 = arith.negf %61 : vector<8x384xf32>
    %63 = math.exp %62 : vector<8x384xf32>
    %cst_33 = arith.constant 1.000000e+00 : f32
    %64 = vector.broadcast %cst_33 : f32 to vector<8x384xf32>
    %65 = arith.addf %64, %63 : vector<8x384xf32>
    %66 = arith.divf %64, %65 : vector<8x384xf32>
    %67 = vector.extract_strided_slice %60 {offsets = [0, 384], sizes = [8, 128], strides = [1, 1]} : vector<8x512xf32> to vector<8x128xf32>
    %68 = math.tanh %67 : vector<8x128xf32>
    %69 = vector.extract_strided_slice %66 {offsets = [0, 0], sizes = [8, 128], strides = [1, 1]} : vector<8x384xf32> to vector<8x128xf32>
    %70 = vector.extract_strided_slice %66 {offsets = [0, 128], sizes = [8, 128], strides = [1, 1]} : vector<8x384xf32> to vector<8x128xf32>
    %71 = vector.extract_strided_slice %66 {offsets = [0, 256], sizes = [8, 128], strides = [1, 1]} : vector<8x384xf32> to vector<8x128xf32>
    %72 = arith.mulf %70, %52 : vector<8x128xf32>
    %73 = arith.mulf %69, %68 : vector<8x128xf32>
    %74 = arith.addf %72, %73 : vector<8x128xf32>
    %75 = math.tanh %74 : vector<8x128xf32>
    %76 = arith.mulf %71, %75 : vector<8x128xf32>
    %c16_34 = arith.constant 16 : index
    %c0_35 = arith.constant 0 : index
    %77 = vector.load %arg17[%c16_34, %c0_35] : memref<64x128xf32, #tpu.memory_space<vmem>>, vector<8x128xf32>
    tpu.vector_store %arg17[%c16_34, %c0_35], %76 {strides = array<i32>} : memref<64x128xf32, #tpu.memory_space<vmem>>, vector<8x128xf32>,
    %c24 = arith.constant 24 : index
    %c0_36 = arith.constant 0 : index
    %78 = vector.load %arg16[%c24, %c0_36] : memref<64x512xf32, #tpu.memory_space<vmem>>, vector<8x512xf32>
    %79 = arith.truncf %76 : vector<8x128xf32> to vector<8x128xbf16>
    %c0_37 = arith.constant 0 : index
    %c0_38 = arith.constant 0 : index
    %80 = vector.load %arg4[%c0_37, %c0_38] : memref<128x512xbf16, #tpu.memory_space<vmem>>, vector<128x512xbf16>
    %cst_39 = arith.constant dense<0.000000e+00> : vector<8x512xf32>
    %81 = tpu.matmul %79, %80, %cst_39 {dimension_numbers = #tpu.dot_dimension_numbers<[1], [0], [0], [1], [0, 0, 1, 1], [], []>} : vector<8x128xbf16>, vector<128x512xbf16>, vector<8x512xf32> -> vector<8x512xf32>
    %82 = arith.addf %78, %81 : vector<8x512xf32>
    %83 = vector.extract_strided_slice %82 {offsets = [0, 0], sizes = [8, 384], strides = [1, 1]} : vector<8x512xf32> to vector<8x384xf32>
    %84 = arith.negf %83 : vector<8x384xf32>
    %85 = math.exp %84 : vector<8x384xf32>
    %cst_40 = arith.constant 1.000000e+00 : f32
    %86 = vector.broadcast %cst_40 : f32 to vector<8x384xf32>
    %87 = arith.addf %86, %85 : vector<8x384xf32>
    %88 = arith.divf %86, %87 : vector<8x384xf32>
    %89 = vector.extract_strided_slice %82 {offsets = [0, 384], sizes = [8, 128], strides = [1, 1]} : vector<8x512xf32> to vector<8x128xf32>
    %90 = math.tanh %89 : vector<8x128xf32>
    %91 = vector.extract_strided_slice %88 {offsets = [0, 0], sizes = [8, 128], strides = [1, 1]} : vector<8x384xf32> to vector<8x128xf32>
    %92 = vector.extract_strided_slice %88 {offsets = [0, 128], sizes = [8, 128], strides = [1, 1]} : vector<8x384xf32> to vector<8x128xf32>
    %93 = vector.extract_strided_slice %88 {offsets = [0, 256], sizes = [8, 128], strides = [1, 1]} : vector<8x384xf32> to vector<8x128xf32>
    %94 = arith.mulf %92, %74 : vector<8x128xf32>
    %95 = arith.mulf %91, %90 : vector<8x128xf32>
    %96 = arith.addf %94, %95 : vector<8x128xf32>
    %97 = math.tanh %96 : vector<8x128xf32>
    %98 = arith.mulf %93, %97 : vector<8x128xf32>
    %c24_41 = arith.constant 24 : index
    %c0_42 = arith.constant 0 : index
    %99 = vector.load %arg17[%c24_41, %c0_42] : memref<64x128xf32, #tpu.memory_space<vmem>>, vector<8x128xf32>
    tpu.vector_store %arg17[%c24_41, %c0_42], %98 {strides = array<i32>} : memref<64x128xf32, #tpu.memory_space<vmem>>, vector<8x128xf32>,
    %c32 = arith.constant 32 : index
    %c0_43 = arith.constant 0 : index
    %100 = vector.load %arg16[%c32, %c0_43] : memref<64x512xf32, #tpu.memory_space<vmem>>, vector<8x512xf32>
    %101 = arith.truncf %98 : vector<8x128xf32> to vector<8x128xbf16>
    %c0_44 = arith.constant 0 : index
    %c0_45 = arith.constant 0 : index
    %102 = vector.load %arg4[%c0_44, %c0_45] : memref<128x512xbf16, #tpu.memory_space<vmem>>, vector<128x512xbf16>
    %cst_46 = arith.constant dense<0.000000e+00> : vector<8x512xf32>
    %103 = tpu.matmul %101, %102, %cst_46 {dimension_numbers = #tpu.dot_dimension_numbers<[1], [0], [0], [1], [0, 0, 1, 1], [], []>} : vector<8x128xbf16>, vector<128x512xbf16>, vector<8x512xf32> -> vector<8x512xf32>
    %104 = arith.addf %100, %103 : vector<8x512xf32>
    %105 = vector.extract_strided_slice %104 {offsets = [0, 0], sizes = [8, 384], strides = [1, 1]} : vector<8x512xf32> to vector<8x384xf32>
    %106 = arith.negf %105 : vector<8x384xf32>
    %107 = math.exp %106 : vector<8x384xf32>
    %cst_47 = arith.constant 1.000000e+00 : f32
    %108 = vector.broadcast %cst_47 : f32 to vector<8x384xf32>
    %109 = arith.addf %108, %107 : vector<8x384xf32>
    %110 = arith.divf %108, %109 : vector<8x384xf32>
    %111 = vector.extract_strided_slice %104 {offsets = [0, 384], sizes = [8, 128], strides = [1, 1]} : vector<8x512xf32> to vector<8x128xf32>
    %112 = math.tanh %111 : vector<8x128xf32>
    %113 = vector.extract_strided_slice %110 {offsets = [0, 0], sizes = [8, 128], strides = [1, 1]} : vector<8x384xf32> to vector<8x128xf32>
    %114 = vector.extract_strided_slice %110 {offsets = [0, 128], sizes = [8, 128], strides = [1, 1]} : vector<8x384xf32> to vector<8x128xf32>
    %115 = vector.extract_strided_slice %110 {offsets = [0, 256], sizes = [8, 128], strides = [1, 1]} : vector<8x384xf32> to vector<8x128xf32>
    %116 = arith.mulf %114, %96 : vector<8x128xf32>
    %117 = arith.mulf %113, %112 : vector<8x128xf32>
    %118 = arith.addf %116, %117 : vector<8x128xf32>
    %119 = math.tanh %118 : vector<8x128xf32>
    %120 = arith.mulf %115, %119 : vector<8x128xf32>
    %c32_48 = arith.constant 32 : index
    %c0_49 = arith.constant 0 : index
    %121 = vector.load %arg17[%c32_48, %c0_49] : memref<64x128xf32, #tpu.memory_space<vmem>>, vector<8x128xf32>
    tpu.vector_store %arg17[%c32_48, %c0_49], %120 {strides = array<i32>} : memref<64x128xf32, #tpu.memory_space<vmem>>, vector<8x128xf32>,
    %c40 = arith.constant 40 : index
    %c0_50 = arith.constant 0 : index
    %122 = vector.load %arg16[%c40, %c0_50] : memref<64x512xf32, #tpu.memory_space<vmem>>, vector<8x512xf32>
    %123 = arith.truncf %120 : vector<8x128xf32> to vector<8x128xbf16>
    %c0_51 = arith.constant 0 : index
    %c0_52 = arith.constant 0 : index
    %124 = vector.load %arg4[%c0_51, %c0_52] : memref<128x512xbf16, #tpu.memory_space<vmem>>, vector<128x512xbf16>
    %cst_53 = arith.constant dense<0.000000e+00> : vector<8x512xf32>
    %125 = tpu.matmul %123, %124, %cst_53 {dimension_numbers = #tpu.dot_dimension_numbers<[1], [0], [0], [1], [0, 0, 1, 1], [], []>} : vector<8x128xbf16>, vector<128x512xbf16>, vector<8x512xf32> -> vector<8x512xf32>
    %126 = arith.addf %122, %125 : vector<8x512xf32>
    %127 = vector.extract_strided_slice %126 {offsets = [0, 0], sizes = [8, 384], strides = [1, 1]} : vector<8x512xf32> to vector<8x384xf32>
    %128 = arith.negf %127 : vector<8x384xf32>
    %129 = math.exp %128 : vector<8x384xf32>
    %cst_54 = arith.constant 1.000000e+00 : f32
    %130 = vector.broadcast %cst_54 : f32 to vector<8x384xf32>
    %131 = arith.addf %130, %129 : vector<8x384xf32>
    %132 = arith.divf %130, %131 : vector<8x384xf32>
    %133 = vector.extract_strided_slice %126 {offsets = [0, 384], sizes = [8, 128], strides = [1, 1]} : vector<8x512xf32> to vector<8x128xf32>
    %134 = math.tanh %133 : vector<8x128xf32>
    %135 = vector.extract_strided_slice %132 {offsets = [0, 0], sizes = [8, 128], strides = [1, 1]} : vector<8x384xf32> to vector<8x128xf32>
    %136 = vector.extract_strided_slice %132 {offsets = [0, 128], sizes = [8, 128], strides = [1, 1]} : vector<8x384xf32> to vector<8x128xf32>
    %137 = vector.extract_strided_slice %132 {offsets = [0, 256], sizes = [8, 128], strides = [1, 1]} : vector<8x384xf32> to vector<8x128xf32>
    %138 = arith.mulf %136, %118 : vector<8x128xf32>
    %139 = arith.mulf %135, %134 : vector<8x128xf32>
    %140 = arith.addf %138, %139 : vector<8x128xf32>
    %141 = math.tanh %140 : vector<8x128xf32>
    %142 = arith.mulf %137, %141 : vector<8x128xf32>
    %c40_55 = arith.constant 40 : index
    %c0_56 = arith.constant 0 : index
    %143 = vector.load %arg17[%c40_55, %c0_56] : memref<64x128xf32, #tpu.memory_space<vmem>>, vector<8x128xf32>
    tpu.vector_store %arg17[%c40_55, %c0_56], %142 {strides = array<i32>} : memref<64x128xf32, #tpu.memory_space<vmem>>, vector<8x128xf32>,
    %c48 = arith.constant 48 : index
    %c0_57 = arith.constant 0 : index
    %144 = vector.load %arg16[%c48, %c0_57] : memref<64x512xf32, #tpu.memory_space<vmem>>, vector<8x512xf32>
    %145 = arith.truncf %142 : vector<8x128xf32> to vector<8x128xbf16>
    %c0_58 = arith.constant 0 : index
    %c0_59 = arith.constant 0 : index
    %146 = vector.load %arg4[%c0_58, %c0_59] : memref<128x512xbf16, #tpu.memory_space<vmem>>, vector<128x512xbf16>
    %cst_60 = arith.constant dense<0.000000e+00> : vector<8x512xf32>
    %147 = tpu.matmul %145, %146, %cst_60 {dimension_numbers = #tpu.dot_dimension_numbers<[1], [0], [0], [1], [0, 0, 1, 1], [], []>} : vector<8x128xbf16>, vector<128x512xbf16>, vector<8x512xf32> -> vector<8x512xf32>
    %148 = arith.addf %144, %147 : vector<8x512xf32>
    %149 = vector.extract_strided_slice %148 {offsets = [0, 0], sizes = [8, 384], strides = [1, 1]} : vector<8x512xf32> to vector<8x384xf32>
    %150 = arith.negf %149 : vector<8x384xf32>
    %151 = math.exp %150 : vector<8x384xf32>
    %cst_61 = arith.constant 1.000000e+00 : f32
    %152 = vector.broadcast %cst_61 : f32 to vector<8x384xf32>
    %153 = arith.addf %152, %151 : vector<8x384xf32>
    %154 = arith.divf %152, %153 : vector<8x384xf32>
    %155 = vector.extract_strided_slice %148 {offsets = [0, 384], sizes = [8, 128], strides = [1, 1]} : vector<8x512xf32> to vector<8x128xf32>
    %156 = math.tanh %155 : vector<8x128xf32>
    %157 = vector.extract_strided_slice %154 {offsets = [0, 0], sizes = [8, 128], strides = [1, 1]} : vector<8x384xf32> to vector<8x128xf32>
    %158 = vector.extract_strided_slice %154 {offsets = [0, 128], sizes = [8, 128], strides = [1, 1]} : vector<8x384xf32> to vector<8x128xf32>
    %159 = vector.extract_strided_slice %154 {offsets = [0, 256], sizes = [8, 128], strides = [1, 1]} : vector<8x384xf32> to vector<8x128xf32>
    %160 = arith.mulf %158, %140 : vector<8x128xf32>
    %161 = arith.mulf %157, %156 : vector<8x128xf32>
    %162 = arith.addf %160, %161 : vector<8x128xf32>
    %163 = math.tanh %162 : vector<8x128xf32>
    %164 = arith.mulf %159, %163 : vector<8x128xf32>
    %c48_62 = arith.constant 48 : index
    %c0_63 = arith.constant 0 : index
    %165 = vector.load %arg17[%c48_62, %c0_63] : memref<64x128xf32, #tpu.memory_space<vmem>>, vector<8x128xf32>
    tpu.vector_store %arg17[%c48_62, %c0_63], %164 {strides = array<i32>} : memref<64x128xf32, #tpu.memory_space<vmem>>, vector<8x128xf32>,
    %c56 = arith.constant 56 : index
    %c0_64 = arith.constant 0 : index
    %166 = vector.load %arg16[%c56, %c0_64] : memref<64x512xf32, #tpu.memory_space<vmem>>, vector<8x512xf32>
    %167 = arith.truncf %164 : vector<8x128xf32> to vector<8x128xbf16>
    %c0_65 = arith.constant 0 : index
    %c0_66 = arith.constant 0 : index
    %168 = vector.load %arg4[%c0_65, %c0_66] : memref<128x512xbf16, #tpu.memory_space<vmem>>, vector<128x512xbf16>
    %cst_67 = arith.constant dense<0.000000e+00> : vector<8x512xf32>
    %169 = tpu.matmul %167, %168, %cst_67 {dimension_numbers = #tpu.dot_dimension_numbers<[1], [0], [0], [1], [0, 0, 1, 1], [], []>} : vector<8x128xbf16>, vector<128x512xbf16>, vector<8x512xf32> -> vector<8x512xf32>
    %170 = arith.addf %166, %169 : vector<8x512xf32>
    %171 = vector.extract_strided_slice %170 {offsets = [0, 0], sizes = [8, 384], strides = [1, 1]} : vector<8x512xf32> to vector<8x384xf32>
    %172 = arith.negf %171 : vector<8x384xf32>
    %173 = math.exp %172 : vector<8x384xf32>
    %cst_68 = arith.constant 1.000000e+00 : f32
    %174 = vector.broadcast %cst_68 : f32 to vector<8x384xf32>
    %175 = arith.addf %174, %173 : vector<8x384xf32>
    %176 = arith.divf %174, %175 : vector<8x384xf32>
    %177 = vector.extract_strided_slice %170 {offsets = [0, 384], sizes = [8, 128], strides = [1, 1]} : vector<8x512xf32> to vector<8x128xf32>
    %178 = math.tanh %177 : vector<8x128xf32>
    %179 = vector.extract_strided_slice %176 {offsets = [0, 0], sizes = [8, 128], strides = [1, 1]} : vector<8x384xf32> to vector<8x128xf32>
    %180 = vector.extract_strided_slice %176 {offsets = [0, 128], sizes = [8, 128], strides = [1, 1]} : vector<8x384xf32> to vector<8x128xf32>
    %181 = vector.extract_strided_slice %176 {offsets = [0, 256], sizes = [8, 128], strides = [1, 1]} : vector<8x384xf32> to vector<8x128xf32>
    %182 = arith.mulf %180, %162 : vector<8x128xf32>
    %183 = arith.mulf %179, %178 : vector<8x128xf32>
    %184 = arith.addf %182, %183 : vector<8x128xf32>
    %185 = math.tanh %184 : vector<8x128xf32>
    %186 = arith.mulf %181, %185 : vector<8x128xf32>
    %c56_69 = arith.constant 56 : index
    %c0_70 = arith.constant 0 : index
    %187 = vector.load %arg17[%c56_69, %c0_70] : memref<64x128xf32, #tpu.memory_space<vmem>>, vector<8x128xf32>
    tpu.vector_store %arg17[%c56_69, %c0_70], %186 {strides = array<i32>} : memref<64x128xf32, #tpu.memory_space<vmem>>, vector<8x128xf32>,
    %c0_71 = arith.constant 0 : index
    %c0_72 = arith.constant 0 : index
    %188 = vector.load %arg8[%c0_71, %c0_72] : memref<1x512xf32, #tpu.memory_space<vmem>>, vector<1x512xf32>
    %c0_73 = arith.constant 0 : index
    %c0_74 = arith.constant 0 : index
    %189 = vector.load %arg17[%c0_73, %c0_74] : memref<64x128xf32, #tpu.memory_space<vmem>>, vector<64x128xf32>
    %190 = arith.truncf %189 : vector<64x128xf32> to vector<64x128xbf16>
    %c0_75 = arith.constant 0 : index
    %c0_76 = arith.constant 0 : index
    %191 = vector.load %arg6[%c0_75, %c0_76] : memref<128x512xbf16, #tpu.memory_space<vmem>>, vector<128x512xbf16>
    %cst_77 = arith.constant dense<0.000000e+00> : vector<64x512xf32>
    %192 = tpu.matmul %190, %191, %cst_77 {dimension_numbers = #tpu.dot_dimension_numbers<[1], [0], [0], [1], [0, 0, 1, 1], [], []>} : vector<64x128xbf16>, vector<128x512xbf16>, vector<64x512xf32> -> vector<64x512xf32>
    %193 = vector.broadcast %188 : vector<1x512xf32> to vector<64x512xf32>
    %194 = arith.addf %192, %193 : vector<64x512xf32>
    %c0_78 = arith.constant 0 : index
    %c0_79 = arith.constant 0 : index
    %195 = vector.load %arg16[%c0_78, %c0_79] : memref<64x512xf32, #tpu.memory_space<vmem>>, vector<64x512xf32>
    tpu.vector_store %arg16[%c0_78, %c0_79], %194 {strides = array<i32>} : memref<64x512xf32, #tpu.memory_space<vmem>>, vector<64x512xf32>,
    %cst_80 = arith.constant 0.000000e+00 : f32
    %196 = vector.broadcast %cst_80 : f32 to vector<8x128xf32>
    %cst_81 = arith.constant 0.000000e+00 : f32
    %197 = vector.broadcast %cst_81 : f32 to vector<8x128xf32>
    %c0_82 = arith.constant 0 : index
    %c0_83 = arith.constant 0 : index
    %198 = vector.load %arg16[%c0_82, %c0_83] : memref<64x512xf32, #tpu.memory_space<vmem>>, vector<8x512xf32>
    %199 = arith.truncf %196 : vector<8x128xf32> to vector<8x128xbf16>
    %c0_84 = arith.constant 0 : index
    %c0_85 = arith.constant 0 : index
    %200 = vector.load %arg7[%c0_84, %c0_85] : memref<128x512xbf16, #tpu.memory_space<vmem>>, vector<128x512xbf16>
    %cst_86 = arith.constant dense<0.000000e+00> : vector<8x512xf32>
    %201 = tpu.matmul %199, %200, %cst_86 {dimension_numbers = #tpu.dot_dimension_numbers<[1], [0], [0], [1], [0, 0, 1, 1], [], []>} : vector<8x128xbf16>, vector<128x512xbf16>, vector<8x512xf32> -> vector<8x512xf32>
    %202 = arith.addf %198, %201 : vector<8x512xf32>
    %203 = vector.extract_strided_slice %202 {offsets = [0, 0], sizes = [8, 384], strides = [1, 1]} : vector<8x512xf32> to vector<8x384xf32>
    %204 = arith.negf %203 : vector<8x384xf32>
    %205 = math.exp %204 : vector<8x384xf32>
    %cst_87 = arith.constant 1.000000e+00 : f32
    %206 = vector.broadcast %cst_87 : f32 to vector<8x384xf32>
    %207 = arith.addf %206, %205 : vector<8x384xf32>
    %208 = arith.divf %206, %207 : vector<8x384xf32>
    %209 = vector.extract_strided_slice %202 {offsets = [0, 384], sizes = [8, 128], strides = [1, 1]} : vector<8x512xf32> to vector<8x128xf32>
    %210 = math.tanh %209 : vector<8x128xf32>
    %211 = vector.extract_strided_slice %208 {offsets = [0, 0], sizes = [8, 128], strides = [1, 1]} : vector<8x384xf32> to vector<8x128xf32>
    %212 = vector.extract_strided_slice %208 {offsets = [0, 128], sizes = [8, 128], strides = [1, 1]} : vector<8x384xf32> to vector<8x128xf32>
    %213 = vector.extract_strided_slice %208 {offsets = [0, 256], sizes = [8, 128], strides = [1, 1]} : vector<8x384xf32> to vector<8x128xf32>
    %214 = arith.mulf %212, %197 : vector<8x128xf32>
    %215 = arith.mulf %211, %210 : vector<8x128xf32>
    %216 = arith.addf %214, %215 : vector<8x128xf32>
    %217 = math.tanh %216 : vector<8x128xf32>
    %218 = arith.mulf %213, %217 : vector<8x128xf32>
    %c8_88 = arith.constant 8 : index
    %c0_89 = arith.constant 0 : index
    %219 = vector.load %arg16[%c8_88, %c0_89] : memref<64x512xf32, #tpu.memory_space<vmem>>, vector<8x512xf32>
    %220 = arith.truncf %218 : vector<8x128xf32> to vector<8x128xbf16>
    %c0_90 = arith.constant 0 : index
    %c0_91 = arith.constant 0 : index
    %221 = vector.load %arg7[%c0_90, %c0_91] : memref<128x512xbf16, #tpu.memory_space<vmem>>, vector<128x512xbf16>
    %cst_92 = arith.constant dense<0.000000e+00> : vector<8x512xf32>
    %222 = tpu.matmul %220, %221, %cst_92 {dimension_numbers = #tpu.dot_dimension_numbers<[1], [0], [0], [1], [0, 0, 1, 1], [], []>} : vector<8x128xbf16>, vector<128x512xbf16>, vector<8x512xf32> -> vector<8x512xf32>
    %223 = arith.addf %219, %222 : vector<8x512xf32>
    %224 = vector.extract_strided_slice %223 {offsets = [0, 0], sizes = [8, 384], strides = [1, 1]} : vector<8x512xf32> to vector<8x384xf32>
    %225 = arith.negf %224 : vector<8x384xf32>
    %226 = math.exp %225 : vector<8x384xf32>
    %cst_93 = arith.constant 1.000000e+00 : f32
    %227 = vector.broadcast %cst_93 : f32 to vector<8x384xf32>
    %228 = arith.addf %227, %226 : vector<8x384xf32>
    %229 = arith.divf %227, %228 : vector<8x384xf32>
    %230 = vector.extract_strided_slice %223 {offsets = [0, 384], sizes = [8, 128], strides = [1, 1]} : vector<8x512xf32> to vector<8x128xf32>
    %231 = math.tanh %230 : vector<8x128xf32>
    %232 = vector.extract_strided_slice %229 {offsets = [0, 0], sizes = [8, 128], strides = [1, 1]} : vector<8x384xf32> to vector<8x128xf32>
    %233 = vector.extract_strided_slice %229 {offsets = [0, 128], sizes = [8, 128], strides = [1, 1]} : vector<8x384xf32> to vector<8x128xf32>
    %234 = vector.extract_strided_slice %229 {offsets = [0, 256], sizes = [8, 128], strides = [1, 1]} : vector<8x384xf32> to vector<8x128xf32>
    %235 = arith.mulf %233, %216 : vector<8x128xf32>
    %236 = arith.mulf %232, %231 : vector<8x128xf32>
    %237 = arith.addf %235, %236 : vector<8x128xf32>
    %238 = math.tanh %237 : vector<8x128xf32>
    %239 = arith.mulf %234, %238 : vector<8x128xf32>
    %c16_94 = arith.constant 16 : index
    %c0_95 = arith.constant 0 : index
    %240 = vector.load %arg16[%c16_94, %c0_95] : memref<64x512xf32, #tpu.memory_space<vmem>>, vector<8x512xf32>
    %241 = arith.truncf %239 : vector<8x128xf32> to vector<8x128xbf16>
    %c0_96 = arith.constant 0 : index
    %c0_97 = arith.constant 0 : index
    %242 = vector.load %arg7[%c0_96, %c0_97] : memref<128x512xbf16, #tpu.memory_space<vmem>>, vector<128x512xbf16>
    %cst_98 = arith.constant dense<0.000000e+00> : vector<8x512xf32>
    %243 = tpu.matmul %241, %242, %cst_98 {dimension_numbers = #tpu.dot_dimension_numbers<[1], [0], [0], [1], [0, 0, 1, 1], [], []>} : vector<8x128xbf16>, vector<128x512xbf16>, vector<8x512xf32> -> vector<8x512xf32>
    %244 = arith.addf %240, %243 : vector<8x512xf32>
    %245 = vector.extract_strided_slice %244 {offsets = [0, 0], sizes = [8, 384], strides = [1, 1]} : vector<8x512xf32> to vector<8x384xf32>
    %246 = arith.negf %245 : vector<8x384xf32>
    %247 = math.exp %246 : vector<8x384xf32>
    %cst_99 = arith.constant 1.000000e+00 : f32
    %248 = vector.broadcast %cst_99 : f32 to vector<8x384xf32>
    %249 = arith.addf %248, %247 : vector<8x384xf32>
    %250 = arith.divf %248, %249 : vector<8x384xf32>
    %251 = vector.extract_strided_slice %244 {offsets = [0, 384], sizes = [8, 128], strides = [1, 1]} : vector<8x512xf32> to vector<8x128xf32>
    %252 = math.tanh %251 : vector<8x128xf32>
    %253 = vector.extract_strided_slice %250 {offsets = [0, 0], sizes = [8, 128], strides = [1, 1]} : vector<8x384xf32> to vector<8x128xf32>
    %254 = vector.extract_strided_slice %250 {offsets = [0, 128], sizes = [8, 128], strides = [1, 1]} : vector<8x384xf32> to vector<8x128xf32>
    %255 = vector.extract_strided_slice %250 {offsets = [0, 256], sizes = [8, 128], strides = [1, 1]} : vector<8x384xf32> to vector<8x128xf32>
    %256 = arith.mulf %254, %237 : vector<8x128xf32>
    %257 = arith.mulf %253, %252 : vector<8x128xf32>
    %258 = arith.addf %256, %257 : vector<8x128xf32>
    %259 = math.tanh %258 : vector<8x128xf32>
    %260 = arith.mulf %255, %259 : vector<8x128xf32>
    %c24_100 = arith.constant 24 : index
    %c0_101 = arith.constant 0 : index
    %261 = vector.load %arg16[%c24_100, %c0_101] : memref<64x512xf32, #tpu.memory_space<vmem>>, vector<8x512xf32>
    %262 = arith.truncf %260 : vector<8x128xf32> to vector<8x128xbf16>
    %c0_102 = arith.constant 0 : index
    %c0_103 = arith.constant 0 : index
    %263 = vector.load %arg7[%c0_102, %c0_103] : memref<128x512xbf16, #tpu.memory_space<vmem>>, vector<128x512xbf16>
    %cst_104 = arith.constant dense<0.000000e+00> : vector<8x512xf32>
    %264 = tpu.matmul %262, %263, %cst_104 {dimension_numbers = #tpu.dot_dimension_numbers<[1], [0], [0], [1], [0, 0, 1, 1], [], []>} : vector<8x128xbf16>, vector<128x512xbf16>, vector<8x512xf32> -> vector<8x512xf32>
    %265 = arith.addf %261, %264 : vector<8x512xf32>
    %266 = vector.extract_strided_slice %265 {offsets = [0, 0], sizes = [8, 384], strides = [1, 1]} : vector<8x512xf32> to vector<8x384xf32>
    %267 = arith.negf %266 : vector<8x384xf32>
    %268 = math.exp %267 : vector<8x384xf32>
    %cst_105 = arith.constant 1.000000e+00 : f32
    %269 = vector.broadcast %cst_105 : f32 to vector<8x384xf32>
    %270 = arith.addf %269, %268 : vector<8x384xf32>
    %271 = arith.divf %269, %270 : vector<8x384xf32>
    %272 = vector.extract_strided_slice %265 {offsets = [0, 384], sizes = [8, 128], strides = [1, 1]} : vector<8x512xf32> to vector<8x128xf32>
    %273 = math.tanh %272 : vector<8x128xf32>
    %274 = vector.extract_strided_slice %271 {offsets = [0, 0], sizes = [8, 128], strides = [1, 1]} : vector<8x384xf32> to vector<8x128xf32>
    %275 = vector.extract_strided_slice %271 {offsets = [0, 128], sizes = [8, 128], strides = [1, 1]} : vector<8x384xf32> to vector<8x128xf32>
    %276 = vector.extract_strided_slice %271 {offsets = [0, 256], sizes = [8, 128], strides = [1, 1]} : vector<8x384xf32> to vector<8x128xf32>
    %277 = arith.mulf %275, %258 : vector<8x128xf32>
    %278 = arith.mulf %274, %273 : vector<8x128xf32>
    %279 = arith.addf %277, %278 : vector<8x128xf32>
    %280 = math.tanh %279 : vector<8x128xf32>
    %281 = arith.mulf %276, %280 : vector<8x128xf32>
    %c32_106 = arith.constant 32 : index
    %c0_107 = arith.constant 0 : index
    %282 = vector.load %arg16[%c32_106, %c0_107] : memref<64x512xf32, #tpu.memory_space<vmem>>, vector<8x512xf32>
    %283 = arith.truncf %281 : vector<8x128xf32> to vector<8x128xbf16>
    %c0_108 = arith.constant 0 : index
    %c0_109 = arith.constant 0 : index
    %284 = vector.load %arg7[%c0_108, %c0_109] : memref<128x512xbf16, #tpu.memory_space<vmem>>, vector<128x512xbf16>
    %cst_110 = arith.constant dense<0.000000e+00> : vector<8x512xf32>
    %285 = tpu.matmul %283, %284, %cst_110 {dimension_numbers = #tpu.dot_dimension_numbers<[1], [0], [0], [1], [0, 0, 1, 1], [], []>} : vector<8x128xbf16>, vector<128x512xbf16>, vector<8x512xf32> -> vector<8x512xf32>
    %286 = arith.addf %282, %285 : vector<8x512xf32>
    %287 = vector.extract_strided_slice %286 {offsets = [0, 0], sizes = [8, 384], strides = [1, 1]} : vector<8x512xf32> to vector<8x384xf32>
    %288 = arith.negf %287 : vector<8x384xf32>
    %289 = math.exp %288 : vector<8x384xf32>
    %cst_111 = arith.constant 1.000000e+00 : f32
    %290 = vector.broadcast %cst_111 : f32 to vector<8x384xf32>
    %291 = arith.addf %290, %289 : vector<8x384xf32>
    %292 = arith.divf %290, %291 : vector<8x384xf32>
    %293 = vector.extract_strided_slice %286 {offsets = [0, 384], sizes = [8, 128], strides = [1, 1]} : vector<8x512xf32> to vector<8x128xf32>
    %294 = math.tanh %293 : vector<8x128xf32>
    %295 = vector.extract_strided_slice %292 {offsets = [0, 0], sizes = [8, 128], strides = [1, 1]} : vector<8x384xf32> to vector<8x128xf32>
    %296 = vector.extract_strided_slice %292 {offsets = [0, 128], sizes = [8, 128], strides = [1, 1]} : vector<8x384xf32> to vector<8x128xf32>
    %297 = vector.extract_strided_slice %292 {offsets = [0, 256], sizes = [8, 128], strides = [1, 1]} : vector<8x384xf32> to vector<8x128xf32>
    %298 = arith.mulf %296, %279 : vector<8x128xf32>
    %299 = arith.mulf %295, %294 : vector<8x128xf32>
    %300 = arith.addf %298, %299 : vector<8x128xf32>
    %301 = math.tanh %300 : vector<8x128xf32>
    %302 = arith.mulf %297, %301 : vector<8x128xf32>
    %c40_112 = arith.constant 40 : index
    %c0_113 = arith.constant 0 : index
    %303 = vector.load %arg16[%c40_112, %c0_113] : memref<64x512xf32, #tpu.memory_space<vmem>>, vector<8x512xf32>
    %304 = arith.truncf %302 : vector<8x128xf32> to vector<8x128xbf16>
    %c0_114 = arith.constant 0 : index
    %c0_115 = arith.constant 0 : index
    %305 = vector.load %arg7[%c0_114, %c0_115] : memref<128x512xbf16, #tpu.memory_space<vmem>>, vector<128x512xbf16>
    %cst_116 = arith.constant dense<0.000000e+00> : vector<8x512xf32>
    %306 = tpu.matmul %304, %305, %cst_116 {dimension_numbers = #tpu.dot_dimension_numbers<[1], [0], [0], [1], [0, 0, 1, 1], [], []>} : vector<8x128xbf16>, vector<128x512xbf16>, vector<8x512xf32> -> vector<8x512xf32>
    %307 = arith.addf %303, %306 : vector<8x512xf32>
    %308 = vector.extract_strided_slice %307 {offsets = [0, 0], sizes = [8, 384], strides = [1, 1]} : vector<8x512xf32> to vector<8x384xf32>
    %309 = arith.negf %308 : vector<8x384xf32>
    %310 = math.exp %309 : vector<8x384xf32>
    %cst_117 = arith.constant 1.000000e+00 : f32
    %311 = vector.broadcast %cst_117 : f32 to vector<8x384xf32>
    %312 = arith.addf %311, %310 : vector<8x384xf32>
    %313 = arith.divf %311, %312 : vector<8x384xf32>
    %314 = vector.extract_strided_slice %307 {offsets = [0, 384], sizes = [8, 128], strides = [1, 1]} : vector<8x512xf32> to vector<8x128xf32>
    %315 = math.tanh %314 : vector<8x128xf32>
    %316 = vector.extract_strided_slice %313 {offsets = [0, 0], sizes = [8, 128], strides = [1, 1]} : vector<8x384xf32> to vector<8x128xf32>
    %317 = vector.extract_strided_slice %313 {offsets = [0, 128], sizes = [8, 128], strides = [1, 1]} : vector<8x384xf32> to vector<8x128xf32>
    %318 = vector.extract_strided_slice %313 {offsets = [0, 256], sizes = [8, 128], strides = [1, 1]} : vector<8x384xf32> to vector<8x128xf32>
    %319 = arith.mulf %317, %300 : vector<8x128xf32>
    %320 = arith.mulf %316, %315 : vector<8x128xf32>
    %321 = arith.addf %319, %320 : vector<8x128xf32>
    %322 = math.tanh %321 : vector<8x128xf32>
    %323 = arith.mulf %318, %322 : vector<8x128xf32>
    %c48_118 = arith.constant 48 : index
    %c0_119 = arith.constant 0 : index
    %324 = vector.load %arg16[%c48_118, %c0_119] : memref<64x512xf32, #tpu.memory_space<vmem>>, vector<8x512xf32>
    %325 = arith.truncf %323 : vector<8x128xf32> to vector<8x128xbf16>
    %c0_120 = arith.constant 0 : index
    %c0_121 = arith.constant 0 : index
    %326 = vector.load %arg7[%c0_120, %c0_121] : memref<128x512xbf16, #tpu.memory_space<vmem>>, vector<128x512xbf16>
    %cst_122 = arith.constant dense<0.000000e+00> : vector<8x512xf32>
    %327 = tpu.matmul %325, %326, %cst_122 {dimension_numbers = #tpu.dot_dimension_numbers<[1], [0], [0], [1], [0, 0, 1, 1], [], []>} : vector<8x128xbf16>, vector<128x512xbf16>, vector<8x512xf32> -> vector<8x512xf32>
    %328 = arith.addf %324, %327 : vector<8x512xf32>
    %329 = vector.extract_strided_slice %328 {offsets = [0, 0], sizes = [8, 384], strides = [1, 1]} : vector<8x512xf32> to vector<8x384xf32>
    %330 = arith.negf %329 : vector<8x384xf32>
    %331 = math.exp %330 : vector<8x384xf32>
    %cst_123 = arith.constant 1.000000e+00 : f32
    %332 = vector.broadcast %cst_123 : f32 to vector<8x384xf32>
    %333 = arith.addf %332, %331 : vector<8x384xf32>
    %334 = arith.divf %332, %333 : vector<8x384xf32>
    %335 = vector.extract_strided_slice %328 {offsets = [0, 384], sizes = [8, 128], strides = [1, 1]} : vector<8x512xf32> to vector<8x128xf32>
    %336 = math.tanh %335 : vector<8x128xf32>
    %337 = vector.extract_strided_slice %334 {offsets = [0, 0], sizes = [8, 128], strides = [1, 1]} : vector<8x384xf32> to vector<8x128xf32>
    %338 = vector.extract_strided_slice %334 {offsets = [0, 128], sizes = [8, 128], strides = [1, 1]} : vector<8x384xf32> to vector<8x128xf32>
    %339 = vector.extract_strided_slice %334 {offsets = [0, 256], sizes = [8, 128], strides = [1, 1]} : vector<8x384xf32> to vector<8x128xf32>
    %340 = arith.mulf %338, %321 : vector<8x128xf32>
    %341 = arith.mulf %337, %336 : vector<8x128xf32>
    %342 = arith.addf %340, %341 : vector<8x128xf32>
    %343 = math.tanh %342 : vector<8x128xf32>
    %344 = arith.mulf %339, %343 : vector<8x128xf32>
    %c56_124 = arith.constant 56 : index
    %c0_125 = arith.constant 0 : index
    %345 = vector.load %arg16[%c56_124, %c0_125] : memref<64x512xf32, #tpu.memory_space<vmem>>, vector<8x512xf32>
    %346 = arith.truncf %344 : vector<8x128xf32> to vector<8x128xbf16>
    %c0_126 = arith.constant 0 : index
    %c0_127 = arith.constant 0 : index
    %347 = vector.load %arg7[%c0_126, %c0_127] : memref<128x512xbf16, #tpu.memory_space<vmem>>, vector<128x512xbf16>
    %cst_128 = arith.constant dense<0.000000e+00> : vector<8x512xf32>
    %348 = tpu.matmul %346, %347, %cst_128 {dimension_numbers = #tpu.dot_dimension_numbers<[1], [0], [0], [1], [0, 0, 1, 1], [], []>} : vector<8x128xbf16>, vector<128x512xbf16>, vector<8x512xf32> -> vector<8x512xf32>
    %349 = arith.addf %345, %348 : vector<8x512xf32>
    %350 = vector.extract_strided_slice %349 {offsets = [0, 0], sizes = [8, 384], strides = [1, 1]} : vector<8x512xf32> to vector<8x384xf32>
    %351 = arith.negf %350 : vector<8x384xf32>
    %352 = math.exp %351 : vector<8x384xf32>
    %cst_129 = arith.constant 1.000000e+00 : f32
    %353 = vector.broadcast %cst_129 : f32 to vector<8x384xf32>
    %354 = arith.addf %353, %352 : vector<8x384xf32>
    %355 = arith.divf %353, %354 : vector<8x384xf32>
    %356 = vector.extract_strided_slice %349 {offsets = [0, 384], sizes = [8, 128], strides = [1, 1]} : vector<8x512xf32> to vector<8x128xf32>
    %357 = math.tanh %356 : vector<8x128xf32>
    %358 = vector.extract_strided_slice %355 {offsets = [0, 0], sizes = [8, 128], strides = [1, 1]} : vector<8x384xf32> to vector<8x128xf32>
    %359 = vector.extract_strided_slice %355 {offsets = [0, 128], sizes = [8, 128], strides = [1, 1]} : vector<8x384xf32> to vector<8x128xf32>
    %360 = vector.extract_strided_slice %355 {offsets = [0, 256], sizes = [8, 128], strides = [1, 1]} : vector<8x384xf32> to vector<8x128xf32>
    %361 = arith.mulf %359, %342 : vector<8x128xf32>
    %362 = arith.mulf %358, %357 : vector<8x128xf32>
    %363 = arith.addf %361, %362 : vector<8x128xf32>
    %364 = math.tanh %363 : vector<8x128xf32>
    %365 = arith.mulf %360, %364 : vector<8x128xf32>
    %366 = arith.truncf %2 : vector<8x128xf32> to vector<8x128xbf16>
    %c0_130 = arith.constant 0 : index
    %c0_131 = arith.constant 0 : index
    %367 = vector.load %arg9[%c0_130, %c0_131] : memref<128x640xbf16, #tpu.memory_space<vmem>>, vector<128x640xbf16>
    %cst_132 = arith.constant dense<0.000000e+00> : vector<8x640xf32>
    %368 = tpu.matmul %366, %367, %cst_132 {dimension_numbers = #tpu.dot_dimension_numbers<[1], [0], [0], [1], [0, 0, 1, 1], [], []>} : vector<8x128xbf16>, vector<128x640xbf16>, vector<8x640xf32> -> vector<8x640xf32>
    %c0_133 = arith.constant 0 : index
    %c0_134 = arith.constant 0 : index
    %369 = vector.load %arg10[%c0_133, %c0_134] : memref<1x640xf32, #tpu.memory_space<vmem>>, vector<1x640xf32>
    %370 = vector.broadcast %369 : vector<1x640xf32> to vector<8x640xf32>
    %371 = arith.addf %368, %370 : vector<8x640xf32>
    %372 = math.tanh %371 : vector<8x640xf32>
    %373 = arith.truncf %365 : vector<8x128xf32> to vector<8x128xbf16>
    %c0_135 = arith.constant 0 : index
    %c0_136 = arith.constant 0 : index
    %374 = vector.load %arg11[%c0_135, %c0_136] : memref<128x640xbf16, #tpu.memory_space<vmem>>, vector<128x640xbf16>
    %cst_137 = arith.constant dense<0.000000e+00> : vector<8x640xf32>
    %375 = tpu.matmul %373, %374, %cst_137 {dimension_numbers = #tpu.dot_dimension_numbers<[1], [0], [0], [1], [0, 0, 1, 1], [], []>} : vector<8x128xbf16>, vector<128x640xbf16>, vector<8x640xf32> -> vector<8x640xf32>
    %c0_138 = arith.constant 0 : index
    %c0_139 = arith.constant 0 : index
    %376 = vector.load %arg12[%c0_138, %c0_139] : memref<1x640xf32, #tpu.memory_space<vmem>>, vector<1x640xf32>
    %377 = vector.broadcast %376 : vector<1x640xf32> to vector<8x640xf32>
    %378 = arith.addf %375, %377 : vector<8x640xf32>
    %379 = math.tanh %378 : vector<8x640xf32>
    %380 = arith.mulf %372, %379 : vector<8x640xf32>
    %381 = vector.extract_strided_slice %380 {offsets = [0, 0], sizes = [8, 128], strides = [1, 1]} : vector<8x640xf32> to vector<8x128xf32>
    %382 = vector.extract_strided_slice %380 {offsets = [0, 128], sizes = [8, 128], strides = [1, 1]} : vector<8x640xf32> to vector<8x128xf32>
    %383 = arith.addf %381, %382 : vector<8x128xf32>
    %384 = vector.extract_strided_slice %380 {offsets = [0, 256], sizes = [8, 128], strides = [1, 1]} : vector<8x640xf32> to vector<8x128xf32>
    %385 = arith.addf %383, %384 : vector<8x128xf32>
    %386 = vector.extract_strided_slice %380 {offsets = [0, 384], sizes = [8, 128], strides = [1, 1]} : vector<8x640xf32> to vector<8x128xf32>
    %387 = arith.addf %385, %386 : vector<8x128xf32>
    %388 = vector.extract_strided_slice %380 {offsets = [0, 512], sizes = [8, 128], strides = [1, 1]} : vector<8x640xf32> to vector<8x128xf32>
    %389 = arith.addf %387, %388 : vector<8x128xf32>
    %390 = math.tanh %389 : vector<8x128xf32>
    %cst_140 = arith.constant 0.000000e+00 : f32
    %391 = vector.broadcast %cst_140 : f32 to vector<8x128xf32>
    %392 = arith.maximumf %390, %391 : vector<8x128xf32>
    %393 = math.sqrt %392 : vector<8x128xf32>
    %cst_141 = arith.constant 0.000000e+00 : f32
    %394 = vector.broadcast %cst_141 : f32 to vector<8x128xf32>
    %395 = arith.subf %394, %390 : vector<8x128xf32>
    %cst_142 = arith.constant 0.000000e+00 : f32
    %396 = vector.broadcast %cst_142 : f32 to vector<8x128xf32>
    %397 = arith.maximumf %395, %396 : vector<8x128xf32>
    %398 = math.sqrt %397 : vector<8x128xf32>
    %399 = arith.subf %393, %398 : vector<8x128xf32>
    %400 = arith.mulf %399, %399 : vector<8x128xf32>
    %cst_143 = arith.constant dense<0.000000e+00> : vector<8xf32>
    %401 = vector.multi_reduction <add>, %400, %cst_143 [1] : vector<8x128xf32> to vector<8xf32>
    %402 = vector.shape_cast %401 : vector<8xf32> to vector<8x1xf32>
    %cst_144 = arith.constant 1.000000e-24 : f32
    %403 = vector.broadcast %cst_144 : f32 to vector<8x1xf32>
    %404 = arith.maximumf %402, %403 : vector<8x1xf32>
    %405 = math.rsqrt %404 : vector<8x1xf32>
    %406 = vector.broadcast %405 : vector<8x1xf32> to vector<8x128xf32>
    %407 = arith.mulf %399, %406 : vector<8x128xf32>
    %408 = arith.truncf %407 : vector<8x128xf32> to vector<8x128xbf16>
    %c0_145 = arith.constant 0 : index
    %c0_146 = arith.constant 0 : index
    %409 = vector.load %arg13[%c0_145, %c0_146] : memref<128x128xbf16, #tpu.memory_space<vmem>>, vector<128x128xbf16>
    %cst_147 = arith.constant dense<0.000000e+00> : vector<8x128xf32>
    %410 = tpu.matmul %408, %409, %cst_147 {dimension_numbers = #tpu.dot_dimension_numbers<[1], [0], [0], [1], [0, 0, 1, 1], [], []>} : vector<8x128xbf16>, vector<128x128xbf16>, vector<8x128xf32> -> vector<8x128xf32>
    %c0_148 = arith.constant 0 : index
    %c0_149 = arith.constant 0 : index
    %411 = vector.load %arg14[%c0_148, %c0_149] : memref<1x128xf32, #tpu.memory_space<vmem>>, vector<1x128xf32>
    %412 = vector.broadcast %411 : vector<1x128xf32> to vector<8x128xf32>
    %413 = arith.addf %410, %412 : vector<8x128xf32>
    %cst_150 = arith.constant dense<0xFF800000> : vector<8xf32>
    %414 = vector.multi_reduction <maximumf>, %413, %cst_150 [1] : vector<8x128xf32> to vector<8xf32>
    %415 = vector.shape_cast %414 : vector<8xf32> to vector<8x1xf32>
    %416 = vector.broadcast %415 : vector<8x1xf32> to vector<8x128xf32>
    %417 = arith.subf %413, %416 : vector<8x128xf32>
    %418 = math.exp %417 : vector<8x128xf32>
    %cst_151 = arith.constant dense<0.000000e+00> : vector<8xf32>
    %419 = vector.multi_reduction <add>, %418, %cst_151 [1] : vector<8x128xf32> to vector<8xf32>
    %420 = vector.shape_cast %419 : vector<8xf32> to vector<8x1xf32>
    %421 = tpu.reciprocal %420 {approx = true} : vector<8x1xf32> -> vector<8x1xf32>
    %422 = vector.broadcast %421 : vector<8x1xf32> to vector<8x128xf32>
    %423 = arith.mulf %418, %422 : vector<8x128xf32>
    %c0_152 = arith.constant 0 : index
    %c0_153 = arith.constant 0 : index
    %424 = vector.load %arg15[%c0_152, %c0_153] : memref<8x128xf32, #tpu.memory_space<vmem>>, vector<8x128xf32>
    tpu.vector_store %arg15[%c0_152, %c0_153], %423 {strides = array<i32>} : memref<8x128xf32, #tpu.memory_space<vmem>>, vector<8x128xf32>,
    return
  }
}

</mosaic_0001>

<bundles_post_ra>
// kernel: mutan_baseline_forward.1
= control target key start
LH: loop header
LB: loop body
LE: loop exit
PB: predicated region body
PF: predicated region fallthrough
CT: control target
= control target key end

     0   :  { %s8764_s0 = inlined_call_operand.vmem [shape: bf16[8,128], index: 0, kind: input, shape index: {}]   ;;  %s8765_s1 = inlined_call_operand.hbm [shape: bf16[128,128], index: 1, kind: input, shape index: {}]   ;;  %s8766_s2 = inlined_call_operand.vmem [shape: bf16[64,128], index: 2, kind: input, shape index: {}]   ;;  %s8767_s3 = inlined_call_operand.vmem [shape: bf16[128,512], index: 3, kind: input, shape index: {}]   ;;  %s8768_s4 = inlined_call_operand.hbm [shape: bf16[128,512], index: 4, kind: input, shape index: {}]   ;;  %s8769_s5 = inlined_call_operand.vmem [shape: f32[1,512], index: 5, kind: input, shape index: {}]   ;;  %s8770_s6 = inlined_call_operand.hbm [shape: bf16[128,512], index: 6, kind: input, shape index: {}]   ;;  %s8771_s7 = inlined_call_operand.hbm [shape: bf16[128,512], index: 7, kind: input, shape index: {}]   ;;  %s8772_s8 = inlined_call_operand.vmem [shape: f32[1,512], index: 8, kind: input, shape index: {}]   ;;  %s8773_s9 = inlined_call_operand.vmem [shape: bf16[128,640], index: 9, kind: input, shape index: {}]   ;;  %s8774_s10 = inlined_call_operand.vmem [shape: f32[1,640], index: 10, kind: input, shape index: {}]   ;;  %s8775_s11 = inlined_call_operand.hbm [shape: bf16[128,640], index: 11, kind: input, shape index: {}]   ;;  %s8776_s12 = inlined_call_operand.vmem [shape: f32[1,640], index: 12, kind: input, shape index: {}]   ;;  %s8777_s13 = inlined_call_operand.hbm [shape: bf16[128,128], index: 13, kind: input, shape index: {}]   ;;  %s8778_s14 = inlined_call_operand.vmem [shape: f32[1,128], index: 14, kind: input, shape index: {}]   ;;  %s8779_s15 = inlined_call_operand.vmem [shape: f32[8,128], index: 15, kind: output, shape index: {}]  }
   0x1   :  { %8793 = sst [smem:[#allocation47_spill]] %s8779_s15 }
   0x2   :  { %20 = vsyncpa [#allocation5], 0 }
   0x3   :  { %21 = vsyncpa [#allocation7], 0 }
   0x4   :  { %22 = vsyncpa [#allocation10], 0 }
   0x5   :  { %23 = vsyncpa [#allocation13], 0  ;;  %s7118_s18 = smov [#allocation6]   ;;  %s6978_s22 = scalar_lea.hbm %s8768_s4, 4096 }
   0x6   :  { %s47_s19 = sshll.u32 %s7118_s18, 4  ;;  %p6979_p0 = scmp.ne.s32.totalorder %s8768_s4, %s6978_s22  ;;  %s48_s19 = int_to_ptr.vmem [resolvable:$true] %s47_s19 }
   0x7   :  { %p6982_p1 = scmp.lt.u32.totalorder %s6978_s22, %s8768_s4 }
   0x9   :  { %p6984_p2 = pnand %p6982_p1, %p6979_p0 }
   0xb   :  { %6987 = shalt.err (!%p6984_p2)
}
   0xc   :  { %s6988_s27 = scalar_lea.vmem %s48_s19, 4096  ;;  %p6993_p4 = scmp.lt.s32.totalorder %s48_s19, %s48_s19 }
   0xd   :  { %p6989_p3 = scmp.ne.s32.totalorder %s48_s19, %s6988_s27  ;;  %p6994_p5 = scmp.lt.s32.totalorder %s6988_s27, %s6988_s27 }
   0xf   :  { %p6995_p6 = por %p6994_p5, %p6993_p4 }
  0x11   :  { %p6996_p7 = pnand %p6995_p6, %p6989_p3 }
  0x13   :  { %6999 = shalt.err (!%p6996_p7)
}
  0x14   :  { %s7119_s28 = smov 256   ;;  %s7120_s29 = smov 16  }
  0x15   :  { %53 = dma.hbm_to_vmem [thread:$0]  %s8768_s4, 4096, %s48_s19, [#allocation7], %s7119_s28, %s7119_s28, %s7120_s29  }
  0x16   :  { %s7121_s17 = smov [#allocation9]   ;;  %s7122_s20 = smov [#allocation4]  }
  0x17   :  { %s73_s18 = sshll.u32 %s7121_s17, 4  ;;  %s31_s21 = sshll.u32 %s7122_s20, 4  ;;  %s74_s18 = int_to_ptr.vmem [resolvable:$true] %s73_s18  ;;  %s32_s21 = int_to_ptr.vmem [resolvable:$true] %s31_s21 }
  0x18   :  { %s7000_s24 = scalar_lea.hbm %s8771_s7, 4096 }
  0x19   :  { %p7001_p8 = scmp.ne.s32.totalorder %s8771_s7, %s7000_s24  ;;  %p7004_p9 = scmp.lt.u32.totalorder %s7000_s24, %s8771_s7 }
  0x1b   :  { %p7006_p10 = pnand %p7004_p9, %p7001_p8 }
  0x1d   :  { %7009 = shalt.err (!%p7006_p10)
}
  0x1e   :  { %s7010_s4 = scalar_lea.vmem %s74_s18, 4096  ;;  %p7015_p12 = scmp.lt.s32.totalorder %s74_s18, %s74_s18 }
  0x1f   :  { %p7011_p11 = scmp.ne.s32.totalorder %s74_s18, %s7010_s4  ;;  %p7016_p13 = scmp.lt.s32.totalorder %s7010_s4, %s7010_s4 }
  0x21   :  { %p7017_p0 = por %p7016_p13, %p7015_p12 }
  0x23   :  { %p7018_p1 = pnand %p7017_p0, %p7011_p11 }
  0x25   :  { %7021 = shalt.err (!%p7018_p1)
}
  0x26   :  { %79 = dma.hbm_to_vmem [thread:$0]  %s8771_s7, 4096, %s74_s18, [#allocation10], %s7119_s28, %s7119_s28, %s7120_s29  }
  0x27   :  { %s7022_s17 = scalar_lea.hbm %s8765_s1, 1024 }
  0x28   :  { %p7023_p2 = scmp.ne.s32.totalorder %s8765_s1, %s7022_s17  ;;  %p7026_p3 = scmp.lt.u32.totalorder %s7022_s17, %s8765_s1 }
  0x2a   :  { %p7028_p4 = pnand %p7026_p3, %p7023_p2 }
  0x2c   :  { %7031 = shalt.err (!%p7028_p4)
}
  0x2d   :  { %s7032_s25 = scalar_lea.vmem %s32_s21, 1024  ;;  %p7037_p6 = scmp.lt.s32.totalorder %s32_s21, %s32_s21 }
  0x2e   :  { %p7033_p5 = scmp.ne.s32.totalorder %s32_s21, %s7032_s25  ;;  %p7038_p7 = scmp.lt.s32.totalorder %s7032_s25, %s7032_s25 }
  0x30   :  { %p7039_p8 = por %p7038_p7, %p7037_p6 }
  0x32   :  { %p7040_p9 = pnand %p7039_p8, %p7033_p5 }
  0x34   :  { %7043 = shalt.err (!%p7040_p9)
}
  0x35   :  { %s7123_s7 = smov 64   ;;  %s7124_s18 = smov 4  }
  0x36   :  { %37 = dma.hbm_to_vmem [thread:$0]  %s8765_s1, 1024, %s32_s21, [#allocation5], %s7123_s7, %s7123_s7, %s7124_s18  }
  0x37   :  { %s7125_s4 = smov [#allocation8]   ;;  %s7126_s30 = smov [#allocation11]  }
  0x38   :  { %s61_s19 = sshll.u32 %s7125_s4, 4  ;;  %s91_s16 = sshll.u32 %s7126_s30, 4  ;;  %s62_s19 = int_to_ptr.vmem [resolvable:$true] %s61_s19  ;;  %s92_s16 = int_to_ptr.vmem [resolvable:$true] %s91_s16 }
  0x39   :  { %s7044_s20 = scalar_lea.hbm %s8770_s6, 4096 }
  0x3a   :  { %p7045_p10 = scmp.ne.s32.totalorder %s8770_s6, %s7044_s20  ;;  %p7048_p11 = scmp.lt.u32.totalorder %s7044_s20, %s8770_s6 }
  0x3c   :  { %p7050_p12 = pnand %p7048_p11, %p7045_p10 }
  0x3e   :  { %7053 = shalt.err (!%p7050_p12)
}
  0x3f   :  { %s7054_s1 = scalar_lea.vmem %s62_s19, 4096  ;;  %p7059_p0 = scmp.lt.s32.totalorder %s62_s19, %s62_s19 }
  0x40   :  { %p7055_p13 = scmp.ne.s32.totalorder %s62_s19, %s7054_s1  ;;  %p7060_p1 = scmp.lt.s32.totalorder %s7054_s1, %s7054_s1 }
  0x42   :  { %p7061_p2 = por %p7060_p1, %p7059_p0 }
  0x44   :  { %p7062_p3 = pnand %p7061_p2, %p7055_p13 }
  0x46   :  { %7065 = shalt.err (!%p7062_p3)
}
  0x47   :  { %67 = dma.hbm_to_vmem [thread:$0]  %s8770_s6, 4096, %s62_s19, [#allocation7], %s7119_s28, %s7119_s28, %s7120_s29  }
  0x48   :  { %s7066_s30 = scalar_lea.hbm %s8775_s11, 5120 }
  0x49   :  { %p7067_p4 = scmp.ne.s32.totalorder %s8775_s11, %s7066_s30  ;;  %p7070_p5 = scmp.lt.u32.totalorder %s7066_s30, %s8775_s11 }
  0x4b   :  { %p7072_p6 = pnand %p7070_p5, %p7067_p4 }
  0x4d   :  { %7075 = shalt.err (!%p7072_p6)
}
  0x4e   :  { %s7076_s23 = scalar_lea.vmem %s92_s16, 5120  ;;  %p7081_p8 = scmp.lt.s32.totalorder %s92_s16, %s92_s16 }
  0x4f   :  { %p7077_p7 = scmp.ne.s32.totalorder %s92_s16, %s7076_s23  ;;  %p7082_p9 = scmp.lt.s32.totalorder %s7076_s23, %s7076_s23 }
  0x51   :  { %p7083_p10 = por %p7082_p9, %p7081_p8 }
  0x53   :  { %p7084_p11 = pnand %p7083_p10, %p7077_p7 }
  0x55   :  { %7087 = shalt.err (!%p7084_p11)
}
  0x56   :  { %s7127_s6 = smov 320   ;;  %s7128_s28 = smov 20  }
  0x57   :  { %97 = dma.hbm_to_vmem [thread:$0]  %s8775_s11, 5120, %s92_s16, [#allocation10], %s7127_s6, %s7127_s6, %s7128_s28  }
  0x58   :  { %s7129_s24 = smov [#allocation12]   ;;  %s7088_s26 = scalar_lea.hbm %s8777_s13, 1024 }
  0x59   :  { %s105_s25 = sshll.u32 %s7129_s24, 4  ;;  %p7089_p12 = scmp.ne.s32.totalorder %s8777_s13, %s7088_s26  ;;  %s106_s25 = int_to_ptr.vmem [resolvable:$true] %s105_s25 }
  0x5a   :  { %p7092_p13 = scmp.lt.u32.totalorder %s7088_s26, %s8777_s13 }
  0x5c   :  { %p7094_p0 = pnand %p7092_p13, %p7089_p12 }
  0x5e   :  { %7097 = shalt.err (!%p7094_p0)
}
  0x5f   :  { %s7098_s17 = scalar_lea.vmem %s106_s25, 1024  ;;  %p7103_p2 = scmp.lt.s32.totalorder %s106_s25, %s106_s25 }
  0x60   :  { %p7099_p1 = scmp.ne.s32.totalorder %s106_s25, %s7098_s17  ;;  %p7104_p3 = scmp.lt.s32.totalorder %s7098_s17, %s7098_s17 }
  0x62   :  { %p7105_p4 = por %p7104_p3, %p7103_p2 }
  0x64   :  { %p7106_p5 = pnand %p7105_p4, %p7099_p1 }
  0x66   :  { %7109 = shalt.err (!%p7106_p5)
}
  0x67   :  { %111 = dma.hbm_to_vmem [thread:$0]  %s8777_s13, 1024, %s106_s25, [#allocation13], %s7123_s7, %s7123_s7, %s7124_s18  }
  0x68   :  { %7110 = dma.done.wait [#allocation5], 1024  }
  0x69   :  { %7111 = vsyncadd [#allocation5], 4294966272 }
  0x6a   :  { %7112 = dma.done.wait [#allocation7], 8192  }
  0x6b   :  { %7113 = vsyncadd [#allocation7], 4294959104 }
  0x6c   :  { %7114 = dma.done.wait [#allocation10], 9216  }
  0x6d   :  { %7115 = vsyncadd [#allocation10], 4294958080 }
  0x6e   :  { %7116 = dma.done.wait [#allocation13], 1024  }
  0x6f   :  { %7117 = vsyncadd [#allocation13], 4294966272  ;;  %v8780_v0 = vmov 0.0   ;;  %vm7131_vm0 = vmmov 0   ;;  %v8782_v1 = vmov 0   ;;  %v6258_v2 = vld [vmem:[#allocation4] sm:$0xff]  }
  0x70   :  { %6163 = vmatprep.subr.bf16.mxu0 %v8780_v0  ;;  %6179 = vmatprep.mubr.msk.bf16.mxu0 %vm7131_vm0, %v8780_v0  ;;  %v6259_v3 = vld [vmem:[%s8767_s3 + $0x4] ss:$16 sps:$4 sm:$0xff]   ;;  %v6261_v4 = vld [vmem:[%s8767_s3] ss:$16 sps:$4 sm:$0xff]   ;;  %v6262_v5 = vld [vmem:[#allocation4 + $0x8] sm:$0xff]   ;;  %s8884_s24 = sld [smem:[#allocation47_spill]] }
  0x71   :  { %516 = vmatprep.mubr.bf16.mxu1 %v8782_v1  ;;  %6164 = vmatpush3.bf16.msra.mxu0 %v6258_v2  ;;  %v6263_v6 = vld [vmem:[%s8767_s3 + $0x24] ss:$16 sps:$4 sm:$0xff]   ;;  %v6265_v7 = vld [vmem:[%s8767_s3 + $0x20] ss:$16 sps:$4 sm:$0xff]   ;;  %v6270_v12 = vld [vmem:[#allocation4 + $0x18] sm:$0xff]  }
  0x72   :  { %484 = vmatprep.subr.bf16.mxu1 %v6259_v3  ;;  %6165 = vmatprep.subr.bf16.mxu0 %v8780_v0  ;;  %v6266_v8 = vld [vmem:[#allocation4 + $0x10] sm:$0xff]   ;;  %v6274_v15 = vld [vmem:[#allocation4 + $0x20] sm:$0xff]   ;;  %v6278_v18 = vld [vmem:[#allocation4 + $0x28] sm:$0xff]  }
  0x73   :  { %485 = vmatpush1.bf16.msra.mxu1 %v6261_v4  ;;  %v6267_v9 = vld [vmem:[%s8767_s3 + $0x44] ss:$16 sps:$4 sm:$0xff]   ;;  %v6269_v10 = vld [vmem:[%s8767_s3 + $0x40] ss:$16 sps:$4 sm:$0xff]   ;;  %v6286_v24 = vld [vmem:[#allocation4 + $0x38] sm:$0xff]  }
  0x74   :  { %486 = vmatprep.subr.bf16.mxu1 %v6263_v6  ;;  %v6271_v11 = vld [vmem:[%s8767_s3 + $0x64] ss:$16 sps:$4 sm:$0xff]   ;;  %v6273_v13 = vld [vmem:[%s8767_s3 + $0x60] ss:$16 sps:$4 sm:$0xff]   ;;  %v6292_v25 = vld [vmem:[%s8767_s3 + $0xc] ss:$16 sps:$4 sm:$0xff]  }
  0x75   :  { %6166 = vmatpush3.bf16.msra.mxu0 %v6262_v5  ;;  %v6275_v14 = vld [vmem:[%s8767_s3 + $0x84] ss:$16 sps:$4 sm:$0xff]   ;;  %v6277_v16 = vld [vmem:[%s8767_s3 + $0x80] ss:$16 sps:$4 sm:$0xff]   ;;  %v6290_v29 = vld [vmem:[%s8767_s3 + $0x8] ss:$16 sps:$4 sm:$0xff]  }
  0x76   :  { %6167 = vmatprep.subr.bf16.mxu0 %v8780_v0  ;;  %v6279_v17 = vld [vmem:[%s8767_s3 + $0xa4] ss:$16 sps:$4 sm:$0xff]   ;;  %v6281_v19 = vld [vmem:[%s8767_s3 + $0xa0] ss:$16 sps:$4 sm:$0xff]   ;;  %v6299_v31 = vld [vmem:[%s8767_s3 + $0x2c] ss:$16 sps:$4 sm:$0xff]  }
  0x77   :  { %487 = vmatpush1.bf16.msra.mxu1 %v6265_v7  ;;  %v6283_v20 = vld [vmem:[%s8767_s3 + $0xc4] ss:$16 sps:$4 sm:$0xff]   ;;  %v6285_v22 = vld [vmem:[%s8767_s3 + $0xc0] ss:$16 sps:$4 sm:$0xff]   ;;  %v6297_v34 = vld [vmem:[%s8767_s3 + $0x28] ss:$16 sps:$4 sm:$0xff]  }
  0x78   :  { %488 = vmatprep.subr.bf16.mxu1 %v6267_v9  ;;  %v6282_v21 = vld [vmem:[#allocation4 + $0x30] sm:$0xff]   ;;  %v133_v27 = vld [vmem:[%s8764_s0] sm:$0xf]  ;;  %v6305_v35 = vld [vmem:[%s8767_s3 + $0x4c] ss:$16 sps:$4 sm:$0xff]  }
  0x79   :  { %6168 = vmatpush3.bf16.msra.mxu0 %v6266_v8  ;;  %v6287_v23 = vld [vmem:[%s8767_s3 + $0xe4] ss:$16 sps:$4 sm:$0xff]   ;;  %v6289_v26 = vld [vmem:[%s8767_s3 + $0xe0] ss:$16 sps:$4 sm:$0xff]   ;;  %v6303_v37 = vld [vmem:[%s8767_s3 + $0x48] ss:$16 sps:$4 sm:$0xff]  }
  0x7a   :  { %6169 = vmatprep.subr.bf16.mxu0 %v8780_v0  ;;  %v7365_v28 = vld [vmem:[#allocation6 + $0x4] ss:$16 sps:$4 sm:$0xff]   ;;  %v7378_v32 = vld [vmem:[#allocation6] ss:$16 sps:$4 sm:$0xff]   ;;  %v7404_v39 = vld [vmem:[%s8766_s2 + $0x8] sm:$0xff]  }
  0x7b   :  { %489 = vmatpush1.bf16.msra.mxu1 %v6269_v10  ;;  %v7373_v30 = vld [vmem:[%s8766_s2] sm:$0xff]   ;;  %v6312_v40 = vld [vmem:[%s8767_s3 + $0x6c] ss:$16 sps:$4 sm:$0xff]   ;;  %v6310_v43 = vld [vmem:[%s8767_s3 + $0x68] ss:$16 sps:$4 sm:$0xff]  }
  0x7c   :  { %490 = vmatprep.subr.bf16.mxu1 %v6271_v11  ;;  %v7381_v33 = vld [vmem:[#allocation6 + $0x24] ss:$16 sps:$4 sm:$0xff]   ;;  %v7392_v36 = vld [vmem:[#allocation6 + $0x20] ss:$16 sps:$4 sm:$0xff]   ;;  %v6318_v44 = vld [vmem:[%s8767_s3 + $0x8c] ss:$16 sps:$4 sm:$0xff]  }
  0x7d   :  { %6170 = vmatpush3.bf16.msra.mxu0 %v6270_v12  ;;  %v7399_v38 = vld [vmem:[#allocation6 + $0x44] ss:$16 sps:$4 sm:$0xff]   ;;  %v7410_v41 = vld [vmem:[#allocation6 + $0x40] ss:$16 sps:$4 sm:$0xff]   ;;  %v6316_v47 = vld [vmem:[%s8767_s3 + $0x88] ss:$16 sps:$4 sm:$0xff]  }
  0x7e   :  { %6171 = vmatprep.subr.bf16.mxu0 %v8780_v0  ;;  %v7413_v42 = vld [vmem:[#allocation6 + $0x64] ss:$16 sps:$4 sm:$0xff]   ;;  %v7423_v45 = vld [vmem:[#allocation6 + $0x60] ss:$16 sps:$4 sm:$0xff]   ;;  %v6325_v49 = vld [vmem:[%s8767_s3 + $0xac] ss:$16 sps:$4 sm:$0xff]  }
  0x7f   :  { %491 = vmatpush1.bf16.msra.mxu1 %v6273_v13  ;;  %v7427_v46 = vld [vmem:[#allocation6 + $0x84] ss:$16 sps:$4 sm:$0xff]   ;;  %v7441_v50 = vld [vmem:[#allocation6 + $0x80] ss:$16 sps:$4 sm:$0xff]   ;;  %v6323_v52 = vld [vmem:[%s8767_s3 + $0xa8] ss:$16 sps:$4 sm:$0xff]  }
  0x80   :  { %492 = vmatprep.subr.bf16.mxu1 %v6275_v14  ;;  %v7435_v48 = vld [vmem:[%s8766_s2 + $0x10] sm:$0xff]   ;;  %v6331_v54 = vld [vmem:[%s8767_s3 + $0xcc] ss:$16 sps:$4 sm:$0xff]   ;;  %v6329_v55 = vld [vmem:[%s8767_s3 + $0xc8] ss:$16 sps:$4 sm:$0xff]  }
  0x81   :  { %6172 = vmatpush3.bf16.msra.mxu0 %v6274_v15  ;;  %v7444_v51 = vld [vmem:[#allocation6 + $0xa4] ss:$16 sps:$4 sm:$0xff]   ;;  %v7449_v53 = vld [vmem:[#allocation6 + $0xa0] ss:$16 sps:$4 sm:$0xff]   ;;  %v7464_v56 = vld [vmem:[%s8766_s2 + $0x18] sm:$0xff]  }
  0x82   :  { %6173 = vmatprep.subr.bf16.mxu0 %v8780_v0  ;;  %v7466_v57 = vld [vmem:[#allocation6 + $0xc4] ss:$16 sps:$4 sm:$0xff]   ;;  %v7468_v58 = vld [vmem:[#allocation6 + $0xc0] ss:$16 sps:$4 sm:$0xff]   ;;  %v6338_v59 = vld [vmem:[%s8767_s3 + $0xec] ss:$16 sps:$4 sm:$0xff]  }
  0x83   :  { %493 = vmatpush1.bf16.msra.mxu1 %v6277_v16  ;;  %v7473_v60 = vld [vmem:[#allocation6 + $0xe4] ss:$16 sps:$4 sm:$0xff]   ;;  %v6336_v61 = vld [vmem:[%s8767_s3 + $0xe8] ss:$16 sps:$4 sm:$0xff]   ;;  %v7480_v62 = vld [vmem:[#allocation6 + $0xc] ss:$16 sps:$4 sm:$0xff]  }
  0x84   :  { %494 = vmatprep.subr.bf16.mxu1 %v6279_v17  ;;  %v7482_v63 = vld [vmem:[#allocation6 + $0xe0] ss:$16 sps:$4 sm:$0xff]   ;;  %v7487_v2 = vld [vmem:[#allocation6 + $0x8] ss:$16 sps:$4 sm:$0xff]   ;;  %v7490_v3 = vld [vmem:[#allocation6 + $0x2c] ss:$16 sps:$4 sm:$0xff]   ;;  %v280_v17 = vlaneseq }
  0x85   :  { %6174 = vmatpush3.bf16.msra.mxu0 %v6278_v18  ;;  %v7494_v4 = vld [vmem:[#allocation6 + $0x28] ss:$16 sps:$4 sm:$0xff]   ;;  %v7497_v5 = vld [vmem:[#allocation6 + $0x4c] ss:$16 sps:$4 sm:$0xff]  }
  0x86   :  { %6175 = vmatprep.subr.bf16.mxu0 %v8780_v0  ;;  %v7504_v6 = vld [vmem:[#allocation6 + $0x48] ss:$16 sps:$4 sm:$0xff]   ;;  %v7508_v7 = vld [vmem:[#allocation6 + $0x6c] ss:$16 sps:$4 sm:$0xff]   ;;  %v7581_v18 = vshrl.u32 %v280_v17, 7 }
  0x87   :  { %495 = vmatpush1.bf16.msra.mxu1 %v6281_v19  ;;  %v7513_v8 = vld [vmem:[#allocation6 + $0x68] ss:$16 sps:$4 sm:$0xff]   ;;  %v7517_v9 = vld [vmem:[#allocation6 + $0x8c] ss:$16 sps:$4 sm:$0xff]  }
  0x88   :  { %496 = vmatprep.subr.bf16.mxu1 %v6283_v20  ;;  %v7523_v10 = vld [vmem:[#allocation6 + $0x88] ss:$16 sps:$4 sm:$0xff]   ;;  %v7526_v11 = vld [vmem:[#allocation6 + $0xac] ss:$16 sps:$4 sm:$0xff]   ;;  %8794 = vst [vmem:[#allocation18_spill] sm:$0xff] %v7581_v18  ;;  %v7584_v19 = vsub.s32 0, %v7581_v18 }
  0x89   :  { %6176 = vmatpush3.bf16.msra.mxu0 %v6282_v21  ;;  %v7531_v12 = vld [vmem:[#allocation6 + $0xa8] ss:$16 sps:$4 sm:$0xff]   ;;  %v7535_v13 = vld [vmem:[#allocation6 + $0xcc] ss:$16 sps:$4 sm:$0xff]   ;;  %v238_v20 = vld [vmem:[%s8769_s5] sm:$0xf] }
  0x8a   :  { %6177 = vmatprep.subr.bf16.mxu0 %v8780_v0  ;;  %v7541_v14 = vld [vmem:[#allocation6 + $0xc8] ss:$16 sps:$4 sm:$0xff]   ;;  %v7544_v15 = vld [vmem:[#allocation6 + $0xec] ss:$16 sps:$4 sm:$0xff]   ;;  %8795 = vst [vmem:[#allocation19_spill] sm:$0xff] %v7584_v19  ;;  %v7590_v21 = vsub.s32 1, %v7581_v18 }
  0x8b   :  { %497 = vmatpush1.bf16.msra.mxu1 %v6285_v22  ;;  %v7549_v16 = vld [vmem:[#allocation6 + $0xe8] ss:$16 sps:$4 sm:$0xff]  }
  0x8c   :  { %498 = vmatprep.subr.bf16.mxu1 %v6287_v23  ;;  %8796 = vst [vmem:[#allocation20_spill] sm:$0xff] %v7590_v21 }
  0x8d   :  { %6178 = vmatpush3.bf16.msra.mxu0 %v6286_v24  ;;  %v283_v24 = vrot.slane %v238_v20, %v7584_v19 }
  0x8e   :  { %557 = vmatprep.subr.bf16.mxu0 %v6292_v25 }
  0x8f   :  { %499 = vmatpush1.bf16.msra.mxu1 %v6289_v26 }
  0x90   :  { %6180 = vmatmul.mubr.bf16.vlgmr.msra.gmra.mrb[0].mxu0 %v133_v27  ;;  %858 = vmatprep.subr.bf16.mxu1 %v7365_v28  ;;  %v287_v27 = vrot.slane %v238_v20, %v7590_v21 }
  0x91   :  { %558 = vmatpush1.bf16.msra.mxu0 %v6290_v29  ;;  %589 = vmatprep.mubr.bf16.mxu0 %v8782_v1 }
  0x92   :  { %517 = vmatmul.mubr.bf16.vlgmr.msra.gmra.mrb[0].mxu1 %v7373_v30  ;;  %559 = vmatprep.subr.bf16.mxu0 %v6299_v31 }
  0x93   :  { %859 = vmatpush1.bf16.msra.mxu1 %v7378_v32  ;;  %526 = vmatprep.mubr.bf16.mxu1 %v8782_v1 }
  0x94   :  { %860 = vmatprep.subr.bf16.mxu1 %v7381_v33 }
  0x95   :  { %560 = vmatpush1.bf16.msra.mxu0 %v6297_v34 }
  0x96   :  { %561 = vmatprep.subr.bf16.mxu0 %v6305_v35 }
  0x97   :  { %861 = vmatpush1.bf16.msra.mxu1 %v7392_v36 }
  0x98   :  { %862 = vmatprep.subr.bf16.mxu1 %v7399_v38 }
  0x99   :  { %562 = vmatpush1.bf16.msra.mxu0 %v6303_v37 }
  0x9a   :  { %527 = vmatmul.mubr.bf16.gmra.mrb[4].mxu1 %v7404_v39  ;;  %563 = vmatprep.subr.bf16.mxu0 %v6312_v40 }
  0x9b   :  { %863 = vmatpush1.bf16.msra.mxu1 %v7410_v41  ;;  %536 = vmatprep.mubr.bf16.mxu1 %v8782_v1 }
  0x9c   :  { %864 = vmatprep.subr.bf16.mxu1 %v7413_v42 }
  0x9d   :  { %564 = vmatpush1.bf16.msra.mxu0 %v6310_v43 }
  0x9e   :  { %565 = vmatprep.subr.bf16.mxu0 %v6318_v44 }
  0x9f   :  { %865 = vmatpush1.bf16.msra.mxu1 %v7423_v45 }
  0xa0   :  { %866 = vmatprep.subr.bf16.mxu1 %v7427_v46 }
  0xa1   :  { %566 = vmatpush1.bf16.msra.mxu0 %v6316_v47 }
  0xa2   :  { %537 = vmatmul.mubr.bf16.gmra.mrb[8].mxu1 %v7435_v48  ;;  %567 = vmatprep.subr.bf16.mxu0 %v6325_v49 }
  0xa3   :  { %867 = vmatpush1.bf16.msra.mxu1 %v7441_v50  ;;  %546 = vmatprep.mubr.bf16.mxu1 %v8782_v1 }
  0xa4   :  { %868 = vmatprep.subr.bf16.mxu1 %v7444_v51 }
  0xa5   :  { %568 = vmatpush1.bf16.msra.mxu0 %v6323_v52 }
  0xa6   :  { %569 = vmatprep.subr.bf16.mxu0 %v6331_v54 }
  0xa7   :  { %869 = vmatpush1.bf16.msra.mxu1 %v7449_v53 }
  0xa8   :  { %870 = vmatprep.subr.bf16.mxu1 %v7466_v57 }
  0xa9   :  { %570 = vmatpush1.bf16.msra.mxu0 %v6329_v55 }
  0xaa   :  { %547 = vmatmul.mubr.bf16.gmra.mrb[12].mxu1 %v7464_v56  ;;  %571 = vmatprep.subr.bf16.mxu0 %v6338_v59 }
  0xab   :  { %871 = vmatpush1.bf16.msra.mxu1 %v7468_v58  ;;  %890 = vmatprep.mubr.bf16.mxu1 %v8782_v1 }
  0xac   :  { %872 = vmatprep.subr.bf16.mxu1 %v7473_v60 }
  0xad   :  { %572 = vmatpush1.bf16.msra.mxu0 %v6336_v61 }
  0xae   :  { %899 = vmatprep.subr.bf16.mxu0 %v7480_v62 }
  0xaf   :  { %873 = vmatpush1.bf16.msra.mxu1 %v7482_v63 }
  0xb0   :  { %590 = vmatmul.mubr.bf16.vlgmr.msra.gmra.mrb[4].mxu0 %v7373_v30  ;;  %1166 = vmatprep.subr.bf16.mxu1 %v7365_v28 }
  0xb1   :  { %900 = vmatpush1.bf16.msra.mxu0 %v7487_v2  ;;  %599 = vmatprep.mubr.bf16.mxu0 %v8782_v1 }
  0xb2   :  { %891 = vmatmul.mubr.bf16.vlgmr.msra.gmra.mrb[16].mxu1 %v8782_v1  ;;  %901 = vmatprep.subr.bf16.mxu0 %v7490_v3 }
  0xb3   :  { %1167 = vmatpush1.bf16.msra.mxu1 %v7378_v32  ;;  %1198 = vmatprep.mubr.bf16.mxu1 %v8782_v1 }
  0xb4   :  { %1168 = vmatprep.subr.bf16.mxu1 %v7381_v33 }
  0xb5   :  { %902 = vmatpush1.bf16.msra.mxu0 %v7494_v4 }
  0xb6   :  { %903 = vmatprep.subr.bf16.mxu0 %v7497_v5 }
  0xb7   :  { %1169 = vmatpush1.bf16.msra.mxu1 %v7392_v36 }
  0xb8   :  { %600 = vmatmul.mubr.bf16.gmra.mrb[8].mxu0 %v7404_v39  ;;  %1170 = vmatprep.subr.bf16.mxu1 %v7399_v38 }
  0xb9   :  { %904 = vmatpush1.bf16.msra.mxu0 %v7504_v6  ;;  %609 = vmatprep.mubr.bf16.mxu0 %v8782_v1 }
  0xba   :  { %905 = vmatprep.subr.bf16.mxu0 %v7508_v7 }
  0xbb   :  { %1171 = vmatpush1.bf16.msra.mxu1 %v7410_v41 }
  0xbc   :  { %1172 = vmatprep.subr.bf16.mxu1 %v7413_v42 }
  0xbd   :  { %906 = vmatpush1.bf16.msra.mxu0 %v7513_v8 }
  0xbe   :  { %907 = vmatprep.subr.bf16.mxu0 %v7517_v9 }
  0xbf   :  { %1173 = vmatpush1.bf16.msra.mxu1 %v7423_v45 }
  0xc0   :  { %610 = vmatmul.mubr.bf16.gmra.mrb[12].mxu0 %v7435_v48  ;;  %1174 = vmatprep.subr.bf16.mxu1 %v7427_v46 }
  0xc1   :  { %908 = vmatpush1.bf16.msra.mxu0 %v7523_v10  ;;  %619 = vmatprep.mubr.bf16.mxu0 %v8782_v1 }
  0xc2   :  { %909 = vmatprep.subr.bf16.mxu0 %v7526_v11 }
  0xc3   :  { %1175 = vmatpush1.bf16.msra.mxu1 %v7441_v50 }
  0xc4   :  { %1176 = vmatprep.subr.bf16.mxu1 %v7444_v51 }
  0xc5   :  { %910 = vmatpush1.bf16.msra.mxu0 %v7531_v12 }
  0xc6   :  { %911 = vmatprep.subr.bf16.mxu0 %v7535_v13 }
  0xc7   :  { %1177 = vmatpush1.bf16.msra.mxu1 %v7449_v53 }
  0xc8   :  { %620 = vmatmul.mubr.bf16.gmra.mrb[16].mxu0 %v7464_v56  ;;  %1178 = vmatprep.subr.bf16.mxu1 %v7466_v57 }
  0xc9   :  { %912 = vmatpush1.bf16.msra.mxu0 %v7541_v14  ;;  %931 = vmatprep.mubr.bf16.mxu0 %v8782_v1 }
  0xca   :  { %913 = vmatprep.subr.bf16.mxu0 %v7544_v15 }
  0xcb   :  { %1179 = vmatpush1.bf16.msra.mxu1 %v7468_v58 }
  0xcc   :  { %1180 = vmatprep.subr.bf16.mxu1 %v7473_v60 }
  0xcd   :  { %914 = vmatpush1.bf16.msra.mxu0 %v7549_v16 }
  0xce   :  { %1207 = vmatprep.subr.bf16.mxu0 %v7480_v62 }
  0xcf   :  { %1181 = vmatpush1.bf16.msra.mxu1 %v7482_v63 }
  0xd0   :  { %932 = vmatmul.mubr.bf16.vlgmr.msra.gmra.mrb[20].mxu0 %v8782_v1  ;;  %1474 = vmatprep.subr.bf16.mxu1 %v7365_v28 }
  0xd1   :  { %1208 = vmatpush1.bf16.msra.mxu0 %v7487_v2  ;;  %1239 = vmatprep.mubr.bf16.mxu0 %v8782_v1 }
  0xd2   :  { %1209 = vmatprep.subr.bf16.mxu0 %v7490_v3 }
  0xd5   :  { %1210 = vmatpush1.bf16.msra.mxu0 %v7494_v4 }
  0xd6   :  { %1211 = vmatprep.subr.bf16.mxu0 %v7497_v5 }
  0xd9   :  { %1212 = vmatpush1.bf16.msra.mxu0 %v7504_v6 }
  0xda   :  { %1213 = vmatprep.subr.bf16.mxu0 %v7508_v7 }
  0xdd   :  { %1214 = vmatpush1.bf16.msra.mxu0 %v7513_v8 }
  0xde   :  { %1215 = vmatprep.subr.bf16.mxu0 %v7517_v9 }
  0xe1   :  { %1216 = vmatpush1.bf16.msra.mxu0 %v7523_v10 }
  0xe2   :  { %1217 = vmatprep.subr.bf16.mxu0 %v7526_v11 }
  0xe5   :  { %1218 = vmatpush1.bf16.msra.mxu0 %v7531_v12 }
  0xe6   :  { %1219 = vmatprep.subr.bf16.mxu0 %v7535_v13 }
  0xe9   :  { %1220 = vmatpush1.bf16.msra.mxu0 %v7541_v14 }
  0xea   :  { %1221 = vmatprep.subr.bf16.mxu0 %v7544_v15 }
  0xed   :  { %1222 = vmatpush1.bf16.msra.mxu0 %v7549_v16 }
  0xee   :  { %1515 = vmatprep.subr.bf16.mxu0 %v7480_v62 }
 0x163   :  { %v7592_v22 = vpop.f32.mrb[0].mxu0 }
 0x164   :  { %8797 = vst [vmem:[#allocation21_spill] sm:$0xff] %v7592_v22  ;;  %v6181_v23 = vpop.f32.mrb[1].mxu0 }
 0x165   :  { %v235_v25 = vpop.f32.mrb[2].mxu0  ;;  %v518_v26 = vpop.f32.mrb[0].mxu1 }
 0x166   :  { %v6182_v28 = vpop.f32.mrb[3].mxu0  ;;  %v520_v29 = vpop.f32.mrb[1].mxu1 }
 0x167   :  { %v522_v30 = vpop.f32.mrb[2].mxu1 }
 0x168   :  { %v7596_v31 = vadd.f32 %v522_v30, %v283_v24  ;;  %v524_v32 = vpop.f32.mrb[3].mxu1 }
 0x169   :  { %v7598_v33 = vadd.f32 %v524_v32, %v287_v27  ;;  %v7623_v32 = vsub.s32 2, %v7581_v18 }
 0x16b   :  { %8803 = vst [vmem:[#allocation27_spill] sm:$0xff] %v7623_v32 }
 0x16d   :  { %v528_v34 = vpop.f32.mrb[4].mxu1 }
 0x16e   :  { %v7600_v35 = vadd.f32 %v528_v34, %v283_v24  ;;  %v530_v36 = vpop.f32.mrb[5].mxu1 }
 0x16f   :  { %v7602_v37 = vadd.f32 %v530_v36, %v287_v27  ;;  %v532_v38 = vpop.f32.mrb[6].mxu1  ;;  %v7628_v36 = vsub.s32 3, %v7581_v18 }
 0x170   :  { %v7604_v39 = vadd.f32 %v532_v38, %v283_v24  ;;  %v534_v40 = vpop.f32.mrb[7].mxu1 }
 0x171   :  { %v7606_v43 = vadd.f32 %v534_v40, %v287_v27  ;;  %8805 = vst [vmem:[#allocation29_spill] sm:$0xff] %v7628_v36  ;;  %v519_v40 = vadd.f32 %v518_v26, %v283_v24 }
 0x175   :  { %v538_v44 = vpop.f32.mrb[8].mxu1 }
 0x176   :  { %v7608_v47 = vadd.f32 %v538_v44, %v283_v24  ;;  %v540_v48 = vpop.f32.mrb[9].mxu1  ;;  %v291_v44 = vrot.slane %v238_v20, %v7623_v32 }
 0x177   :  { %v7610_v49 = vadd.f32 %v540_v48, %v287_v27  ;;  %v542_v52 = vpop.f32.mrb[10].mxu1 }
 0x178   :  { %v7612_v54 = vadd.f32 %v542_v52, %v283_v24  ;;  %v544_v55 = vpop.f32.mrb[11].mxu1  ;;  %v521_v52 = vadd.f32 %v520_v29, %v287_v27 }
 0x179   :  { %v7614_v56 = vadd.f32 %v544_v55, %v287_v27  ;;  %v295_v55 = vrot.slane %v238_v20, %v7628_v36 }
 0x17a   :  { %8798 = vst [vmem:[#allocation22_spill] sm:$0xff] %v7612_v54 }
 0x17b   :  { %8799 = vst [vmem:[#allocation23_spill] sm:$0xff] %v7614_v56 }
 0x17d   :  { %v548_v59 = vpop.f32.mrb[12].mxu1 }
 0x17e   :  { %v7616_v61 = vadd.f32 %v548_v59, %v283_v24  ;;  %v550_v17 = vpop.f32.mrb[13].mxu1 }
 0x17f   :  { %v7618_v23 = vadd.f32 %v550_v17, %v287_v27  ;;  %v552_v25 = vpop.f32.mrb[14].mxu1 }
 0x180   :  { %8800 = vst [vmem:[#allocation24_spill] sm:$0xff] %v7616_v61  ;;  %v7620_v28 = vadd.f32 %v552_v25, %v283_v24  ;;  %v554_v30 = vpop.f32.mrb[15].mxu1 }
 0x181   :  { %8801 = vst [vmem:[#allocation25_spill] sm:$0xff] %v7618_v23  ;;  %v7625_v34 = vadd.f32 %v554_v30, %v287_v27 }
 0x182   :  { %8802 = vst [vmem:[#allocation26_spill] sm:$0xff] %v7620_v28 }
 0x183   :  { %8804 = vst [vmem:[#allocation28_spill] sm:$0xff] %v7625_v34  ;;  %v591_v38 = vpop.f32.mrb[4].mxu0 }
 0x184   :  { %v593_v48 = vpop.f32.mrb[5].mxu0 }
 0x185   :  { %v892_v59 = vpop.f32.mrb[16].mxu1  ;;  %v595_v17 = vpop.f32.mrb[6].mxu0 }
 0x186   :  { %v940_v25 = vadd.f32 %v892_v59, %v519_v40  ;;  %v7632_v0 = vadd.f32 %v595_v17, %v291_v44  ;;  %v894_v1 = vpop.f32.mrb[17].mxu1  ;;  %v597_v22 = vpop.f32.mrb[7].mxu0 }
 0x187   :  { %v941_v30 = vadd.f32 %v894_v1, %v521_v52  ;;  %v7634_v21 = vadd.f32 %v597_v22, %v295_v55  ;;  %v896_v18 = vpop.f32.mrb[18].mxu1 }
 0x188   :  { %v897_v19 = vpop.f32.mrb[19].mxu1  ;;  %v5702_v17 = vmul.f32 -1.442695, %v940_v25 }
 0x189   :  { %v5703_v59 = vmul.f32 -1.442695, %v941_v30 }
 0x18b   :  { %v601_v34 = vpop.f32.mrb[8].mxu0  ;;  %6654 = vpow2.f32 %v5703_v59 }
 0x18c   :  { %v7636_v24 = vadd.f32 %v601_v34, %v291_v44  ;;  %v603_v26 = vpop.f32.mrb[9].mxu0  ;;  %6656 = vpow2.f32 %v5702_v17 }
 0x18d   :  { %v7638_v32 = vadd.f32 %v603_v26, %v295_v55  ;;  %v605_v27 = vpop.f32.mrb[10].mxu0 }
 0x18e   :  { %v7640_v20 = vadd.f32 %v605_v27, %v291_v44  ;;  %v607_v29 = vpop.f32.mrb[11].mxu0 }
 0x18f   :  { %v7642_v40 = vadd.f32 %v607_v29, %v295_v55 }
 0x193   :  { %v611_v36 = vpop.f32.mrb[12].mxu0 }
 0x194   :  { %v7644_v1 = vadd.f32 %v611_v36, %v291_v44  ;;  %v613_v18 = vpop.f32.mrb[13].mxu0 }
 0x195   :  { %v7646_v19 = vadd.f32 %v613_v18, %v295_v55  ;;  %v615_v22 = vpop.f32.mrb[14].mxu0  ;;  %v6655_v59 = vpop.eup %6654 }
 0x196   :  { %v7648_v34 = vadd.f32 %v615_v22, %v291_v44  ;;  %v617_v52 = vpop.f32.mrb[15].mxu0  ;;  %v6657_v17 = vpop.eup %6656  ;;  %v954_v61 = vadd.f32 1.0, %v6655_v59  ;;  %v592_v22 = vadd.f32 %v591_v38, %v291_v44 }
 0x197   :  { %8806 = vst [vmem:[#allocation30_spill] sm:$0xff] %v7646_v19  ;;  %v7650_v26 = vadd.f32 %v617_v52, %v295_v55  ;;  %v953_v56 = vadd.f32 1.0, %v6657_v17 }
 0x198   :  { %8807 = vst [vmem:[#allocation31_spill] sm:$0xff] %v7648_v34  ;;  %v594_v34 = vadd.f32 %v593_v48, %v295_v55  ;;  %6658 = vrcp.f32 %v954_v61  ;;  %v6942_v48 = vld [vmem:[#allocation6] ss:$16 sps:$4 sm:$0xff]  }
 0x199   :  { %8808 = vst [vmem:[#allocation32_spill] sm:$0xff] %v7650_v26  ;;  %6660 = vrcp.f32 %v953_v56 }
 0x19b   :  { %v621_v27 = vpop.f32.mrb[16].mxu0 }
 0x19c   :  { %v7652_v28 = vadd.f32 %v621_v27, %v291_v44  ;;  %v623_v29 = vpop.f32.mrb[17].mxu0 }
 0x19d   :  { %v7654_v30 = vadd.f32 %v623_v29, %v295_v55  ;;  %v625_v25 = vpop.f32.mrb[18].mxu0 }
 0x19e   :  { %8809 = vst [vmem:[#allocation33_spill] sm:$0xff] %v7652_v28  ;;  %v7656_v36 = vadd.f32 %v625_v25, %v291_v44  ;;  %v627_v23 = vpop.f32.mrb[19].mxu0 }
 0x19f   :  { %8810 = vst [vmem:[#allocation34_spill] sm:$0xff] %v7654_v30  ;;  %v7658_v18 = vadd.f32 %v627_v23, %v295_v55  ;;  %v6943_v55 = vld [vmem:[#allocation6 + $0x24] ss:$16 sps:$4 sm:$0xff]  }
 0x1a0   :  { %8811 = vst [vmem:[#allocation35_spill] sm:$0xff] %v7656_v36 }
 0x1a1   :  { %8812 = vst [vmem:[#allocation36_spill] sm:$0xff] %v7658_v18 }
 0x1a2   :  { %v6659_v25 = vpop.eup %6658 }
 0x1a3   :  { %v933_v52 = vpop.f32.mrb[20].mxu0  ;;  %v6661_v36 = vpop.eup %6660  ;;  %v963_v18 = vmul.f32 0.0, %v6659_v25 }
 0x1a4   :  { %v942_v26 = vadd.f32 %v933_v52, %v592_v22  ;;  %v935_v54 = vpop.f32.mrb[21].mxu0 }
 0x1a5   :  { %v943_v27 = vadd.f32 %v935_v54, %v594_v34  ;;  %v937_v28 = vpop.f32.mrb[22].mxu0  ;;  %v6944_v34 = vld [vmem:[#allocation6 + $0x20] ss:$16 sps:$4 sm:$0xff]  }
 0x1a6   :  { %v5704_v29 = vmul.f32 -1.442695, %v942_v26  ;;  %v938_v30 = vpop.f32.mrb[23].mxu0  ;;  %v6945_v26 = vld [vmem:[#allocation6 + $0x44] ss:$16 sps:$4 sm:$0xff]  }
 0x1a7   :  { %6662 = vtanh.f32 %v943_v27 }
 0x1a8   :  { %6664 = vpow2.f32 %v5704_v29 }
 0x1b1   :  { %v6663_v19 = vpop.eup %6662 }
 0x1b2   :  { %v6665_v23 = vpop.eup %6664  ;;  %v964_v59 = vmul.f32 %v6663_v19, %v6661_v36  ;;  %v8813_v19 = vmov 0  }
 0x1b3   :  { %v955_v38 = vadd.f32 1.0, %v6665_v23 }
 0x1b4   :  { %v7660_v44 = vadd.f32 %v964_v59, %v963_v18 }
 0x1b5   :  { %6666 = vrcp.f32 %v955_v38 }
 0x1b6   :  { %6668 = vtanh.f32 %v7660_v44 }
 0x1bf   :  { %v6667_v61 = vpop.eup %6666 }
 0x1c0   :  { %v6669_v54 = vpop.eup %6668 }
 0x1c1   :  { %v7663_v28 = vmul.f32 %v6669_v54, %v6667_v61 }
 0x1c3   :  { %v973_v56 = vpack.c.bf16 %v7663_v28, %v7663_v28 }
 0x1c5   :  { %1199 = vmatmul.mubr.bf16.vlgmr.msra.gmra.mrb[20].mxu1 %v973_v56  ;;  %1240 = vmatmul.mubr.bf16.vlgmr.msra.gmra.mrb[24].mxu0 %v973_v56 }
 0x1c6   :  { %1475 = vmatpush1.bf16.msra.mxu1 %v6942_v48  ;;  %1516 = vmatpush1.bf16.msra.mxu0 %v7487_v2 }
 0x1c7   :  { %1476 = vmatprep.subr.bf16.mxu1 %v6943_v55  ;;  %1517 = vmatprep.subr.bf16.mxu0 %v7490_v3 }
 0x1c8   :  { %1506 = vmatprep.mubr.bf16.mxu1 %v8813_v19  ;;  %1547 = vmatprep.mubr.bf16.mxu0 %v8813_v19 }
 0x1ca   :  { %1477 = vmatpush1.bf16.msra.mxu1 %v6944_v34  ;;  %1518 = vmatpush1.bf16.msra.mxu0 %v7494_v4 }
 0x1cb   :  { %1478 = vmatprep.subr.bf16.mxu1 %v6945_v26  ;;  %1519 = vmatprep.subr.bf16.mxu0 %v7497_v5 }
 0x1ce   :  { %1479 = vmatpush1.bf16.msra.mxu1 %v7410_v41  ;;  %1520 = vmatpush1.bf16.msra.mxu0 %v7504_v6 }
 0x1cf   :  { %1480 = vmatprep.subr.bf16.mxu1 %v7413_v42  ;;  %1521 = vmatprep.subr.bf16.mxu0 %v7508_v7 }
 0x1d2   :  { %1481 = vmatpush1.bf16.msra.mxu1 %v7423_v45  ;;  %1522 = vmatpush1.bf16.msra.mxu0 %v7513_v8 }
 0x1d3   :  { %1482 = vmatprep.subr.bf16.mxu1 %v7427_v46  ;;  %1523 = vmatprep.subr.bf16.mxu0 %v7517_v9 }
 0x1d6   :  { %1483 = vmatpush1.bf16.msra.mxu1 %v7441_v50  ;;  %1524 = vmatpush1.bf16.msra.mxu0 %v7523_v10 }
 0x1d7   :  { %1484 = vmatprep.subr.bf16.mxu1 %v7444_v51  ;;  %1525 = vmatprep.subr.bf16.mxu0 %v7526_v11 }
 0x1da   :  { %1485 = vmatpush1.bf16.msra.mxu1 %v7449_v53  ;;  %1526 = vmatpush1.bf16.msra.mxu0 %v7531_v12 }
 0x1db   :  { %1486 = vmatprep.subr.bf16.mxu1 %v7466_v57  ;;  %1527 = vmatprep.subr.bf16.mxu0 %v7535_v13 }
 0x1de   :  { %1487 = vmatpush1.bf16.msra.mxu1 %v7468_v58  ;;  %1528 = vmatpush1.bf16.msra.mxu0 %v7541_v14 }
 0x1df   :  { %1488 = vmatprep.subr.bf16.mxu1 %v7473_v60  ;;  %1529 = vmatprep.subr.bf16.mxu0 %v7544_v15 }
 0x1e2   :  { %1489 = vmatpush1.bf16.msra.mxu1 %v7482_v63  ;;  %1530 = vmatpush1.bf16.msra.mxu0 %v7549_v16 }
 0x1e3   :  { %1823 = vmatprep.subr.bf16.mxu0 %v7480_v62 }
 0x298   :  { %v1200_v41 = vpop.f32.mrb[20].mxu1  ;;  %v1241_v42 = vpop.f32.mrb[24].mxu0 }
 0x299   :  { %v1248_v45 = vadd.f32 %v1200_v41, %v7596_v31  ;;  %v1250_v46 = vadd.f32 %v1241_v42, %v7632_v0  ;;  %v1202_v50 = vpop.f32.mrb[21].mxu1  ;;  %v1243_v51 = vpop.f32.mrb[25].mxu0 }
 0x29a   :  { %v1249_v53 = vadd.f32 %v1202_v50, %v7598_v33  ;;  %v1251_v57 = vadd.f32 %v1243_v51, %v7634_v21  ;;  %v1204_v58 = vpop.f32.mrb[22].mxu1  ;;  %v1245_v60 = vpop.f32.mrb[26].mxu0 }
 0x29b   :  { %v5737_v30 = vmul.f32 -1.442695, %v1248_v45  ;;  %v1205_v63 = vpop.f32.mrb[23].mxu1  ;;  %v1246_v36 = vpop.f32.mrb[27].mxu0  ;;  %v5739_v62 = vmul.f32 -1.442695, %v1250_v46 }
 0x29c   :  { %v5738_v17 = vmul.f32 -1.442695, %v1249_v53 }
 0x29d   :  { %6670 = vpow2.f32 %v5737_v30 }
 0x29e   :  { %6672 = vpow2.f32 %v5738_v17 }
 0x29f   :  { %6674 = vtanh.f32 %v1251_v57 }
 0x2a0   :  { %6676 = vpow2.f32 %v5739_v62 }
 0x2a7   :  { %v6671_v18 = vpop.eup %6670 }
 0x2a8   :  { %v1261_v22 = vadd.f32 1.0, %v6671_v18  ;;  %v6673_v31 = vpop.eup %6672 }
 0x2a9   :  { %v1262_v0 = vadd.f32 1.0, %v6673_v31  ;;  %v6675_v33 = vpop.eup %6674 }
 0x2aa   :  { %6678 = vrcp.f32 %v1261_v22  ;;  %v6677_v52 = vpop.eup %6676 }
 0x2ab   :  { %6680 = vrcp.f32 %v1262_v0  ;;  %v1263_v25 = vadd.f32 1.0, %v6677_v52 }
 0x2ad   :  { %6682 = vrcp.f32 %v1263_v25  ;;  %v7806_v25 = vld [vmem:[#allocation6 + $0x8] ss:$16 sps:$4 sm:$0xff]  }
 0x2b4   :  { %v6679_v21 = vpop.eup %6678 }
 0x2b5   :  { %v1272_v27 = vmul.f32 %v6679_v21, %v6675_v33  ;;  %v6681_v29 = vpop.eup %6680 }
 0x2b6   :  { %v1271_v23 = vmul.f32 %v6681_v29, %v7660_v44  ;;  %v7769_v44 = vld [vmem:[#allocation6 + $0xe0] ss:$16 sps:$4 sm:$0xff]   ;;  %v7804_v29 = vld [vmem:[#allocation6 + $0xc] ss:$16 sps:$4 sm:$0xff]  }
 0x2b7   :  { %v6683_v38 = vpop.eup %6682 }
 0x2b8   :  { %v7701_v59 = vadd.f32 %v1272_v27, %v1271_v23  ;;  %v7810_v23 = vld [vmem:[#allocation6 + $0x2c] ss:$16 sps:$4 sm:$0xff]  }
 0x2ba   :  { %6684 = vtanh.f32 %v7701_v59 }
 0x2c4   :  { %v6685_v61 = vpop.eup %6684 }
 0x2c5   :  { %v7704_v54 = vmul.f32 %v6685_v61, %v6683_v38  ;;  %v7816_v38 = vld [vmem:[#allocation6 + $0x4c] ss:$16 sps:$4 sm:$0xff]   ;;  %v7818_v61 = vld [vmem:[#allocation6 + $0x48] ss:$16 sps:$4 sm:$0xff]  }
 0x2c7   :  { %v1281_v56 = vpack.c.bf16 %v7704_v54, %v7704_v54 }
 0x2c9   :  { %1507 = vmatmul.mubr.bf16.vlgmr.msra.gmra.mrb[24].mxu1 %v1281_v56  ;;  %1548 = vmatmul.mubr.bf16.vlgmr.msra.gmra.mrb[28].mxu0 %v1281_v56  ;;  %v7822_v56 = vld [vmem:[#allocation6 + $0x6c] ss:$16 sps:$4 sm:$0xff]  }
 0x2ca   :  { %1824 = vmatpush1.bf16.msra.mxu0 %v7487_v2  ;;  %1814 = vmatprep.mubr.bf16.mxu1 %v8813_v19  ;;  %v7725_v2 = vld [vmem:[#allocation6 + $0x4] ss:$16 sps:$4 sm:$0xff]  }
 0x2cb   :  { %1825 = vmatprep.subr.bf16.mxu0 %v7490_v3  ;;  %1855 = vmatprep.mubr.bf16.mxu0 %v8813_v19  ;;  %v7727_v3 = vld [vmem:[#allocation6] ss:$16 sps:$4 sm:$0xff]  }
 0x2cc   :  { %1782 = vmatprep.subr.bf16.mxu1 %v7725_v2 }
 0x2cd   :  { %1783 = vmatpush1.bf16.msra.mxu1 %v7727_v3 }
 0x2ce   :  { %1826 = vmatpush1.bf16.msra.mxu0 %v7494_v4  ;;  %v7731_v4 = vld [vmem:[#allocation6 + $0x24] ss:$16 sps:$4 sm:$0xff]  }
 0x2cf   :  { %1827 = vmatprep.subr.bf16.mxu0 %v7497_v5  ;;  %v7733_v5 = vld [vmem:[#allocation6 + $0x20] ss:$16 sps:$4 sm:$0xff]   ;;  %1784 = vmatprep.subr.bf16.mxu1 %v7731_v4 }
 0x2d1   :  { %1785 = vmatpush1.bf16.msra.mxu1 %v7733_v5 }
 0x2d2   :  { %1828 = vmatpush1.bf16.msra.mxu0 %v7504_v6  ;;  %v7737_v6 = vld [vmem:[#allocation6 + $0x44] ss:$16 sps:$4 sm:$0xff]  }
 0x2d3   :  { %1829 = vmatprep.subr.bf16.mxu0 %v7508_v7  ;;  %v7739_v7 = vld [vmem:[#allocation6 + $0x40] ss:$16 sps:$4 sm:$0xff]   ;;  %1786 = vmatprep.subr.bf16.mxu1 %v7737_v6 }
 0x2d5   :  { %1787 = vmatpush1.bf16.msra.mxu1 %v7739_v7 }
 0x2d6   :  { %1830 = vmatpush1.bf16.msra.mxu0 %v7513_v8  ;;  %v7743_v8 = vld [vmem:[#allocation6 + $0x64] ss:$16 sps:$4 sm:$0xff]  }
 0x2d7   :  { %1831 = vmatprep.subr.bf16.mxu0 %v7517_v9  ;;  %v7745_v9 = vld [vmem:[#allocation6 + $0x60] ss:$16 sps:$4 sm:$0xff]   ;;  %1788 = vmatprep.subr.bf16.mxu1 %v7743_v8 }
 0x2d9   :  { %1789 = vmatpush1.bf16.msra.mxu1 %v7745_v9 }
 0x2da   :  { %1832 = vmatpush1.bf16.msra.mxu0 %v7523_v10  ;;  %v7749_v10 = vld [vmem:[#allocation6 + $0x84] ss:$16 sps:$4 sm:$0xff]  }
 0x2db   :  { %1833 = vmatprep.subr.bf16.mxu0 %v7526_v11  ;;  %v7751_v11 = vld [vmem:[#allocation6 + $0x80] ss:$16 sps:$4 sm:$0xff]   ;;  %1790 = vmatprep.subr.bf16.mxu1 %v7749_v10 }
 0x2dd   :  { %1791 = vmatpush1.bf16.msra.mxu1 %v7751_v11 }
 0x2de   :  { %1834 = vmatpush1.bf16.msra.mxu0 %v7531_v12  ;;  %v7755_v12 = vld [vmem:[#allocation6 + $0xa0] ss:$16 sps:$4 sm:$0xff]  }
 0x2df   :  { %1835 = vmatprep.subr.bf16.mxu0 %v7535_v13  ;;  %v7757_v13 = vld [vmem:[#allocation6 + $0xa4] ss:$16 sps:$4 sm:$0xff]  }
 0x2e0   :  { %1792 = vmatprep.subr.bf16.mxu1 %v7757_v13 }
 0x2e1   :  { %1793 = vmatpush1.bf16.msra.mxu1 %v7755_v12 }
 0x2e2   :  { %1836 = vmatpush1.bf16.msra.mxu0 %v7541_v14  ;;  %v7759_v14 = vld [vmem:[#allocation6 + $0xc4] ss:$16 sps:$4 sm:$0xff]  }
 0x2e3   :  { %1837 = vmatprep.subr.bf16.mxu0 %v7544_v15  ;;  %v7763_v15 = vld [vmem:[#allocation6 + $0xc0] ss:$16 sps:$4 sm:$0xff]   ;;  %1794 = vmatprep.subr.bf16.mxu1 %v7759_v14 }
 0x2e5   :  { %1795 = vmatpush1.bf16.msra.mxu1 %v7763_v15 }
 0x2e6   :  { %1838 = vmatpush1.bf16.msra.mxu0 %v7549_v16  ;;  %v7766_v16 = vld [vmem:[#allocation6 + $0xe4] ss:$16 sps:$4 sm:$0xff]  }
 0x2e7   :  { %1796 = vmatprep.subr.bf16.mxu1 %v7766_v16  ;;  %2131 = vmatprep.subr.bf16.mxu0 %v7804_v29 }
 0x2e9   :  { %1797 = vmatpush1.bf16.msra.mxu1 %v7769_v44 }
 0x2ea   :  { %2090 = vmatprep.subr.bf16.mxu1 %v7725_v2 }
 0x39c   :  { %v1508_v48 = vpop.f32.mrb[24].mxu1  ;;  %v1549_v55 = vpop.f32.mrb[28].mxu0 }
 0x39d   :  { %v1556_v34 = vadd.f32 %v1508_v48, %v7600_v35  ;;  %v1558_v26 = vadd.f32 %v1549_v55, %v7636_v24  ;;  %v1510_v41 = vpop.f32.mrb[25].mxu1  ;;  %v1551_v42 = vpop.f32.mrb[29].mxu0  ;;  %v7824_v48 = vld [vmem:[#allocation6 + $0x68] ss:$16 sps:$4 sm:$0xff]   ;;  %v7828_v55 = vld [vmem:[#allocation6 + $0x8c] ss:$16 sps:$4 sm:$0xff]  }
 0x39e   :  { %v1557_v45 = vadd.f32 %v1510_v41, %v7602_v37  ;;  %v1559_v46 = vadd.f32 %v1551_v42, %v7638_v32  ;;  %v1512_v50 = vpop.f32.mrb[26].mxu1  ;;  %v1553_v51 = vpop.f32.mrb[30].mxu0  ;;  %v7836_v41 = vld [vmem:[#allocation6 + $0xac] ss:$16 sps:$4 sm:$0xff]  }
 0x39f   :  { %v5772_v53 = vmul.f32 -1.442695, %v1556_v34  ;;  %v1513_v57 = vpop.f32.mrb[27].mxu1  ;;  %v1554_v58 = vpop.f32.mrb[31].mxu0  ;;  %v5774_v30 = vmul.f32 -1.442695, %v1558_v26 }
 0x3a0   :  { %v5773_v60 = vmul.f32 -1.442695, %v1557_v45  ;;  %v7830_v34 = vld [vmem:[#allocation6 + $0x88] ss:$16 sps:$4 sm:$0xff]   ;;  %v7838_v42 = vld [vmem:[#allocation6 + $0xcc] ss:$16 sps:$4 sm:$0xff]  }
 0x3a1   :  { %6686 = vpow2.f32 %v5772_v53  ;;  %v7834_v26 = vld [vmem:[#allocation6 + $0xa8] ss:$16 sps:$4 sm:$0xff]  }
 0x3a2   :  { %6688 = vpow2.f32 %v5773_v60  ;;  %v7842_v45 = vld [vmem:[#allocation6 + $0xc8] ss:$16 sps:$4 sm:$0xff]  }
 0x3a3   :  { %6690 = vtanh.f32 %v1559_v46  ;;  %v7845_v46 = vld [vmem:[#allocation6 + $0xec] ss:$16 sps:$4 sm:$0xff]   ;;  %v7848_v50 = vld [vmem:[#allocation6 + $0xe8] ss:$16 sps:$4 sm:$0xff]  }
 0x3a4   :  { %6692 = vpow2.f32 %v5774_v30 }
 0x3ab   :  { %v6687_v63 = vpop.eup %6686 }
 0x3ac   :  { %v1569_v36 = vadd.f32 1.0, %v6687_v63  ;;  %v6689_v35 = vpop.eup %6688 }
 0x3ad   :  { %v1570_v24 = vadd.f32 1.0, %v6689_v35  ;;  %v6691_v37 = vpop.eup %6690 }
 0x3ae   :  { %6694 = vrcp.f32 %v1569_v36  ;;  %v6693_v17 = vpop.eup %6692 }
 0x3af   :  { %6696 = vrcp.f32 %v1570_v24  ;;  %v1571_v22 = vadd.f32 1.0, %v6693_v17 }
 0x3b1   :  { %6698 = vrcp.f32 %v1571_v22 }
 0x3b8   :  { %v6695_v32 = vpop.eup %6694 }
 0x3b9   :  { %v1580_v62 = vmul.f32 %v6695_v32, %v6691_v37  ;;  %v6697_v18 = vpop.eup %6696 }
 0x3ba   :  { %v1579_v31 = vmul.f32 %v6697_v18, %v7701_v59  ;;  %v7812_v59 = vld [vmem:[#allocation6 + $0x28] ss:$16 sps:$4 sm:$0xff]  }
 0x3bb   :  { %v6699_v33 = vpop.eup %6698 }
 0x3bc   :  { %v7779_v0 = vadd.f32 %v1580_v62, %v1579_v31 }
 0x3be   :  { %6700 = vtanh.f32 %v7779_v0 }
 0x3c8   :  { %v6701_v52 = vpop.eup %6700 }
 0x3c9   :  { %v7782_v21 = vmul.f32 %v6701_v52, %v6699_v33 }
 0x3cb   :  { %v1589_v27 = vpack.c.bf16 %v7782_v21, %v7782_v21 }
 0x3cd   :  { %1815 = vmatmul.mubr.bf16.vlgmr.msra.gmra.mrb[28].mxu1 %v1589_v27  ;;  %1856 = vmatmul.mubr.bf16.vlgmr.msra.gmra.mrb[32].mxu0 %v1589_v27 }
 0x3ce   :  { %2091 = vmatpush1.bf16.msra.mxu1 %v7727_v3  ;;  %2122 = vmatprep.mubr.bf16.mxu1 %v8813_v19 }
 0x3cf   :  { %2092 = vmatprep.subr.bf16.mxu1 %v7731_v4  ;;  %2163 = vmatprep.mubr.bf16.mxu0 %v8813_v19 }
 0x3d0   :  { %2132 = vmatpush1.bf16.msra.mxu0 %v7806_v25 }
 0x3d1   :  { %2133 = vmatprep.subr.bf16.mxu0 %v7810_v23 }
 0x3d2   :  { %2093 = vmatpush1.bf16.msra.mxu1 %v7733_v5 }
 0x3d3   :  { %2094 = vmatprep.subr.bf16.mxu1 %v7737_v6 }
 0x3d4   :  { %2134 = vmatpush1.bf16.msra.mxu0 %v7812_v59 }
 0x3d5   :  { %2135 = vmatprep.subr.bf16.mxu0 %v7816_v38 }
 0x3d6   :  { %2095 = vmatpush1.bf16.msra.mxu1 %v7739_v7 }
 0x3d7   :  { %2096 = vmatprep.subr.bf16.mxu1 %v7743_v8 }
 0x3d8   :  { %2136 = vmatpush1.bf16.msra.mxu0 %v7818_v61 }
 0x3d9   :  { %2137 = vmatprep.subr.bf16.mxu0 %v7822_v56 }
 0x3da   :  { %2097 = vmatpush1.bf16.msra.mxu1 %v7745_v9 }
 0x3db   :  { %2098 = vmatprep.subr.bf16.mxu1 %v7749_v10 }
 0x3dc   :  { %2138 = vmatpush1.bf16.msra.mxu0 %v7824_v48 }
 0x3dd   :  { %2139 = vmatprep.subr.bf16.mxu0 %v7828_v55 }
 0x3de   :  { %2099 = vmatpush1.bf16.msra.mxu1 %v7751_v11 }
 0x3df   :  { %2100 = vmatprep.subr.bf16.mxu1 %v7757_v13 }
 0x3e0   :  { %2140 = vmatpush1.bf16.msra.mxu0 %v7830_v34 }
 0x3e1   :  { %2141 = vmatprep.subr.bf16.mxu0 %v7836_v41 }
 0x3e2   :  { %2101 = vmatpush1.bf16.msra.mxu1 %v7755_v12 }
 0x3e3   :  { %2102 = vmatprep.subr.bf16.mxu1 %v7759_v14 }
 0x3e4   :  { %2142 = vmatpush1.bf16.msra.mxu0 %v7834_v26 }
 0x3e5   :  { %2143 = vmatprep.subr.bf16.mxu0 %v7838_v42 }
 0x3e6   :  { %2103 = vmatpush1.bf16.msra.mxu1 %v7763_v15 }
 0x3e7   :  { %2104 = vmatprep.subr.bf16.mxu1 %v7766_v16 }
 0x3e8   :  { %2144 = vmatpush1.bf16.msra.mxu0 %v7842_v45 }
 0x3e9   :  { %2145 = vmatprep.subr.bf16.mxu0 %v7845_v46 }
 0x3ea   :  { %2105 = vmatpush1.bf16.msra.mxu1 %v7769_v44 }
 0x3eb   :  { %2398 = vmatprep.subr.bf16.mxu1 %v7725_v2 }
 0x3ec   :  { %2146 = vmatpush1.bf16.msra.mxu0 %v7848_v50 }
 0x3ed   :  { %2439 = vmatprep.subr.bf16.mxu0 %v7804_v29 }
 0x4a0   :  { %v1816_v51 = vpop.f32.mrb[28].mxu1  ;;  %v1857_v53 = vpop.f32.mrb[32].mxu0 }
 0x4a1   :  { %v1864_v57 = vadd.f32 %v1816_v51, %v7604_v39  ;;  %v1866_v58 = vadd.f32 %v1857_v53, %v7640_v20  ;;  %v1818_v60 = vpop.f32.mrb[29].mxu1  ;;  %v1859_v30 = vpop.f32.mrb[33].mxu0 }
 0x4a2   :  { %v1865_v63 = vadd.f32 %v1818_v60, %v7606_v43  ;;  %v1867_v36 = vadd.f32 %v1859_v30, %v7642_v40  ;;  %v1820_v35 = vpop.f32.mrb[30].mxu1  ;;  %v1861_v24 = vpop.f32.mrb[34].mxu0 }
 0x4a3   :  { %v5807_v37 = vmul.f32 -1.442695, %v1864_v57  ;;  %v1821_v17 = vpop.f32.mrb[31].mxu1  ;;  %v1862_v32 = vpop.f32.mrb[35].mxu0  ;;  %v5809_v18 = vmul.f32 -1.442695, %v1866_v58 }
 0x4a4   :  { %v5808_v62 = vmul.f32 -1.442695, %v1865_v63 }
 0x4a5   :  { %6702 = vpow2.f32 %v5807_v37 }
 0x4a6   :  { %6704 = vpow2.f32 %v5808_v62  ;;  %v8814_v62 = vld [vmem:[#allocation30_spill] sm:$0xff] }
 0x4a7   :  { %6706 = vtanh.f32 %v1867_v36 }
 0x4a8   :  { %6708 = vpow2.f32 %v5809_v18 }
 0x4af   :  { %v6703_v22 = vpop.eup %6702 }
 0x4b0   :  { %v1877_v31 = vadd.f32 1.0, %v6703_v22  ;;  %v6705_v39 = vpop.eup %6704 }
 0x4b1   :  { %v1878_v20 = vadd.f32 1.0, %v6705_v39  ;;  %v6707_v43 = vpop.eup %6706 }
 0x4b2   :  { %6710 = vrcp.f32 %v1877_v31  ;;  %v6709_v33 = vpop.eup %6708 }
 0x4b3   :  { %6712 = vrcp.f32 %v1878_v20  ;;  %v1879_v51 = vadd.f32 1.0, %v6709_v33 }
 0x4b5   :  { %6714 = vrcp.f32 %v1879_v51 }
 0x4bc   :  { %v6711_v40 = vpop.eup %6710 }
 0x4bd   :  { %v1888_v52 = vmul.f32 %v6711_v40, %v6707_v43  ;;  %v6713_v27 = vpop.eup %6712 }
 0x4be   :  { %v1887_v53 = vmul.f32 %v6713_v27, %v7779_v0 }
 0x4bf   :  { %v6715_v58 = vpop.eup %6714 }
 0x4c0   :  { %v7858_v57 = vadd.f32 %v1888_v52, %v1887_v53 }
 0x4c2   :  { %6716 = vtanh.f32 %v7858_v57 }
 0x4cc   :  { %v6717_v60 = vpop.eup %6716 }
 0x4cd   :  { %v7861_v30 = vmul.f32 %v6717_v60, %v6715_v58 }
 0x4cf   :  { %v1897_v63 = vpack.c.bf16 %v7861_v30, %v7861_v30 }
 0x4d1   :  { %2123 = vmatmul.mubr.bf16.vlgmr.msra.gmra.mrb[32].mxu1 %v1897_v63  ;;  %2164 = vmatmul.mubr.bf16.vlgmr.msra.gmra.mrb[36].mxu0 %v1897_v63 }
 0x4d2   :  { %2399 = vmatpush1.bf16.msra.mxu1 %v7727_v3  ;;  %2440 = vmatpush1.bf16.msra.mxu0 %v7806_v25 }
 0x4d3   :  { %2400 = vmatprep.subr.bf16.mxu1 %v7731_v4  ;;  %2441 = vmatprep.subr.bf16.mxu0 %v7810_v23 }
 0x4d4   :  { %2430 = vmatprep.mubr.bf16.mxu1 %v8813_v19  ;;  %2471 = vmatprep.mubr.bf16.mxu0 %v8813_v19 }
 0x4d6   :  { %2401 = vmatpush1.bf16.msra.mxu1 %v7733_v5  ;;  %2442 = vmatpush1.bf16.msra.mxu0 %v7812_v59 }
 0x4d7   :  { %2402 = vmatprep.subr.bf16.mxu1 %v7737_v6  ;;  %2443 = vmatprep.subr.bf16.mxu0 %v7816_v38 }
 0x4da   :  { %2403 = vmatpush1.bf16.msra.mxu1 %v7739_v7  ;;  %2444 = vmatpush1.bf16.msra.mxu0 %v7818_v61 }
 0x4db   :  { %2404 = vmatprep.subr.bf16.mxu1 %v7743_v8  ;;  %2445 = vmatprep.subr.bf16.mxu0 %v7822_v56 }
 0x4de   :  { %2405 = vmatpush1.bf16.msra.mxu1 %v7745_v9  ;;  %2446 = vmatpush1.bf16.msra.mxu0 %v7824_v48 }
 0x4df   :  { %2406 = vmatprep.subr.bf16.mxu1 %v7749_v10  ;;  %2447 = vmatprep.subr.bf16.mxu0 %v7828_v55 }
 0x4e2   :  { %2407 = vmatpush1.bf16.msra.mxu1 %v7751_v11  ;;  %2448 = vmatpush1.bf16.msra.mxu0 %v7830_v34 }
 0x4e3   :  { %2408 = vmatprep.subr.bf16.mxu1 %v7757_v13  ;;  %2449 = vmatprep.subr.bf16.mxu0 %v7836_v41 }
 0x4e6   :  { %2409 = vmatpush1.bf16.msra.mxu1 %v7755_v12  ;;  %2450 = vmatpush1.bf16.msra.mxu0 %v7834_v26 }
 0x4e7   :  { %2410 = vmatprep.subr.bf16.mxu1 %v7759_v14  ;;  %2451 = vmatprep.subr.bf16.mxu0 %v7838_v42 }
 0x4ea   :  { %2411 = vmatpush1.bf16.msra.mxu1 %v7763_v15  ;;  %2452 = vmatpush1.bf16.msra.mxu0 %v7842_v45 }
 0x4eb   :  { %2412 = vmatprep.subr.bf16.mxu1 %v7766_v16  ;;  %2453 = vmatprep.subr.bf16.mxu0 %v7845_v46 }
 0x4ee   :  { %2413 = vmatpush1.bf16.msra.mxu1 %v7769_v44  ;;  %2454 = vmatpush1.bf16.msra.mxu0 %v7848_v50 }
 0x4ef   :  { %2706 = vmatprep.subr.bf16.mxu1 %v7725_v2  ;;  %2747 = vmatprep.subr.bf16.mxu0 %v7804_v29 }
 0x5a4   :  { %v2124_v0 = vpop.f32.mrb[32].mxu1  ;;  %v2165_v36 = vpop.f32.mrb[36].mxu0 }
 0x5a5   :  { %v2172_v35 = vadd.f32 %v2124_v0, %v7608_v47  ;;  %v2174_v24 = vadd.f32 %v2165_v36, %v7644_v1  ;;  %v2126_v37 = vpop.f32.mrb[33].mxu1  ;;  %v2167_v17 = vpop.f32.mrb[37].mxu0 }
 0x5a6   :  { %v2173_v32 = vadd.f32 %v2126_v37, %v7610_v49  ;;  %v2175_v18 = vadd.f32 %v2167_v17, %v8814_v62  ;;  %v2128_v22 = vpop.f32.mrb[34].mxu1  ;;  %v2169_v31 = vpop.f32.mrb[38].mxu0 }
 0x5a7   :  { %v5842_v39 = vmul.f32 -1.442695, %v2172_v35  ;;  %v2129_v20 = vpop.f32.mrb[35].mxu1  ;;  %v2170_v43 = vpop.f32.mrb[39].mxu0  ;;  %v5844_v33 = vmul.f32 -1.442695, %v2174_v24 }
 0x5a8   :  { %v5843_v2 = vmul.f32 -1.442695, %v2173_v32 }
 0x5a9   :  { %6718 = vpow2.f32 %v5842_v39 }
 0x5aa   :  { %6720 = vpow2.f32 %v5843_v2 }
 0x5ab   :  { %6722 = vtanh.f32 %v2175_v18 }
 0x5ac   :  { %6724 = vpow2.f32 %v5844_v33 }
 0x5b3   :  { %v6719_v40 = vpop.eup %6718 }
 0x5b4   :  { %v2185_v52 = vadd.f32 1.0, %v6719_v40  ;;  %v6721_v47 = vpop.eup %6720 }
 0x5b5   :  { %v2186_v1 = vadd.f32 1.0, %v6721_v47  ;;  %v6723_v49 = vpop.eup %6722 }
 0x5b6   :  { %6726 = vrcp.f32 %v2185_v52  ;;  %v6725_v27 = vpop.eup %6724 }
 0x5b7   :  { %6728 = vrcp.f32 %v2186_v1  ;;  %v2187_v60 = vadd.f32 1.0, %v6725_v27 }
 0x5b9   :  { %6730 = vrcp.f32 %v2187_v60  ;;  %v6440_v60 = vld [vmem:[#allocation8 + $0x4] ss:$16 sps:$4 sm:$0xff]  }
 0x5c0   :  { %v6727_v51 = vpop.eup %6726 }
 0x5c1   :  { %v2196_v53 = vmul.f32 %v6727_v51, %v6723_v49  ;;  %v6729_v58 = vpop.eup %6728 }
 0x5c2   :  { %v2195_v63 = vmul.f32 %v6729_v58, %v7858_v57  ;;  %v6435_v58 = vld [vmem:[#allocation6 + $0xe0] ss:$16 sps:$4 sm:$0xff]  }
 0x5c3   :  { %v6731_v36 = vpop.eup %6730 }
 0x5c4   :  { %v7904_v0 = vadd.f32 %v2196_v53, %v2195_v63  ;;  %v6437_v53 = vld [vmem:[#allocation6 + $0xe4] ss:$16 sps:$4 sm:$0xff]  }
 0x5c6   :  { %6732 = vtanh.f32 %v7904_v0 }
 0x5d0   :  { %v6733_v35 = vpop.eup %6732 }
 0x5d1   :  { %v7907_v24 = vmul.f32 %v6733_v35, %v6731_v36  ;;  %v8819_v36 = vld [vmem:[#allocation24_spill] sm:$0xff] }
 0x5d3   :  { %v2205_v37 = vpack.c.bf16 %v7907_v24, %v7907_v24 }
 0x5d5   :  { %2431 = vmatmul.mubr.bf16.vlgmr.msra.gmra.mrb[36].mxu1 %v2205_v37  ;;  %2472 = vmatmul.mubr.bf16.vlgmr.msra.gmra.mrb[40].mxu0 %v2205_v37  ;;  %v8820_v37 = vld [vmem:[#allocation33_spill] sm:$0xff] }
 0x5d6   :  { %2707 = vmatpush1.bf16.msra.mxu1 %v7727_v3  ;;  %2748 = vmatpush1.bf16.msra.mxu0 %v7806_v25 }
 0x5d7   :  { %2708 = vmatprep.subr.bf16.mxu1 %v7731_v4  ;;  %2749 = vmatprep.subr.bf16.mxu0 %v7810_v23 }
 0x5d8   :  { %2738 = vmatprep.mubr.bf16.mxu1 %v8813_v19  ;;  %2779 = vmatprep.mubr.bf16.mxu0 %v8813_v19 }
 0x5da   :  { %2709 = vmatpush1.bf16.msra.mxu1 %v7733_v5  ;;  %2750 = vmatpush1.bf16.msra.mxu0 %v7812_v59  ;;  %v8815_v5 = vld [vmem:[#allocation22_spill] sm:$0xff] }
 0x5db   :  { %2710 = vmatprep.subr.bf16.mxu1 %v7737_v6  ;;  %2751 = vmatprep.subr.bf16.mxu0 %v7816_v38 }
 0x5de   :  { %2711 = vmatpush1.bf16.msra.mxu1 %v7739_v7  ;;  %2752 = vmatpush1.bf16.msra.mxu0 %v7818_v61  ;;  %v8816_v7 = vld [vmem:[#allocation31_spill] sm:$0xff] }
 0x5df   :  { %2712 = vmatprep.subr.bf16.mxu1 %v7743_v8  ;;  %2753 = vmatprep.subr.bf16.mxu0 %v7822_v56 }
 0x5e2   :  { %2713 = vmatpush1.bf16.msra.mxu1 %v7745_v9  ;;  %2754 = vmatpush1.bf16.msra.mxu0 %v7824_v48 }
 0x5e3   :  { %2714 = vmatprep.subr.bf16.mxu1 %v7749_v10  ;;  %2755 = vmatprep.subr.bf16.mxu0 %v7828_v55 }
 0x5e6   :  { %2715 = vmatpush1.bf16.msra.mxu1 %v7751_v11  ;;  %2756 = vmatpush1.bf16.msra.mxu0 %v7830_v34  ;;  %v8817_v11 = vld [vmem:[#allocation23_spill] sm:$0xff] }
 0x5e7   :  { %2716 = vmatprep.subr.bf16.mxu1 %v7757_v13  ;;  %2757 = vmatprep.subr.bf16.mxu0 %v7836_v41  ;;  %v8818_v13 = vld [vmem:[#allocation32_spill] sm:$0xff] }
 0x5ea   :  { %2717 = vmatpush1.bf16.msra.mxu1 %v7755_v12  ;;  %2758 = vmatpush1.bf16.msra.mxu0 %v7834_v26 }
 0x5eb   :  { %2718 = vmatprep.subr.bf16.mxu1 %v7759_v14  ;;  %2759 = vmatprep.subr.bf16.mxu0 %v7838_v42 }
 0x5ee   :  { %2719 = vmatpush1.bf16.msra.mxu1 %v7763_v15  ;;  %2760 = vmatpush1.bf16.msra.mxu0 %v7842_v45 }
 0x5ef   :  { %2720 = vmatprep.subr.bf16.mxu1 %v7766_v16  ;;  %2761 = vmatprep.subr.bf16.mxu0 %v7845_v46 }
 0x5f2   :  { %2721 = vmatpush1.bf16.msra.mxu1 %v7769_v44  ;;  %2762 = vmatpush1.bf16.msra.mxu0 %v7848_v50 }
 0x5f3   :  { %3055 = vmatprep.subr.bf16.mxu0 %v7804_v29 }
 0x6a8   :  { %v2432_v3 = vpop.f32.mrb[36].mxu1  ;;  %v2473_v4 = vpop.f32.mrb[40].mxu0 }
 0x6a9   :  { %v2480_v6 = vadd.f32 %v2432_v3, %v8815_v5  ;;  %v2482_v8 = vadd.f32 %v2473_v4, %v8816_v7  ;;  %v2434_v9 = vpop.f32.mrb[37].mxu1  ;;  %v2475_v10 = vpop.f32.mrb[41].mxu0 }
 0x6aa   :  { %v2481_v12 = vadd.f32 %v2434_v9, %v8817_v11  ;;  %v2483_v14 = vadd.f32 %v2475_v10, %v8818_v13  ;;  %v2436_v15 = vpop.f32.mrb[38].mxu1  ;;  %v2477_v16 = vpop.f32.mrb[42].mxu0 }
 0x6ab   :  { %v5877_v57 = vmul.f32 -1.442695, %v2480_v6  ;;  %v2437_v44 = vpop.f32.mrb[39].mxu1  ;;  %v2478_v17 = vpop.f32.mrb[43].mxu0  ;;  %v5879_v29 = vmul.f32 -1.442695, %v2482_v8 }
 0x6ac   :  { %v5878_v32 = vmul.f32 -1.442695, %v2481_v12  ;;  %v8821_v6 = vld [vmem:[#allocation25_spill] sm:$0xff]  ;;  %v8822_v8 = vld [vmem:[#allocation34_spill] sm:$0xff] }
 0x6ad   :  { %6734 = vpow2.f32 %v5877_v57 }
 0x6ae   :  { %6736 = vpow2.f32 %v5878_v32 }
 0x6af   :  { %6738 = vtanh.f32 %v2483_v14 }
 0x6b0   :  { %6740 = vpow2.f32 %v5879_v29 }
 0x6b7   :  { %v6735_v62 = vpop.eup %6734 }
 0x6b8   :  { %v2493_v18 = vadd.f32 1.0, %v6735_v62  ;;  %v6737_v22 = vpop.eup %6736 }
 0x6b9   :  { %v2494_v31 = vadd.f32 1.0, %v6737_v22  ;;  %v6739_v39 = vpop.eup %6738 }
 0x6ba   :  { %6742 = vrcp.f32 %v2493_v18  ;;  %v6741_v20 = vpop.eup %6740 }
 0x6bb   :  { %6744 = vrcp.f32 %v2494_v31  ;;  %v2495_v40 = vadd.f32 1.0, %v6741_v20 }
 0x6bd   :  { %6746 = vrcp.f32 %v2495_v40 }
 0x6c4   :  { %v6743_v43 = vpop.eup %6742 }
 0x6c5   :  { %v2504_v2 = vmul.f32 %v6743_v43, %v6739_v39  ;;  %v6745_v33 = vpop.eup %6744 }
 0x6c6   :  { %v2503_v52 = vmul.f32 %v6745_v33, %v7904_v0 }
 0x6c7   :  { %v6747_v1 = vpop.eup %6746 }
 0x6c8   :  { %v7949_v47 = vadd.f32 %v2504_v2, %v2503_v52  ;;  %v6438_v52 = vld [vmem:[#allocation8] ss:$16 sps:$4 sm:$0xff]  }
 0x6ca   :  { %6748 = vtanh.f32 %v7949_v47 }
 0x6d4   :  { %v6749_v49 = vpop.eup %6748 }
 0x6d5   :  { %v7952_v27 = vmul.f32 %v6749_v49, %v6747_v1  ;;  %v6441_v1 = vld [vmem:[#allocation8 + $0x8] ss:$16 sps:$4 sm:$0xff]  }
 0x6d7   :  { %v2513_v51 = vpack.c.bf16 %v7952_v27, %v7952_v27 }
 0x6d9   :  { %2739 = vmatmul.mubr.bf16.vlgmr.msra.gmra.mrb[40].mxu1 %v2513_v51  ;;  %2780 = vmatmul.mubr.bf16.vlgmr.msra.gmra.mrb[44].mxu0 %v2513_v51  ;;  %v6446_v51 = vld [vmem:[#allocation8 + $0x24] ss:$16 sps:$4 sm:$0xff]  }
 0x6da   :  { %3056 = vmatpush1.bf16.msra.mxu0 %v7806_v25  ;;  %3046 = vmatprep.mubr.bf16.mxu1 %v8813_v19  ;;  %v6416_v25 = vld [vmem:[#allocation6 + $0x4] ss:$16 sps:$4 sm:$0xff]  }
 0x6db   :  { %3057 = vmatprep.subr.bf16.mxu0 %v7810_v23  ;;  %3087 = vmatprep.mubr.bf16.mxu0 %v8813_v19  ;;  %v6414_v23 = vld [vmem:[#allocation6] ss:$16 sps:$4 sm:$0xff]  }
 0x6dc   :  { %3014 = vmatprep.subr.bf16.mxu1 %v6416_v25  ;;  %v6449_v25 = vld [vmem:[#allocation8 + $0x2c] ss:$16 sps:$4 sm:$0xff]  }
 0x6dd   :  { %3015 = vmatpush1.bf16.msra.mxu1 %v6414_v23  ;;  %v6447_v23 = vld [vmem:[#allocation8 + $0x28] ss:$16 sps:$4 sm:$0xff]  }
 0x6de   :  { %3058 = vmatpush1.bf16.msra.mxu0 %v7812_v59  ;;  %v6419_v59 = vld [vmem:[#allocation6 + $0x24] ss:$16 sps:$4 sm:$0xff]  }
 0x6df   :  { %3059 = vmatprep.subr.bf16.mxu0 %v7816_v38  ;;  %v6417_v38 = vld [vmem:[#allocation6 + $0x20] ss:$16 sps:$4 sm:$0xff]   ;;  %3016 = vmatprep.subr.bf16.mxu1 %v6419_v59  ;;  %v6452_v59 = vld [vmem:[#allocation8 + $0x44] ss:$16 sps:$4 sm:$0xff]  }
 0x6e1   :  { %3017 = vmatpush1.bf16.msra.mxu1 %v6417_v38  ;;  %v6455_v38 = vld [vmem:[#allocation8 + $0x4c] ss:$16 sps:$4 sm:$0xff]  }
 0x6e2   :  { %3060 = vmatpush1.bf16.msra.mxu0 %v7818_v61  ;;  %v6422_v61 = vld [vmem:[#allocation6 + $0x44] ss:$16 sps:$4 sm:$0xff]  }
 0x6e3   :  { %3061 = vmatprep.subr.bf16.mxu0 %v7822_v56  ;;  %v6420_v56 = vld [vmem:[#allocation6 + $0x40] ss:$16 sps:$4 sm:$0xff]   ;;  %3018 = vmatprep.subr.bf16.mxu1 %v6422_v61 }
 0x6e4   :  { %v6450_v61 = vld [vmem:[#allocation8 + $0x40] ss:$16 sps:$4 sm:$0xff]  }
 0x6e5   :  { %3019 = vmatpush1.bf16.msra.mxu1 %v6420_v56  ;;  %v6453_v56 = vld [vmem:[#allocation8 + $0x48] ss:$16 sps:$4 sm:$0xff]  }
 0x6e6   :  { %3062 = vmatpush1.bf16.msra.mxu0 %v7824_v48  ;;  %v6425_v48 = vld [vmem:[#allocation6 + $0x64] ss:$16 sps:$4 sm:$0xff]  }
 0x6e7   :  { %3063 = vmatprep.subr.bf16.mxu0 %v7828_v55  ;;  %v6423_v55 = vld [vmem:[#allocation6 + $0x60] ss:$16 sps:$4 sm:$0xff]   ;;  %3020 = vmatprep.subr.bf16.mxu1 %v6425_v48  ;;  %v6458_v48 = vld [vmem:[#allocation8 + $0x64] ss:$16 sps:$4 sm:$0xff]  }
 0x6e9   :  { %3021 = vmatpush1.bf16.msra.mxu1 %v6423_v55  ;;  %v6461_v55 = vld [vmem:[#allocation8 + $0x6c] ss:$16 sps:$4 sm:$0xff]  }
 0x6ea   :  { %3064 = vmatpush1.bf16.msra.mxu0 %v7830_v34  ;;  %v6428_v34 = vld [vmem:[#allocation6 + $0x84] ss:$16 sps:$4 sm:$0xff]  }
 0x6eb   :  { %3065 = vmatprep.subr.bf16.mxu0 %v7836_v41  ;;  %3022 = vmatprep.subr.bf16.mxu1 %v6428_v34  ;;  %v6429_v41 = vld [vmem:[#allocation6 + $0xa0] ss:$16 sps:$4 sm:$0xff]  }
 0x6ec   :  { %v6456_v34 = vld [vmem:[#allocation8 + $0x60] ss:$16 sps:$4 sm:$0xff]  }
 0x6ee   :  { %3066 = vmatpush1.bf16.msra.mxu0 %v7834_v26  ;;  %v6426_v26 = vld [vmem:[#allocation6 + $0x80] ss:$16 sps:$4 sm:$0xff]  }
 0x6ef   :  { %3067 = vmatprep.subr.bf16.mxu0 %v7838_v42  ;;  %3023 = vmatpush1.bf16.msra.mxu1 %v6426_v26  ;;  %v6431_v42 = vld [vmem:[#allocation6 + $0xa4] ss:$16 sps:$4 sm:$0xff]   ;;  %v6459_v26 = vld [vmem:[#allocation8 + $0x68] ss:$16 sps:$4 sm:$0xff]  }
 0x6f0   :  { %3024 = vmatprep.subr.bf16.mxu1 %v6431_v42  ;;  %v6467_v42 = vld [vmem:[#allocation8 + $0x8c] ss:$16 sps:$4 sm:$0xff]  }
 0x6f2   :  { %3068 = vmatpush1.bf16.msra.mxu0 %v7842_v45  ;;  %v6434_v45 = vld [vmem:[#allocation6 + $0xc4] ss:$16 sps:$4 sm:$0xff]  }
 0x6f3   :  { %3069 = vmatprep.subr.bf16.mxu0 %v7845_v46  ;;  %3025 = vmatpush1.bf16.msra.mxu1 %v6429_v41  ;;  %v6432_v46 = vld [vmem:[#allocation6 + $0xc0] ss:$16 sps:$4 sm:$0xff]   ;;  %v6464_v41 = vld [vmem:[#allocation8 + $0x84] ss:$16 sps:$4 sm:$0xff]  }
 0x6f4   :  { %3026 = vmatprep.subr.bf16.mxu1 %v6434_v45  ;;  %v6462_v45 = vld [vmem:[#allocation8 + $0x80] ss:$16 sps:$4 sm:$0xff]  }
 0x6f6   :  { %3070 = vmatpush1.bf16.msra.mxu0 %v7848_v50  ;;  %v6443_v50 = vld [vmem:[#allocation8 + $0xc] ss:$16 sps:$4 sm:$0xff]  }
 0x6f7   :  { %3424 = vmatprep.subr.bf16.mxu0 %v6443_v50  ;;  %3027 = vmatpush1.bf16.msra.mxu1 %v6432_v46  ;;  %v6465_v46 = vld [vmem:[#allocation8 + $0x88] ss:$16 sps:$4 sm:$0xff]   ;;  %v6470_v50 = vld [vmem:[#allocation8 + $0xa4] ss:$16 sps:$4 sm:$0xff]  }
 0x6f8   :  { %3028 = vmatprep.subr.bf16.mxu1 %v6437_v53  ;;  %v6473_v53 = vld [vmem:[#allocation8 + $0xac] ss:$16 sps:$4 sm:$0xff]  }
 0x6fb   :  { %3029 = vmatpush1.bf16.msra.mxu1 %v6435_v58  ;;  %v6468_v58 = vld [vmem:[#allocation8 + $0xa0] ss:$16 sps:$4 sm:$0xff]  }
 0x6fc   :  { %3351 = vmatprep.subr.bf16.mxu1 %v6440_v60  ;;  %v6471_v60 = vld [vmem:[#allocation8 + $0xa8] ss:$16 sps:$4 sm:$0xff]  }
 0x7ac   :  { %v2740_v63 = vpop.f32.mrb[40].mxu1  ;;  %v2781_v0 = vpop.f32.mrb[44].mxu0 }
 0x7ad   :  { %v2788_v35 = vadd.f32 %v2740_v63, %v8819_v36  ;;  %v2790_v3 = vadd.f32 %v2781_v0, %v8820_v37  ;;  %v2742_v4 = vpop.f32.mrb[41].mxu1  ;;  %v2783_v5 = vpop.f32.mrb[45].mxu0  ;;  %v6476_v63 = vld [vmem:[#allocation8 + $0xc4] ss:$16 sps:$4 sm:$0xff]   ;;  %v6479_v0 = vld [vmem:[#allocation8 + $0xcc] ss:$16 sps:$4 sm:$0xff]  }
 0x7ae   :  { %v2789_v7 = vadd.f32 %v2742_v4, %v8821_v6  ;;  %v2791_v9 = vadd.f32 %v2783_v5, %v8822_v8  ;;  %v2744_v10 = vpop.f32.mrb[42].mxu1  ;;  %v2785_v11 = vpop.f32.mrb[46].mxu0  ;;  %v6474_v36 = vld [vmem:[#allocation8 + $0xc0] ss:$16 sps:$4 sm:$0xff]   ;;  %v6482_v37 = vld [vmem:[#allocation8 + $0xe4] ss:$16 sps:$4 sm:$0xff]   ;;  %v3134_v6 = vpack.c.bf16 %v7704_v54, %v7663_v28  ;;  %v3136_v8 = vpack.c.bf16 %v7952_v27, %v7907_v24 }
 0x7af   :  { %v5912_v12 = vmul.f32 -1.442695, %v2788_v35  ;;  %v2745_v13 = vpop.f32.mrb[43].mxu1  ;;  %v2786_v14 = vpop.f32.mrb[47].mxu0  ;;  %v5914_v16 = vmul.f32 -1.442695, %v2790_v3 }
 0x7b0   :  { %v5913_v15 = vmul.f32 -1.442695, %v2789_v7  ;;  %v6477_v35 = vld [vmem:[#allocation8 + $0xc8] ss:$16 sps:$4 sm:$0xff]   ;;  %v6485_v3 = vld [vmem:[#allocation8 + $0xec] ss:$16 sps:$4 sm:$0xff]   ;;  %v3135_v7 = vpack.c.bf16 %v7861_v30, %v7782_v21 }
 0x7b1   :  { %6750 = vpow2.f32 %v5912_v12  ;;  %v6480_v4 = vld [vmem:[#allocation8 + $0xe0] ss:$16 sps:$4 sm:$0xff]   ;;  %v6483_v5 = vld [vmem:[#allocation8 + $0xe8] ss:$16 sps:$4 sm:$0xff]   ;;  %v7999_v28 = vld [vmem:[#allocation9 + $0x4] ss:$16 sps:$4 sm:$0xff]  }
 0x7b2   :  { %6752 = vpow2.f32 %v5913_v15  ;;  %v8001_v54 = vld [vmem:[#allocation9 + $0xc] ss:$16 sps:$4 sm:$0xff]   ;;  %v8003_v21 = vld [vmem:[#allocation9] ss:$16 sps:$4 sm:$0xff]   ;;  %v8005_v30 = vld [vmem:[#allocation9 + $0x8] ss:$16 sps:$4 sm:$0xff]  }
 0x7b3   :  { %6754 = vtanh.f32 %v2791_v9  ;;  %v8011_v24 = vld [vmem:[#allocation9 + $0x24] ss:$16 sps:$4 sm:$0xff]   ;;  %v8013_v27 = vld [vmem:[#allocation9 + $0x2c] ss:$16 sps:$4 sm:$0xff]   ;;  %v8015_v9 = vld [vmem:[#allocation9 + $0x20] ss:$16 sps:$4 sm:$0xff]  }
 0x7b4   :  { %6756 = vpow2.f32 %v5914_v16  ;;  %v8017_v10 = vld [vmem:[#allocation9 + $0x28] ss:$16 sps:$4 sm:$0xff]   ;;  %v8023_v11 = vld [vmem:[#allocation9 + $0x44] ss:$16 sps:$4 sm:$0xff]   ;;  %v8025_v12 = vld [vmem:[#allocation9 + $0x4c] ss:$16 sps:$4 sm:$0xff]  }
 0x7b5   :  { %v8027_v13 = vld [vmem:[#allocation9 + $0x40] ss:$16 sps:$4 sm:$0xff]   ;;  %v8029_v14 = vld [vmem:[#allocation9 + $0x48] ss:$16 sps:$4 sm:$0xff]   ;;  %v8035_v15 = vld [vmem:[#allocation9 + $0x64] ss:$16 sps:$4 sm:$0xff]  }
 0x7b6   :  { %v8037_v16 = vld [vmem:[#allocation9 + $0x6c] ss:$16 sps:$4 sm:$0xff]  }
 0x7bb   :  { %v6751_v57 = vpop.eup %6750 }
 0x7bc   :  { %v2801_v44 = vadd.f32 1.0, %v6751_v57  ;;  %v6753_v17 = vpop.eup %6752  ;;  %v8039_v57 = vld [vmem:[#allocation9 + $0x60] ss:$16 sps:$4 sm:$0xff]  }
 0x7bd   :  { %v2802_v32 = vadd.f32 1.0, %v6753_v17  ;;  %v6755_v29 = vpop.eup %6754  ;;  %v8047_v17 = vld [vmem:[#allocation9 + $0x84] ss:$16 sps:$4 sm:$0xff]  }
 0x7be   :  { %6758 = vrcp.f32 %v2801_v44  ;;  %v6757_v62 = vpop.eup %6756  ;;  %v8041_v44 = vld [vmem:[#allocation9 + $0x68] ss:$16 sps:$4 sm:$0xff]  }
 0x7bf   :  { %6760 = vrcp.f32 %v2802_v32  ;;  %v2803_v39 = vadd.f32 1.0, %v6757_v62  ;;  %v8049_v32 = vld [vmem:[#allocation9 + $0x8c] ss:$16 sps:$4 sm:$0xff]   ;;  %v8053_v62 = vld [vmem:[#allocation9 + $0x88] ss:$16 sps:$4 sm:$0xff]  }
 0x7c1   :  { %6762 = vrcp.f32 %v2803_v39  ;;  %v8065_v39 = vld [vmem:[#allocation9 + $0xa8] ss:$16 sps:$4 sm:$0xff]  }
 0x7c8   :  { %v6759_v18 = vpop.eup %6758 }
 0x7c9   :  { %v2812_v22 = vmul.f32 %v6759_v18, %v6755_v29  ;;  %v6761_v31 = vpop.eup %6760  ;;  %v8051_v29 = vld [vmem:[#allocation9 + $0x80] ss:$16 sps:$4 sm:$0xff]   ;;  %v8059_v18 = vld [vmem:[#allocation9 + $0xa4] ss:$16 sps:$4 sm:$0xff]  }
 0x7ca   :  { %v2811_v20 = vmul.f32 %v6761_v31, %v7949_v47  ;;  %v6444_v47 = vld [vmem:[#allocation8 + $0x20] ss:$16 sps:$4 sm:$0xff]  }
 0x7cb   :  { %v6763_v2 = vpop.eup %6762  ;;  %v8063_v31 = vld [vmem:[#allocation9 + $0xa0] ss:$16 sps:$4 sm:$0xff]  }
 0x7cc   :  { %v7978_v43 = vadd.f32 %v2812_v22, %v2811_v20  ;;  %v8061_v22 = vld [vmem:[#allocation9 + $0xac] ss:$16 sps:$4 sm:$0xff]   ;;  %v8071_v20 = vld [vmem:[#allocation9 + $0xc4] ss:$16 sps:$4 sm:$0xff]  }
 0x7ce   :  { %6764 = vtanh.f32 %v7978_v43 }
 0x7d8   :  { %v6765_v33 = vpop.eup %6764 }
 0x7d9   :  { %v7981_v40 = vmul.f32 %v6765_v33, %v6763_v2  ;;  %v8073_v2 = vld [vmem:[#allocation9 + $0xcc] ss:$16 sps:$4 sm:$0xff]   ;;  %v8075_v33 = vld [vmem:[#allocation9 + $0xc0] ss:$16 sps:$4 sm:$0xff]  }
 0x7db   :  { %v2821_v49 = vpack.c.bf16 %v7981_v40, %v7981_v40 }
 0x7dd   :  { %3047 = vmatmul.mubr.bf16.vlgmr.msra.gmra.mrb[44].mxu1 %v2821_v49  ;;  %3088 = vmatmul.mubr.bf16.vlgmr.msra.gmra.mrb[48].mxu0 %v2821_v49  ;;  %v8085_v49 = vld [vmem:[#allocation9 + $0xec] ss:$16 sps:$4 sm:$0xff]  }
 0x7de   :  { %3352 = vmatpush1.bf16.msra.mxu1 %v6438_v52  ;;  %3425 = vmatpush1.bf16.msra.mxu0 %v6441_v1  ;;  %v8077_v52 = vld [vmem:[#allocation9 + $0xc8] ss:$16 sps:$4 sm:$0xff]   ;;  %v8083_v1 = vld [vmem:[#allocation9 + $0xe4] ss:$16 sps:$4 sm:$0xff]  }
 0x7df   :  { %3353 = vmatprep.subr.bf16.mxu1 %v6446_v51  ;;  %3426 = vmatprep.subr.bf16.mxu0 %v6449_v25  ;;  %v8087_v51 = vld [vmem:[#allocation9 + $0xe0] ss:$16 sps:$4 sm:$0xff]   ;;  %v8089_v25 = vld [vmem:[#allocation9 + $0xe8] ss:$16 sps:$4 sm:$0xff]  }
 0x7e0   :  { %3383 = vmatprep.mubr.bf16.mxu1 %v8813_v19  ;;  %3456 = vmatprep.mubr.bf16.mxu0 %v8813_v19 }
 0x7e2   :  { %3354 = vmatpush1.bf16.msra.mxu1 %v6444_v47  ;;  %3427 = vmatpush1.bf16.msra.mxu0 %v6447_v23 }
 0x7e3   :  { %3355 = vmatprep.subr.bf16.mxu1 %v6452_v59  ;;  %3428 = vmatprep.subr.bf16.mxu0 %v6455_v38  ;;  %v8823_v59 = vld [vmem:[#allocation26_spill] sm:$0xff] }
 0x7e6   :  { %3356 = vmatpush1.bf16.msra.mxu1 %v6450_v61  ;;  %3429 = vmatpush1.bf16.msra.mxu0 %v6453_v56  ;;  %v8824_v61 = vld [vmem:[#allocation35_spill] sm:$0xff] }
 0x7e7   :  { %3357 = vmatprep.subr.bf16.mxu1 %v6458_v48  ;;  %3430 = vmatprep.subr.bf16.mxu0 %v6461_v55 }
 0x7ea   :  { %3358 = vmatpush1.bf16.msra.mxu1 %v6456_v34  ;;  %3431 = vmatpush1.bf16.msra.mxu0 %v6459_v26  ;;  %v8825_v34 = vld [vmem:[#allocation28_spill] sm:$0xff] }
 0x7eb   :  { %3359 = vmatprep.subr.bf16.mxu1 %v6464_v41  ;;  %3432 = vmatprep.subr.bf16.mxu0 %v6467_v42  ;;  %v8826_v41 = vld [vmem:[#allocation36_spill] sm:$0xff] }
 0x7ee   :  { %3360 = vmatpush1.bf16.msra.mxu1 %v6462_v45  ;;  %3433 = vmatpush1.bf16.msra.mxu0 %v6465_v46 }
 0x7ef   :  { %3361 = vmatprep.subr.bf16.mxu1 %v6470_v50  ;;  %3434 = vmatprep.subr.bf16.mxu0 %v6473_v53 }
 0x7f2   :  { %3362 = vmatpush1.bf16.msra.mxu1 %v6468_v58  ;;  %3435 = vmatpush1.bf16.msra.mxu0 %v6471_v60 }
 0x7f3   :  { %3363 = vmatprep.subr.bf16.mxu1 %v6476_v63  ;;  %3436 = vmatprep.subr.bf16.mxu0 %v6479_v0 }
 0x7f6   :  { %3364 = vmatpush1.bf16.msra.mxu1 %v6474_v36  ;;  %3437 = vmatpush1.bf16.msra.mxu0 %v6477_v35 }
 0x7f7   :  { %3365 = vmatprep.subr.bf16.mxu1 %v6482_v37  ;;  %3438 = vmatprep.subr.bf16.mxu0 %v6485_v3 }
 0x7fa   :  { %3366 = vmatpush1.bf16.msra.mxu1 %v6480_v4  ;;  %3439 = vmatpush1.bf16.msra.mxu0 %v6483_v5 }
 0x7fb   :  { %3725 = vmatprep.subr.bf16.mxu1 %v7999_v28  ;;  %3766 = vmatprep.subr.bf16.mxu0 %v8001_v54 }
 0x7fd   :  { %3384 = vmatmul.mubr.bf16.vlgmr.msra.gmra.mrb[48].mxu1 %v3134_v6  ;;  %3457 = vmatmul.mubr.bf16.vlgmr.msra.gmra.mrb[52].mxu0 %v3134_v6 }
 0x7fe   :  { %3393 = vmatprep.mubr.bf16.mxu1 %v8813_v19  ;;  %3466 = vmatprep.mubr.bf16.mxu0 %v8813_v19 }
 0x7ff   :  { %3726 = vmatpush1.bf16.msra.mxu1 %v8003_v21  ;;  %3767 = vmatpush1.bf16.msra.mxu0 %v8005_v30 }
 0x800   :  { %3727 = vmatprep.subr.bf16.mxu1 %v8011_v24  ;;  %3768 = vmatprep.subr.bf16.mxu0 %v8013_v27 }
 0x803   :  { %3728 = vmatpush1.bf16.msra.mxu1 %v8015_v9  ;;  %3769 = vmatpush1.bf16.msra.mxu0 %v8017_v10 }
 0x804   :  { %3729 = vmatprep.subr.bf16.mxu1 %v8023_v11  ;;  %3770 = vmatprep.subr.bf16.mxu0 %v8025_v12 }
 0x805   :  { %3394 = vmatmul.mubr.bf16.gmra.mrb[52].mxu1 %v3135_v7  ;;  %3467 = vmatmul.mubr.bf16.gmra.mrb[56].mxu0 %v3135_v7 }
 0x806   :  { %3403 = vmatprep.mubr.bf16.mxu1 %v8813_v19  ;;  %3476 = vmatprep.mubr.bf16.mxu0 %v8813_v19 }
 0x807   :  { %3730 = vmatpush1.bf16.msra.mxu1 %v8027_v13  ;;  %3771 = vmatpush1.bf16.msra.mxu0 %v8029_v14 }
 0x808   :  { %3731 = vmatprep.subr.bf16.mxu1 %v8035_v15  ;;  %3772 = vmatprep.subr.bf16.mxu0 %v8037_v16 }
 0x80b   :  { %3732 = vmatpush1.bf16.msra.mxu1 %v8039_v57  ;;  %3773 = vmatpush1.bf16.msra.mxu0 %v8041_v44 }
 0x80c   :  { %3733 = vmatprep.subr.bf16.mxu1 %v8047_v17  ;;  %3774 = vmatprep.subr.bf16.mxu0 %v8049_v32 }
 0x80d   :  { %3404 = vmatmul.mubr.bf16.gmra.mrb[56].mxu1 %v3136_v8  ;;  %3477 = vmatmul.mubr.bf16.gmra.mrb[60].mxu0 %v3136_v8 }
 0x80e   :  { %3413 = vmatprep.mubr.bf16.mxu1 %v8813_v19  ;;  %3486 = vmatprep.mubr.bf16.mxu0 %v8813_v19 }
 0x80f   :  { %3734 = vmatpush1.bf16.msra.mxu1 %v8051_v29  ;;  %3775 = vmatpush1.bf16.msra.mxu0 %v8053_v62 }
 0x810   :  { %3735 = vmatprep.subr.bf16.mxu1 %v8059_v18  ;;  %3776 = vmatprep.subr.bf16.mxu0 %v8061_v22 }
 0x813   :  { %3736 = vmatpush1.bf16.msra.mxu1 %v8063_v31  ;;  %3777 = vmatpush1.bf16.msra.mxu0 %v8065_v39 }
 0x814   :  { %3737 = vmatprep.subr.bf16.mxu1 %v8071_v20  ;;  %3778 = vmatprep.subr.bf16.mxu0 %v8073_v2 }
 0x817   :  { %3738 = vmatpush1.bf16.msra.mxu1 %v8075_v33  ;;  %3779 = vmatpush1.bf16.msra.mxu0 %v8077_v52 }
 0x818   :  { %3739 = vmatprep.subr.bf16.mxu1 %v8083_v1  ;;  %3780 = vmatprep.subr.bf16.mxu0 %v8085_v49 }
 0x81b   :  { %3740 = vmatpush1.bf16.msra.mxu1 %v8087_v51  ;;  %3781 = vmatpush1.bf16.msra.mxu0 %v8089_v25 }
 0x81c   :  { %3840 = vmatprep.subr.bf16.mxu1 %v7999_v28  ;;  %3881 = vmatprep.subr.bf16.mxu0 %v8001_v54 }
 0x8b0   :  { %v3048_v47 = vpop.f32.mrb[44].mxu1  ;;  %v3089_v23 = vpop.f32.mrb[48].mxu0 }
 0x8b1   :  { %v3096_v38 = vadd.f32 %v3048_v47, %v8823_v59  ;;  %v3098_v56 = vadd.f32 %v3089_v23, %v8824_v61  ;;  %v3050_v48 = vpop.f32.mrb[45].mxu1  ;;  %v3091_v55 = vpop.f32.mrb[49].mxu0 }
 0x8b2   :  { %v3097_v26 = vadd.f32 %v3050_v48, %v8825_v34  ;;  %v3099_v42 = vadd.f32 %v3091_v55, %v8826_v41  ;;  %v3052_v45 = vpop.f32.mrb[46].mxu1  ;;  %v3093_v46 = vpop.f32.mrb[50].mxu0 }
 0x8b3   :  { %v5947_v50 = vmul.f32 -1.442695, %v3096_v38  ;;  %v3053_v53 = vpop.f32.mrb[47].mxu1  ;;  %v3094_v58 = vpop.f32.mrb[51].mxu0  ;;  %v5949_v63 = vmul.f32 -1.442695, %v3098_v56 }
 0x8b4   :  { %v5948_v60 = vmul.f32 -1.442695, %v3097_v26 }
 0x8b5   :  { %6766 = vpow2.f32 %v5947_v50 }
 0x8b6   :  { %6768 = vpow2.f32 %v5948_v60 }
 0x8b7   :  { %6770 = vtanh.f32 %v3099_v42 }
 0x8b8   :  { %6772 = vpow2.f32 %v5949_v63 }
 0x8bf   :  { %v6767_v0 = vpop.eup %6766 }
 0x8c0   :  { %v3109_v36 = vadd.f32 1.0, %v6767_v0  ;;  %v6769_v35 = vpop.eup %6768 }
 0x8c1   :  { %v3110_v37 = vadd.f32 1.0, %v6769_v35  ;;  %v6771_v3 = vpop.eup %6770 }
 0x8c2   :  { %6774 = vrcp.f32 %v3109_v36  ;;  %v6773_v4 = vpop.eup %6772 }
 0x8c3   :  { %6776 = vrcp.f32 %v3110_v37  ;;  %v3111_v8 = vadd.f32 1.0, %v6773_v4 }
 0x8c5   :  { %6778 = vrcp.f32 %v3111_v8 }
 0x8cc   :  { %v6775_v5 = vpop.eup %6774 }
 0x8cd   :  { %v3120_v6 = vmul.f32 %v6775_v5, %v6771_v3  ;;  %v6777_v7 = vpop.eup %6776 }
 0x8ce   :  { %v3119_v47 = vmul.f32 %v6777_v7, %v7978_v43 }
 0x8cf   :  { %v6779_v60 = vpop.eup %6778 }
 0x8d0   :  { %v8102_v23 = vpop.f32.mrb[48].mxu1  ;;  %v8104_v59 = vpop.f32.mrb[52].mxu0  ;;  %v3121_v38 = vadd.f32 %v3120_v6, %v3119_v47 }
 0x8d1   :  { %v8106_v61 = vpop.f32.mrb[49].mxu1  ;;  %v8108_v56 = vpop.f32.mrb[53].mxu0 }
 0x8d2   :  { %v8110_v48 = vpop.f32.mrb[50].mxu1  ;;  %v8112_v55 = vpop.f32.mrb[54].mxu0  ;;  %6780 = vtanh.f32 %v3121_v38 }
 0x8d3   :  { %v8114_v34 = vpop.f32.mrb[51].mxu1  ;;  %v8116_v26 = vpop.f32.mrb[55].mxu0 }
 0x8d8   :  { %v8118_v43 = vpop.f32.mrb[52].mxu1  ;;  %v8120_v41 = vpop.f32.mrb[56].mxu0 }
 0x8d9   :  { %8827 = vst [vmem:[#allocation30_spill] sm:$0xff] %v8120_v41  ;;  %v8122_v42 = vpop.f32.mrb[53].mxu1  ;;  %v8124_v45 = vpop.f32.mrb[57].mxu0 }
 0x8da   :  { %8828 = vst [vmem:[#allocation22_spill] sm:$0xff] %v8122_v42  ;;  %8829 = vst [vmem:[#allocation31_spill] sm:$0xff] %v8124_v45  ;;  %v8126_v46 = vpop.f32.mrb[54].mxu1  ;;  %v8128_v50 = vpop.f32.mrb[58].mxu0 }
 0x8db   :  { %8830 = vst [vmem:[#allocation23_spill] sm:$0xff] %v8126_v46  ;;  %8831 = vst [vmem:[#allocation32_spill] sm:$0xff] %v8128_v50  ;;  %v8130_v53 = vpop.f32.mrb[55].mxu1  ;;  %v8132_v58 = vpop.f32.mrb[59].mxu0 }
 0x8dc   :  { %8832 = vst [vmem:[#allocation24_spill] sm:$0xff] %v8130_v53  ;;  %8833 = vst [vmem:[#allocation33_spill] sm:$0xff] %v8132_v58  ;;  %v6781_v63 = vpop.eup %6780 }
 0x8dd   :  { %v3123_v0 = vmul.f32 %v6781_v63, %v6779_v60 }
 0x8df   :  { %v3137_v37 = vpack.c.bf16 %v3123_v0, %v7981_v40  ;;  %v3125_v40 = vld [vmem:[%s8772_s8] sm:$0xf] }
 0x8e0   :  { %v8134_v36 = vpop.f32.mrb[56].mxu1  ;;  %v8136_v35 = vpop.f32.mrb[60].mxu0 }
 0x8e1   :  { %8834 = vst [vmem:[#allocation25_spill] sm:$0xff] %v8134_v36  ;;  %8835 = vst [vmem:[#allocation34_spill] sm:$0xff] %v8136_v35  ;;  %v8139_v3 = vpop.f32.mrb[57].mxu1  ;;  %v8141_v4 = vpop.f32.mrb[61].mxu0  ;;  %3414 = vmatmul.mubr.bf16.gmra.mrb[60].mxu1 %v3137_v37  ;;  %3487 = vmatmul.mubr.bf16.gmra.mrb[64].mxu0 %v3137_v37 }
 0x8e2   :  { %8836 = vst [vmem:[#allocation26_spill] sm:$0xff] %v8139_v3  ;;  %8837 = vst [vmem:[#allocation35_spill] sm:$0xff] %v8141_v4  ;;  %v8143_v5 = vpop.f32.mrb[58].mxu1  ;;  %v8145_v6 = vpop.f32.mrb[62].mxu0  ;;  %3757 = vmatprep.mubr.bf16.mxu1 %v8813_v19  ;;  %3798 = vmatprep.mubr.bf16.mxu0 %v8813_v19 }
 0x8e3   :  { %8838 = vst [vmem:[#allocation28_spill] sm:$0xff] %v8143_v5  ;;  %8839 = vst [vmem:[#allocation36_spill] sm:$0xff] %v8145_v6  ;;  %v8147_v7 = vpop.f32.mrb[59].mxu1  ;;  %v8149_v8 = vpop.f32.mrb[63].mxu0  ;;  %v8849_v6 = vld [vmem:[#allocation27_spill] sm:$0xff] }
 0x8e4   :  { %8840 = vst [vmem:[#allocation37_spill] sm:$0xff] %v8147_v7  ;;  %8841 = vst [vmem:[#allocation38_spill] sm:$0xff] %v8149_v8  ;;  %v8848_v8 = vld [vmem:[#allocation19_spill] sm:$0xff]  ;;  %v8208_v5 = vrot.slane %v3125_v40, %v8849_v6 }
 0x8e5   :  { %v8205_v7 = vrot.slane %v3125_v40, %v8848_v8 }
 0x8e6   :  { %v3459_v8 = vadd.f32 %v8104_v59, %v8208_v5 }
 0x8e9   :  { %3758 = vmatmul.mubr.bf16.vlgmr.msra.gmra.mrb[64].mxu1 %v8813_v19  ;;  %3799 = vmatmul.mubr.bf16.vlgmr.msra.gmra.mrb[68].mxu0 %v8813_v19 }
 0x8ea   :  { %3841 = vmatpush1.bf16.msra.mxu1 %v8003_v21  ;;  %3882 = vmatpush1.bf16.msra.mxu0 %v8005_v30 }
 0x8eb   :  { %3842 = vmatprep.subr.bf16.mxu1 %v8011_v24  ;;  %3883 = vmatprep.subr.bf16.mxu0 %v8013_v27 }
 0x8ec   :  { %3872 = vmatprep.mubr.bf16.mxu1 %v8813_v19  ;;  %3913 = vmatprep.mubr.bf16.mxu0 %v8813_v19 }
 0x8ee   :  { %3843 = vmatpush1.bf16.msra.mxu1 %v8015_v9  ;;  %3884 = vmatpush1.bf16.msra.mxu0 %v8017_v10 }
 0x8ef   :  { %3844 = vmatprep.subr.bf16.mxu1 %v8023_v11  ;;  %3885 = vmatprep.subr.bf16.mxu0 %v8025_v12 }
 0x8f2   :  { %3845 = vmatpush1.bf16.msra.mxu1 %v8027_v13  ;;  %3886 = vmatpush1.bf16.msra.mxu0 %v8029_v14 }
 0x8f3   :  { %3846 = vmatprep.subr.bf16.mxu1 %v8035_v15  ;;  %3887 = vmatprep.subr.bf16.mxu0 %v8037_v16 }
 0x8f6   :  { %3847 = vmatpush1.bf16.msra.mxu1 %v8039_v57  ;;  %3888 = vmatpush1.bf16.msra.mxu0 %v8041_v44 }
 0x8f7   :  { %3848 = vmatprep.subr.bf16.mxu1 %v8047_v17  ;;  %3889 = vmatprep.subr.bf16.mxu0 %v8049_v32 }
 0x8fa   :  { %3849 = vmatpush1.bf16.msra.mxu1 %v8051_v29  ;;  %3890 = vmatpush1.bf16.msra.mxu0 %v8053_v62 }
 0x8fb   :  { %3850 = vmatprep.subr.bf16.mxu1 %v8059_v18  ;;  %3891 = vmatprep.subr.bf16.mxu0 %v8061_v22 }
 0x8fe   :  { %3851 = vmatpush1.bf16.msra.mxu1 %v8063_v31  ;;  %3892 = vmatpush1.bf16.msra.mxu0 %v8065_v39 }
 0x8ff   :  { %3852 = vmatprep.subr.bf16.mxu1 %v8071_v20  ;;  %3893 = vmatprep.subr.bf16.mxu0 %v8073_v2 }
 0x902   :  { %3853 = vmatpush1.bf16.msra.mxu1 %v8075_v33  ;;  %3894 = vmatpush1.bf16.msra.mxu0 %v8077_v52 }
 0x903   :  { %3854 = vmatprep.subr.bf16.mxu1 %v8083_v1  ;;  %3895 = vmatprep.subr.bf16.mxu0 %v8085_v49 }
 0x906   :  { %3855 = vmatpush1.bf16.msra.mxu1 %v8087_v51  ;;  %3896 = vmatpush1.bf16.msra.mxu0 %v8089_v25 }
 0x907   :  { %3955 = vmatprep.subr.bf16.mxu1 %v7999_v28  ;;  %3996 = vmatprep.subr.bf16.mxu0 %v8001_v54 }
 0x9b4   :  { %v8192_v47 = vpop.f32.mrb[60].mxu1  ;;  %v8194_v38 = vpop.f32.mrb[64].mxu0 }
 0x9b5   :  { %8842 = vst [vmem:[#allocation39_spill] sm:$0xff] %v8192_v47  ;;  %8843 = vst [vmem:[#allocation40_spill] sm:$0xff] %v8194_v38  ;;  %v8196_v60 = vpop.f32.mrb[61].mxu1  ;;  %v8198_v63 = vpop.f32.mrb[65].mxu0  ;;  %v8852_v47 = vld [vmem:[#allocation20_spill] sm:$0xff] }
 0x9b6   :  { %8844 = vst [vmem:[#allocation41_spill] sm:$0xff] %v8196_v60  ;;  %8845 = vst [vmem:[#allocation42_spill] sm:$0xff] %v8198_v63  ;;  %v8200_v0 = vpop.f32.mrb[62].mxu1  ;;  %v8202_v37 = vpop.f32.mrb[66].mxu0  ;;  %v8215_v38 = vrot.slane %v3125_v40, %v8852_v47  ;;  %v8853_v60 = vld [vmem:[#allocation29_spill] sm:$0xff] }
 0x9b7   :  { %8846 = vst [vmem:[#allocation43_spill] sm:$0xff] %v8200_v0  ;;  %8847 = vst [vmem:[#allocation44_spill] sm:$0xff] %v8202_v37  ;;  %v8210_v4 = vpop.f32.mrb[63].mxu1  ;;  %v8212_v3 = vpop.f32.mrb[67].mxu0  ;;  %v8218_v35 = vrot.slane %v3125_v40, %v8853_v60  ;;  %v3386_v0 = vadd.f32 %v8102_v23, %v8205_v7 }
 0x9b8   :  { %8850 = vst [vmem:[#allocation45_spill] sm:$0xff] %v8210_v4  ;;  %8851 = vst [vmem:[#allocation46_spill] sm:$0xff] %v8212_v3  ;;  %v3388_v6 = vadd.f32 %v8106_v61, %v8215_v38 }
 0x9b9   :  { %v3461_v4 = vadd.f32 %v8108_v56, %v8218_v35 }
 0x9bc   :  { %v3759_v37 = vpop.f32.mrb[64].mxu1  ;;  %v3800_v3 = vpop.f32.mrb[68].mxu0 }
 0x9bd   :  { %v3807_v63 = vadd.f32 %v3759_v37, %v3386_v0  ;;  %v3809_v47 = vadd.f32 %v3800_v3, %v3459_v8  ;;  %v3761_v36 = vpop.f32.mrb[65].mxu1  ;;  %v3802_v58 = vpop.f32.mrb[69].mxu0  ;;  %v3392_v0 = vadd.f32 %v8114_v34, %v8215_v38  ;;  %v3465_v37 = vadd.f32 %v8116_v26, %v8218_v35 }
 0x9be   :  { %v3808_v40 = vadd.f32 %v3761_v36, %v3388_v6  ;;  %v3810_v60 = vadd.f32 %v3802_v58, %v3461_v4  ;;  %v3763_v53 = vpop.f32.mrb[66].mxu1  ;;  %v3804_v50 = vpop.f32.mrb[70].mxu0 }
 0x9bf   :  { %v6014_v23 = vmul.f32 -1.442695, %v3807_v63  ;;  %v3764_v46 = vpop.f32.mrb[67].mxu1  ;;  %v3805_v45 = vpop.f32.mrb[71].mxu0  ;;  %v6016_v61 = vmul.f32 -1.442695, %v3809_v47  ;;  %v3463_v63 = vadd.f32 %v8112_v55, %v8208_v5 }
 0x9c0   :  { %v6015_v59 = vmul.f32 -1.442695, %v3808_v40 }
 0x9c1   :  { %6782 = vpow2.f32 %v6014_v23 }
 0x9c2   :  { %6784 = vpow2.f32 %v6015_v59 }
 0x9c3   :  { %6786 = vtanh.f32 %v3810_v60 }
 0x9c4   :  { %6788 = vpow2.f32 %v6016_v61 }
 0x9cb   :  { %v6783_v42 = vpop.eup %6782 }
 0x9cc   :  { %v3820_v41 = vadd.f32 1.0, %v6783_v42  ;;  %v6785_v56 = vpop.eup %6784 }
 0x9cd   :  { %v3821_v3 = vadd.f32 1.0, %v6785_v56  ;;  %v6787_v8 = vpop.eup %6786 }
 0x9ce   :  { %6790 = vrcp.f32 %v3820_v41  ;;  %v6789_v36 = vpop.eup %6788  ;;  %v3390_v41 = vadd.f32 %v8110_v48, %v8205_v7 }
 0x9cf   :  { %6792 = vrcp.f32 %v3821_v3  ;;  %v3822_v4 = vadd.f32 1.0, %v6789_v36 }
 0x9d1   :  { %6794 = vrcp.f32 %v3822_v4 }
 0x9d8   :  { %v6791_v58 = vpop.eup %6790 }
 0x9d9   :  { %v3831_v53 = vmul.f32 %v6791_v58, %v6787_v8  ;;  %v6793_v50 = vpop.eup %6792 }
 0x9da   :  { %v3830_v46 = vmul.f32 0.0, %v6793_v50 }
 0x9db   :  { %v6795_v6 = vpop.eup %6794 }
 0x9dc   :  { %v8228_v45 = vadd.f32 %v3831_v53, %v3830_v46 }
 0x9de   :  { %6796 = vtanh.f32 %v8228_v45 }
 0x9e8   :  { %v6797_v42 = vpop.eup %6796 }
 0x9e9   :  { %v3834_v47 = vmul.f32 %v6797_v42, %v6795_v6 }
 0x9eb   :  { %v3839_v60 = vpack.c.bf16 %v3834_v47, %v3834_v47 }
 0x9ed   :  { %3873 = vmatmul.mubr.bf16.vlgmr.msra.gmra.mrb[68].mxu1 %v3839_v60  ;;  %3914 = vmatmul.mubr.bf16.vlgmr.msra.gmra.mrb[72].mxu0 %v3839_v60 }
 0x9ee   :  { %3956 = vmatpush1.bf16.msra.mxu1 %v8003_v21  ;;  %3997 = vmatpush1.bf16.msra.mxu0 %v8005_v30 }
 0x9ef   :  { %3957 = vmatprep.subr.bf16.mxu1 %v8011_v24  ;;  %3998 = vmatprep.subr.bf16.mxu0 %v8013_v27 }
 0x9f0   :  { %3987 = vmatprep.mubr.bf16.mxu1 %v8813_v19  ;;  %4028 = vmatprep.mubr.bf16.mxu0 %v8813_v19 }
 0x9f2   :  { %3958 = vmatpush1.bf16.msra.mxu1 %v8015_v9  ;;  %3999 = vmatpush1.bf16.msra.mxu0 %v8017_v10 }
 0x9f3   :  { %3959 = vmatprep.subr.bf16.mxu1 %v8023_v11  ;;  %4000 = vmatprep.subr.bf16.mxu0 %v8025_v12 }
 0x9f6   :  { %3960 = vmatpush1.bf16.msra.mxu1 %v8027_v13  ;;  %4001 = vmatpush1.bf16.msra.mxu0 %v8029_v14 }
 0x9f7   :  { %3961 = vmatprep.subr.bf16.mxu1 %v8035_v15  ;;  %4002 = vmatprep.subr.bf16.mxu0 %v8037_v16 }
 0x9fa   :  { %3962 = vmatpush1.bf16.msra.mxu1 %v8039_v57  ;;  %4003 = vmatpush1.bf16.msra.mxu0 %v8041_v44 }
 0x9fb   :  { %3963 = vmatprep.subr.bf16.mxu1 %v8047_v17  ;;  %4004 = vmatprep.subr.bf16.mxu0 %v8049_v32 }
 0x9fe   :  { %3964 = vmatpush1.bf16.msra.mxu1 %v8051_v29  ;;  %4005 = vmatpush1.bf16.msra.mxu0 %v8053_v62 }
 0x9ff   :  { %3965 = vmatprep.subr.bf16.mxu1 %v8059_v18  ;;  %4006 = vmatprep.subr.bf16.mxu0 %v8061_v22 }
 0xa02   :  { %3966 = vmatpush1.bf16.msra.mxu1 %v8063_v31  ;;  %4007 = vmatpush1.bf16.msra.mxu0 %v8065_v39 }
 0xa03   :  { %3967 = vmatprep.subr.bf16.mxu1 %v8071_v20  ;;  %4008 = vmatprep.subr.bf16.mxu0 %v8073_v2 }
 0xa06   :  { %3968 = vmatpush1.bf16.msra.mxu1 %v8075_v33  ;;  %4009 = vmatpush1.bf16.msra.mxu0 %v8077_v52 }
 0xa07   :  { %3969 = vmatprep.subr.bf16.mxu1 %v8083_v1  ;;  %4010 = vmatprep.subr.bf16.mxu0 %v8085_v49 }
 0xa0a   :  { %3970 = vmatpush1.bf16.msra.mxu1 %v8087_v51  ;;  %4011 = vmatpush1.bf16.msra.mxu0 %v8089_v25 }
 0xa0b   :  { %4070 = vmatprep.subr.bf16.mxu1 %v7999_v28  ;;  %4111 = vmatprep.subr.bf16.mxu0 %v8001_v54 }
 0xac0   :  { %v3874_v40 = vpop.f32.mrb[68].mxu1  ;;  %v3915_v23 = vpop.f32.mrb[72].mxu0 }
 0xac1   :  { %v3922_v59 = vadd.f32 %v3874_v40, %v3390_v41  ;;  %v3924_v61 = vadd.f32 %v3915_v23, %v3463_v63  ;;  %v3876_v56 = vpop.f32.mrb[69].mxu1  ;;  %v3917_v3 = vpop.f32.mrb[73].mxu0 }
 0xac2   :  { %v3923_v8 = vadd.f32 %v3876_v56, %v3392_v0  ;;  %v3925_v36 = vadd.f32 %v3917_v3, %v3465_v37  ;;  %v3878_v58 = vpop.f32.mrb[70].mxu1  ;;  %v3919_v53 = vpop.f32.mrb[74].mxu0 }
 0xac3   :  { %v6017_v48 = vmul.f32 -1.442695, %v3922_v59  ;;  %v3879_v50 = vpop.f32.mrb[71].mxu1  ;;  %v3920_v4 = vpop.f32.mrb[75].mxu0  ;;  %v6019_v34 = vmul.f32 -1.442695, %v3924_v61 }
 0xac4   :  { %v6018_v55 = vmul.f32 -1.442695, %v3923_v8  ;;  %v8854_v8 = vld [vmem:[#allocation30_spill] sm:$0xff] }
 0xac5   :  { %6798 = vpow2.f32 %v6017_v48  ;;  %v8855_v58 = vld [vmem:[#allocation22_spill] sm:$0xff]  ;;  %v8856_v48 = vld [vmem:[#allocation31_spill] sm:$0xff] }
 0xac6   :  { %6800 = vpow2.f32 %v6018_v55  ;;  %v3398_v53 = vadd.f32 %v8855_v58, %v8215_v38  ;;  %v3471_v50 = vadd.f32 %v8856_v48, %v8218_v35 }
 0xac7   :  { %6802 = vtanh.f32 %v3925_v36  ;;  %v3469_v36 = vadd.f32 %v8854_v8, %v8208_v5 }
 0xac8   :  { %6804 = vpow2.f32 %v6019_v34 }
 0xacf   :  { %v6799_v46 = vpop.eup %6798 }
 0xad0   :  { %v3935_v6 = vadd.f32 1.0, %v6799_v46  ;;  %v6801_v26 = vpop.eup %6800 }
 0xad1   :  { %v3936_v42 = vadd.f32 1.0, %v6801_v26  ;;  %v6803_v47 = vpop.eup %6802 }
 0xad2   :  { %6806 = vrcp.f32 %v3935_v6  ;;  %v6805_v60 = vpop.eup %6804 }
 0xad3   :  { %6808 = vrcp.f32 %v3936_v42  ;;  %v3937_v37 = vadd.f32 1.0, %v6805_v60 }
 0xad5   :  { %6810 = vrcp.f32 %v3937_v37 }
 0xadc   :  { %v6807_v41 = vpop.eup %6806 }
 0xadd   :  { %v3946_v63 = vmul.f32 %v6807_v41, %v6803_v47  ;;  %v6809_v0 = vpop.eup %6808 }
 0xade   :  { %v3945_v40 = vmul.f32 %v6809_v0, %v8228_v45  ;;  %v3396_v45 = vadd.f32 %v8118_v43, %v8205_v7 }
 0xadf   :  { %v6811_v59 = vpop.eup %6810 }
 0xae0   :  { %v8274_v23 = vadd.f32 %v3946_v63, %v3945_v40 }
 0xae2   :  { %6812 = vtanh.f32 %v8274_v23 }
 0xaec   :  { %v6813_v61 = vpop.eup %6812 }
 0xaed   :  { %v3949_v56 = vmul.f32 %v6813_v61, %v6811_v59 }
 0xaef   :  { %v3954_v3 = vpack.c.bf16 %v3949_v56, %v3949_v56 }
 0xaf1   :  { %3988 = vmatmul.mubr.bf16.vlgmr.msra.gmra.mrb[72].mxu1 %v3954_v3  ;;  %4029 = vmatmul.mubr.bf16.vlgmr.msra.gmra.mrb[76].mxu0 %v3954_v3 }
 0xaf2   :  { %4071 = vmatpush1.bf16.msra.mxu1 %v8003_v21  ;;  %4112 = vmatpush1.bf16.msra.mxu0 %v8005_v30 }
 0xaf3   :  { %4072 = vmatprep.subr.bf16.mxu1 %v8011_v24  ;;  %4113 = vmatprep.subr.bf16.mxu0 %v8013_v27 }
 0xaf4   :  { %4102 = vmatprep.mubr.bf16.mxu1 %v8813_v19  ;;  %4143 = vmatprep.mubr.bf16.mxu0 %v8813_v19 }
 0xaf6   :  { %4073 = vmatpush1.bf16.msra.mxu1 %v8015_v9  ;;  %4114 = vmatpush1.bf16.msra.mxu0 %v8017_v10 }
 0xaf7   :  { %4074 = vmatprep.subr.bf16.mxu1 %v8023_v11  ;;  %4115 = vmatprep.subr.bf16.mxu0 %v8025_v12 }
 0xafa   :  { %4075 = vmatpush1.bf16.msra.mxu1 %v8027_v13  ;;  %4116 = vmatpush1.bf16.msra.mxu0 %v8029_v14 }
 0xafb   :  { %4076 = vmatprep.subr.bf16.mxu1 %v8035_v15  ;;  %4117 = vmatprep.subr.bf16.mxu0 %v8037_v16 }
 0xafe   :  { %4077 = vmatpush1.bf16.msra.mxu1 %v8039_v57  ;;  %4118 = vmatpush1.bf16.msra.mxu0 %v8041_v44 }
 0xaff   :  { %4078 = vmatprep.subr.bf16.mxu1 %v8047_v17  ;;  %4119 = vmatprep.subr.bf16.mxu0 %v8049_v32 }
 0xb02   :  { %4079 = vmatpush1.bf16.msra.mxu1 %v8051_v29  ;;  %4120 = vmatpush1.bf16.msra.mxu0 %v8053_v62 }
 0xb03   :  { %4080 = vmatprep.subr.bf16.mxu1 %v8059_v18  ;;  %4121 = vmatprep.subr.bf16.mxu0 %v8061_v22 }
 0xb06   :  { %4081 = vmatpush1.bf16.msra.mxu1 %v8063_v31  ;;  %4122 = vmatpush1.bf16.msra.mxu0 %v8065_v39 }
 0xb07   :  { %4082 = vmatprep.subr.bf16.mxu1 %v8071_v20  ;;  %4123 = vmatprep.subr.bf16.mxu0 %v8073_v2 }
 0xb0a   :  { %4083 = vmatpush1.bf16.msra.mxu1 %v8075_v33  ;;  %4124 = vmatpush1.bf16.msra.mxu0 %v8077_v52 }
 0xb0b   :  { %4084 = vmatprep.subr.bf16.mxu1 %v8083_v1  ;;  %4125 = vmatprep.subr.bf16.mxu0 %v8085_v49 }
 0xb0e   :  { %4085 = vmatpush1.bf16.msra.mxu1 %v8087_v51  ;;  %4126 = vmatpush1.bf16.msra.mxu0 %v8089_v25 }
 0xb0f   :  { %4185 = vmatprep.subr.bf16.mxu1 %v7999_v28  ;;  %4226 = vmatprep.subr.bf16.mxu0 %v8001_v54 }
 0xbc4   :  { %v3989_v4 = vpop.f32.mrb[72].mxu1  ;;  %v4030_v55 = vpop.f32.mrb[76].mxu0 }
 0xbc5   :  { %v4037_v34 = vadd.f32 %v3989_v4, %v3396_v45  ;;  %v4039_v46 = vadd.f32 %v4030_v55, %v3469_v36  ;;  %v3991_v6 = vpop.f32.mrb[73].mxu1  ;;  %v4032_v26 = vpop.f32.mrb[77].mxu0 }
 0xbc6   :  { %v4038_v42 = vadd.f32 %v3991_v6, %v3398_v53  ;;  %v4040_v47 = vadd.f32 %v4032_v26, %v3471_v50  ;;  %v3993_v60 = vpop.f32.mrb[74].mxu1  ;;  %v4034_v41 = vpop.f32.mrb[78].mxu0 }
 0xbc7   :  { %v6020_v43 = vmul.f32 -1.442695, %v4037_v34  ;;  %v3994_v63 = vpop.f32.mrb[75].mxu1  ;;  %v4035_v0 = vpop.f32.mrb[79].mxu0  ;;  %v6022_v40 = vmul.f32 -1.442695, %v4039_v46 }
 0xbc8   :  { %v6021_v37 = vmul.f32 -1.442695, %v4038_v42  ;;  %v8858_v42 = vld [vmem:[#allocation32_spill] sm:$0xff] }
 0xbc9   :  { %6814 = vpow2.f32 %v6020_v43  ;;  %v8859_v60 = vld [vmem:[#allocation24_spill] sm:$0xff]  ;;  %v8860_v43 = vld [vmem:[#allocation33_spill] sm:$0xff] }
 0xbca   :  { %6816 = vpow2.f32 %v6021_v37  ;;  %v3402_v41 = vadd.f32 %v8859_v60, %v8215_v38  ;;  %v3475_v63 = vadd.f32 %v8860_v43, %v8218_v35 }
 0xbcb   :  { %6818 = vtanh.f32 %v4040_v47  ;;  %v3473_v47 = vadd.f32 %v8858_v42, %v8208_v5 }
 0xbcc   :  { %6820 = vpow2.f32 %v6022_v40 }
 0xbd3   :  { %v6815_v59 = vpop.eup %6814 }
 0xbd4   :  { %v4050_v61 = vadd.f32 1.0, %v6815_v59  ;;  %v6817_v56 = vpop.eup %6816 }
 0xbd5   :  { %v4051_v3 = vadd.f32 1.0, %v6817_v56  ;;  %v6819_v45 = vpop.eup %6818 }
 0xbd6   :  { %6822 = vrcp.f32 %v4050_v61  ;;  %v6821_v8 = vpop.eup %6820 }
 0xbd7   :  { %6824 = vrcp.f32 %v4051_v3  ;;  %v4052_v48 = vadd.f32 1.0, %v6821_v8 }
 0xbd9   :  { %6826 = vrcp.f32 %v4052_v48 }
 0xbe0   :  { %v6823_v36 = vpop.eup %6822 }
 0xbe1   :  { %v4061_v58 = vmul.f32 %v6823_v36, %v6819_v45  ;;  %v6825_v53 = vpop.eup %6824 }
 0xbe2   :  { %v4060_v50 = vmul.f32 %v6825_v53, %v8274_v23  ;;  %v8857_v23 = vld [vmem:[#allocation23_spill] sm:$0xff] }
 0xbe3   :  { %v6827_v55 = vpop.eup %6826  ;;  %v3400_v26 = vadd.f32 %v8857_v23, %v8205_v7 }
 0xbe4   :  { %v8320_v4 = vadd.f32 %v4061_v58, %v4060_v50 }
 0xbe6   :  { %6828 = vtanh.f32 %v8320_v4 }
 0xbf0   :  { %v6829_v34 = vpop.eup %6828 }
 0xbf1   :  { %v4064_v46 = vmul.f32 %v6829_v34, %v6827_v55 }
 0xbf3   :  { %v4069_v6 = vpack.c.bf16 %v4064_v46, %v4064_v46 }
 0xbf5   :  { %4103 = vmatmul.mubr.bf16.vlgmr.msra.gmra.mrb[76].mxu1 %v4069_v6  ;;  %4144 = vmatmul.mubr.bf16.vlgmr.msra.gmra.mrb[80].mxu0 %v4069_v6 }
 0xbf6   :  { %4186 = vmatpush1.bf16.msra.mxu1 %v8003_v21  ;;  %4227 = vmatpush1.bf16.msra.mxu0 %v8005_v30 }
 0xbf7   :  { %4187 = vmatprep.subr.bf16.mxu1 %v8011_v24  ;;  %4228 = vmatprep.subr.bf16.mxu0 %v8013_v27 }
 0xbf8   :  { %4217 = vmatprep.mubr.bf16.mxu1 %v8813_v19  ;;  %4258 = vmatprep.mubr.bf16.mxu0 %v8813_v19 }
 0xbfa   :  { %4188 = vmatpush1.bf16.msra.mxu1 %v8015_v9  ;;  %4229 = vmatpush1.bf16.msra.mxu0 %v8017_v10 }
 0xbfb   :  { %4189 = vmatprep.subr.bf16.mxu1 %v8023_v11  ;;  %4230 = vmatprep.subr.bf16.mxu0 %v8025_v12 }
 0xbfe   :  { %4190 = vmatpush1.bf16.msra.mxu1 %v8027_v13  ;;  %4231 = vmatpush1.bf16.msra.mxu0 %v8029_v14 }
 0xbff   :  { %4191 = vmatprep.subr.bf16.mxu1 %v8035_v15  ;;  %4232 = vmatprep.subr.bf16.mxu0 %v8037_v16 }
 0xc02   :  { %4192 = vmatpush1.bf16.msra.mxu1 %v8039_v57  ;;  %4233 = vmatpush1.bf16.msra.mxu0 %v8041_v44 }
 0xc03   :  { %4193 = vmatprep.subr.bf16.mxu1 %v8047_v17  ;;  %4234 = vmatprep.subr.bf16.mxu0 %v8049_v32 }
 0xc06   :  { %4194 = vmatpush1.bf16.msra.mxu1 %v8051_v29  ;;  %4235 = vmatpush1.bf16.msra.mxu0 %v8053_v62 }
 0xc07   :  { %4195 = vmatprep.subr.bf16.mxu1 %v8059_v18  ;;  %4236 = vmatprep.subr.bf16.mxu0 %v8061_v22 }
 0xc0a   :  { %4196 = vmatpush1.bf16.msra.mxu1 %v8063_v31  ;;  %4237 = vmatpush1.bf16.msra.mxu0 %v8065_v39 }
 0xc0b   :  { %4197 = vmatprep.subr.bf16.mxu1 %v8071_v20  ;;  %4238 = vmatprep.subr.bf16.mxu0 %v8073_v2 }
 0xc0e   :  { %4198 = vmatpush1.bf16.msra.mxu1 %v8075_v33  ;;  %4239 = vmatpush1.bf16.msra.mxu0 %v8077_v52 }
 0xc0f   :  { %4199 = vmatprep.subr.bf16.mxu1 %v8083_v1  ;;  %4240 = vmatprep.subr.bf16.mxu0 %v8085_v49 }
 0xc12   :  { %4200 = vmatpush1.bf16.msra.mxu1 %v8087_v51  ;;  %4241 = vmatpush1.bf16.msra.mxu0 %v8089_v25 }
 0xc13   :  { %4300 = vmatprep.subr.bf16.mxu1 %v7999_v28  ;;  %4341 = vmatprep.subr.bf16.mxu0 %v8001_v54 }
 0xcc8   :  { %v4104_v0 = vpop.f32.mrb[76].mxu1  ;;  %v4145_v37 = vpop.f32.mrb[80].mxu0 }
 0xcc9   :  { %v4152_v40 = vadd.f32 %v4104_v0, %v3400_v26  ;;  %v4154_v59 = vadd.f32 %v4145_v37, %v3473_v47  ;;  %v4106_v61 = vpop.f32.mrb[77].mxu1  ;;  %v4147_v56 = vpop.f32.mrb[81].mxu0 }
 0xcca   :  { %v4153_v3 = vadd.f32 %v4106_v61, %v3402_v41  ;;  %v4155_v45 = vadd.f32 %v4147_v56, %v3475_v63  ;;  %v4108_v8 = vpop.f32.mrb[78].mxu1  ;;  %v4149_v36 = vpop.f32.mrb[82].mxu0 }
 0xccb   :  { %v6023_v58 = vmul.f32 -1.442695, %v4152_v40  ;;  %v4109_v53 = vpop.f32.mrb[79].mxu1  ;;  %v4150_v48 = vpop.f32.mrb[83].mxu0  ;;  %v6025_v55 = vmul.f32 -1.442695, %v4154_v59 }
 0xccc   :  { %v6024_v50 = vmul.f32 -1.442695, %v4153_v3  ;;  %v8415_v53 = vld [vmem:[#allocation9] ss:$16 sps:$4 sm:$0xff]   ;;  %v8418_v48 = vld [vmem:[#allocation9 + $0x8] ss:$16 sps:$4 sm:$0xff]  }
 0xccd   :  { %6830 = vpow2.f32 %v6023_v58 }
 0xcce   :  { %6832 = vpow2.f32 %v6024_v50  ;;  %v8421_v50 = vld [vmem:[#allocation9 + $0x24] ss:$16 sps:$4 sm:$0xff]  }
 0xccf   :  { %6834 = vtanh.f32 %v4155_v45 }
 0xcd0   :  { %6836 = vpow2.f32 %v6025_v55  ;;  %v8424_v55 = vld [vmem:[#allocation9 + $0x2c] ss:$16 sps:$4 sm:$0xff]  }
 0xcd7   :  { %v6831_v34 = vpop.eup %6830 }
 0xcd8   :  { %v4165_v46 = vadd.f32 1.0, %v6831_v34  ;;  %v6833_v6 = vpop.eup %6832  ;;  %v8429_v34 = vld [vmem:[#allocation9 + $0x20] ss:$16 sps:$4 sm:$0xff]  }
 0xcd9   :  { %v4166_v23 = vadd.f32 1.0, %v6833_v6  ;;  %v6835_v26 = vpop.eup %6834  ;;  %v8435_v6 = vld [vmem:[#allocation9 + $0x44] ss:$16 sps:$4 sm:$0xff]  }
 0xcda   :  { %6838 = vrcp.f32 %v4165_v46  ;;  %v6837_v42 = vpop.eup %6836  ;;  %v8432_v46 = vld [vmem:[#allocation9 + $0x28] ss:$16 sps:$4 sm:$0xff]  }
 0xcdb   :  { %6840 = vrcp.f32 %v4166_v23  ;;  %v4167_v43 = vadd.f32 1.0, %v6837_v42  ;;  %v8438_v23 = vld [vmem:[#allocation9 + $0x4c] ss:$16 sps:$4 sm:$0xff]   ;;  %v8444_v42 = vld [vmem:[#allocation9 + $0x48] ss:$16 sps:$4 sm:$0xff]  }
 0xcdd   :  { %6842 = vrcp.f32 %v4167_v43  ;;  %v8456_v43 = vld [vmem:[#allocation9 + $0x68] ss:$16 sps:$4 sm:$0xff]  }
 0xce4   :  { %v6839_v47 = vpop.eup %6838 }
 0xce5   :  { %v4176_v60 = vmul.f32 %v6839_v47, %v6835_v26  ;;  %v6841_v41 = vpop.eup %6840  ;;  %v8441_v26 = vld [vmem:[#allocation9 + $0x40] ss:$16 sps:$4 sm:$0xff]   ;;  %v8447_v47 = vld [vmem:[#allocation9 + $0x64] ss:$16 sps:$4 sm:$0xff]  }
 0xce6   :  { %v4175_v63 = vmul.f32 %v6841_v41, %v8320_v4  ;;  %v8453_v41 = vld [vmem:[#allocation9 + $0x60] ss:$16 sps:$4 sm:$0xff]  }
 0xce7   :  { %v6843_v37 = vpop.eup %6842 }
 0xce8   :  { %v8366_v0 = vadd.f32 %v4176_v60, %v4175_v63  ;;  %v8450_v60 = vld [vmem:[#allocation9 + $0x6c] ss:$16 sps:$4 sm:$0xff]   ;;  %v8459_v63 = vld [vmem:[#allocation9 + $0x84] ss:$16 sps:$4 sm:$0xff]  }
 0xcea   :  { %6844 = vtanh.f32 %v8366_v0 }
 0xcf4   :  { %v6845_v40 = vpop.eup %6844 }
 0xcf5   :  { %v4179_v59 = vmul.f32 %v6845_v40, %v6843_v37  ;;  %v8465_v37 = vld [vmem:[#allocation9 + $0x80] ss:$16 sps:$4 sm:$0xff]   ;;  %v8468_v40 = vld [vmem:[#allocation9 + $0x88] ss:$16 sps:$4 sm:$0xff]  }
 0xcf7   :  { %v4184_v61 = vpack.c.bf16 %v4179_v59, %v4179_v59  ;;  %v8471_v59 = vld [vmem:[#allocation9 + $0xa4] ss:$16 sps:$4 sm:$0xff]  }
 0xcf9   :  { %4218 = vmatmul.mubr.bf16.vlgmr.msra.gmra.mrb[80].mxu1 %v4184_v61  ;;  %4259 = vmatmul.mubr.bf16.vlgmr.msra.gmra.mrb[84].mxu0 %v4184_v61  ;;  %v8474_v61 = vld [vmem:[#allocation9 + $0xac] ss:$16 sps:$4 sm:$0xff]  }
 0xcfa   :  { %4301 = vmatpush1.bf16.msra.mxu1 %v8003_v21  ;;  %4342 = vmatpush1.bf16.msra.mxu0 %v8005_v30  ;;  %v8861_v21 = vld [vmem:[#allocation25_spill] sm:$0xff] }
 0xcfb   :  { %4302 = vmatprep.subr.bf16.mxu1 %v8011_v24  ;;  %4343 = vmatprep.subr.bf16.mxu0 %v8013_v27  ;;  %v3406_v30 = vadd.f32 %v8861_v21, %v8205_v7  ;;  %v8862_v24 = vld [vmem:[#allocation34_spill] sm:$0xff] }
 0xcfc   :  { %4332 = vmatprep.mubr.bf16.mxu1 %v8813_v19  ;;  %4373 = vmatprep.mubr.bf16.mxu0 %v8813_v19  ;;  %v3479_v27 = vadd.f32 %v8862_v24, %v8208_v5  ;;  %v8477_v21 = vld [vmem:[#allocation9 + $0xa0] ss:$16 sps:$4 sm:$0xff]   ;;  %v8483_v24 = vld [vmem:[#allocation9 + $0xc4] ss:$16 sps:$4 sm:$0xff]  }
 0xcfe   :  { %4303 = vmatpush1.bf16.msra.mxu1 %v8015_v9  ;;  %4344 = vmatpush1.bf16.msra.mxu0 %v8017_v10  ;;  %v8863_v9 = vld [vmem:[#allocation26_spill] sm:$0xff] }
 0xcff   :  { %4304 = vmatprep.subr.bf16.mxu1 %v8023_v11  ;;  %4345 = vmatprep.subr.bf16.mxu0 %v8025_v12  ;;  %v3408_v10 = vadd.f32 %v8863_v9, %v8215_v38  ;;  %v8864_v11 = vld [vmem:[#allocation35_spill] sm:$0xff]  ;;  %v8489_v9 = vld [vmem:[#allocation9 + $0xc0] ss:$16 sps:$4 sm:$0xff]  }
 0xd00   :  { %v3481_v12 = vadd.f32 %v8864_v11, %v8218_v35  ;;  %v8495_v11 = vld [vmem:[#allocation9 + $0xe4] ss:$16 sps:$4 sm:$0xff]  }
 0xd02   :  { %4305 = vmatpush1.bf16.msra.mxu1 %v8027_v13  ;;  %4346 = vmatpush1.bf16.msra.mxu0 %v8029_v14 }
 0xd03   :  { %4306 = vmatprep.subr.bf16.mxu1 %v8035_v15  ;;  %4347 = vmatprep.subr.bf16.mxu0 %v8037_v16 }
 0xd06   :  { %4307 = vmatpush1.bf16.msra.mxu1 %v8039_v57  ;;  %4348 = vmatpush1.bf16.msra.mxu0 %v8041_v44 }
 0xd07   :  { %4308 = vmatprep.subr.bf16.mxu1 %v8047_v17  ;;  %4349 = vmatprep.subr.bf16.mxu0 %v8049_v32 }
 0xd0a   :  { %4309 = vmatpush1.bf16.msra.mxu1 %v8051_v29  ;;  %4350 = vmatpush1.bf16.msra.mxu0 %v8053_v62 }
 0xd0b   :  { %4310 = vmatprep.subr.bf16.mxu1 %v8059_v18  ;;  %4351 = vmatprep.subr.bf16.mxu0 %v8061_v22 }
 0xd0e   :  { %4311 = vmatpush1.bf16.msra.mxu1 %v8063_v31  ;;  %4352 = vmatpush1.bf16.msra.mxu0 %v8065_v39 }
 0xd0f   :  { %4312 = vmatprep.subr.bf16.mxu1 %v8071_v20  ;;  %4353 = vmatprep.subr.bf16.mxu0 %v8073_v2 }
 0xd12   :  { %4313 = vmatpush1.bf16.msra.mxu1 %v8075_v33  ;;  %4354 = vmatpush1.bf16.msra.mxu0 %v8077_v52 }
 0xd13   :  { %4314 = vmatprep.subr.bf16.mxu1 %v8083_v1  ;;  %4355 = vmatprep.subr.bf16.mxu0 %v8085_v49 }
 0xd16   :  { %4315 = vmatpush1.bf16.msra.mxu1 %v8087_v51  ;;  %4356 = vmatpush1.bf16.msra.mxu0 %v8089_v25 }
 0xd17   :  { %4415 = vmatprep.subr.bf16.mxu1 %v7999_v28  ;;  %4456 = vmatprep.subr.bf16.mxu0 %v8001_v54 }
 0xdcc   :  { %v4219_v13 = vpop.f32.mrb[80].mxu1  ;;  %v4260_v14 = vpop.f32.mrb[84].mxu0 }
 0xdcd   :  { %v4267_v15 = vadd.f32 %v4219_v13, %v3406_v30  ;;  %v4269_v16 = vadd.f32 %v4260_v14, %v3479_v27  ;;  %v4221_v57 = vpop.f32.mrb[81].mxu1  ;;  %v4262_v28 = vpop.f32.mrb[85].mxu0  ;;  %v8480_v30 = vld [vmem:[#allocation9 + $0xa8] ss:$16 sps:$4 sm:$0xff]   ;;  %v8486_v27 = vld [vmem:[#allocation9 + $0xcc] ss:$16 sps:$4 sm:$0xff]  }
 0xdce   :  { %v4268_v44 = vadd.f32 %v4221_v57, %v3408_v10  ;;  %v4270_v54 = vadd.f32 %v4262_v28, %v3481_v12  ;;  %v4223_v17 = vpop.f32.mrb[82].mxu1  ;;  %v4264_v32 = vpop.f32.mrb[86].mxu0  ;;  %v8492_v10 = vld [vmem:[#allocation9 + $0xc8] ss:$16 sps:$4 sm:$0xff]   ;;  %v8498_v12 = vld [vmem:[#allocation9 + $0xec] ss:$16 sps:$4 sm:$0xff]  }
 0xdcf   :  { %v6026_v29 = vmul.f32 -1.442695, %v4267_v15  ;;  %v4224_v62 = vpop.f32.mrb[83].mxu1  ;;  %v4265_v18 = vpop.f32.mrb[87].mxu0  ;;  %v6028_v31 = vmul.f32 -1.442695, %v4269_v16 }
 0xdd0   :  { %v6027_v22 = vmul.f32 -1.442695, %v4268_v44  ;;  %v8501_v13 = vld [vmem:[#allocation9 + $0xe0] ss:$16 sps:$4 sm:$0xff]   ;;  %v8504_v14 = vld [vmem:[#allocation9 + $0xe8] ss:$16 sps:$4 sm:$0xff]  }
 0xdd1   :  { %6846 = vpow2.f32 %v6026_v29  ;;  %v6976_v15 = vld [vmem:[#allocation9 + $0x4] ss:$16 sps:$4 sm:$0xff]   ;;  %v6977_v16 = vld [vmem:[#allocation9 + $0xc] ss:$16 sps:$4 sm:$0xff]  }
 0xdd2   :  { %6848 = vpow2.f32 %v6027_v22  ;;  %v8865_v57 = vld [vmem:[#allocation28_spill] sm:$0xff]  ;;  %v8867_v17 = vld [vmem:[#allocation37_spill] sm:$0xff]  ;;  %v8868_v29 = vld [vmem:[#allocation38_spill] sm:$0xff] }
 0xdd3   :  { %6850 = vtanh.f32 %v4270_v54  ;;  %v3410_v28 = vadd.f32 %v8865_v57, %v8205_v7  ;;  %v8866_v44 = vld [vmem:[#allocation36_spill] sm:$0xff]  ;;  %v3412_v32 = vadd.f32 %v8867_v17, %v8215_v38  ;;  %v3485_v62 = vadd.f32 %v8868_v29, %v8218_v35 }
 0xdd4   :  { %6852 = vpow2.f32 %v6028_v31  ;;  %v3483_v54 = vadd.f32 %v8866_v44, %v8208_v5 }
 0xddb   :  { %v6847_v39 = vpop.eup %6846 }
 0xddc   :  { %v4280_v20 = vadd.f32 1.0, %v6847_v39  ;;  %v6849_v2 = vpop.eup %6848 }
 0xddd   :  { %v4281_v33 = vadd.f32 1.0, %v6849_v2  ;;  %v6851_v52 = vpop.eup %6850 }
 0xdde   :  { %6854 = vrcp.f32 %v4280_v20  ;;  %v6853_v1 = vpop.eup %6852 }
 0xddf   :  { %6856 = vrcp.f32 %v4281_v33  ;;  %v4282_v4 = vadd.f32 1.0, %v6853_v1 }
 0xde1   :  { %6858 = vrcp.f32 %v4282_v4 }
 0xde8   :  { %v6855_v49 = vpop.eup %6854 }
 0xde9   :  { %v4291_v51 = vmul.f32 %v6855_v49, %v6851_v52  ;;  %v6857_v25 = vpop.eup %6856 }
 0xdea   :  { %v4290_v56 = vmul.f32 %v6857_v25, %v8366_v0  ;;  %v8462_v0 = vld [vmem:[#allocation9 + $0x8c] ss:$16 sps:$4 sm:$0xff]  }
 0xdeb   :  { %v6859_v45 = vpop.eup %6858 }
 0xdec   :  { %v8412_v3 = vadd.f32 %v4291_v51, %v4290_v56 }
 0xdee   :  { %6860 = vtanh.f32 %v8412_v3 }
 0xdf8   :  { %v6861_v8 = vpop.eup %6860 }
 0xdf9   :  { %v4294_v36 = vmul.f32 %v6861_v8, %v6859_v45 }
 0xdfb   :  { %v4299_v58 = vpack.c.bf16 %v4294_v36, %v4294_v36 }
 0xdfd   :  { %4333 = vmatmul.mubr.bf16.vlgmr.msra.gmra.mrb[84].mxu1 %v4299_v58  ;;  %4374 = vmatmul.mubr.bf16.vlgmr.msra.gmra.mrb[88].mxu0 %v4299_v58 }
 0xdfe   :  { %4416 = vmatpush1.bf16.msra.mxu1 %v8415_v53  ;;  %4457 = vmatpush1.bf16.msra.mxu0 %v8418_v48 }
 0xdff   :  { %4417 = vmatprep.subr.bf16.mxu1 %v8421_v50  ;;  %4458 = vmatprep.subr.bf16.mxu0 %v8424_v55 }
 0xe00   :  { %4447 = vmatprep.mubr.bf16.mxu1 %v8813_v19  ;;  %4488 = vmatprep.mubr.bf16.mxu0 %v8813_v19 }
 0xe02   :  { %4418 = vmatpush1.bf16.msra.mxu1 %v8429_v34  ;;  %4459 = vmatpush1.bf16.msra.mxu0 %v8432_v46 }
 0xe03   :  { %4419 = vmatprep.subr.bf16.mxu1 %v8435_v6  ;;  %4460 = vmatprep.subr.bf16.mxu0 %v8438_v23 }
 0xe06   :  { %4420 = vmatpush1.bf16.msra.mxu1 %v8441_v26  ;;  %4461 = vmatpush1.bf16.msra.mxu0 %v8444_v42 }
 0xe07   :  { %4421 = vmatprep.subr.bf16.mxu1 %v8447_v47  ;;  %4462 = vmatprep.subr.bf16.mxu0 %v8450_v60 }
 0xe0a   :  { %4422 = vmatpush1.bf16.msra.mxu1 %v8453_v41  ;;  %4463 = vmatpush1.bf16.msra.mxu0 %v8456_v43 }
 0xe0b   :  { %4423 = vmatprep.subr.bf16.mxu1 %v8459_v63  ;;  %4464 = vmatprep.subr.bf16.mxu0 %v8462_v0 }
 0xe0e   :  { %4424 = vmatpush1.bf16.msra.mxu1 %v8465_v37  ;;  %4465 = vmatpush1.bf16.msra.mxu0 %v8468_v40 }
 0xe0f   :  { %4425 = vmatprep.subr.bf16.mxu1 %v8471_v59  ;;  %4466 = vmatprep.subr.bf16.mxu0 %v8474_v61 }
 0xe12   :  { %4426 = vmatpush1.bf16.msra.mxu1 %v8477_v21  ;;  %4467 = vmatpush1.bf16.msra.mxu0 %v8480_v30 }
 0xe13   :  { %4427 = vmatprep.subr.bf16.mxu1 %v8483_v24  ;;  %4468 = vmatprep.subr.bf16.mxu0 %v8486_v27 }
 0xe16   :  { %4428 = vmatpush1.bf16.msra.mxu1 %v8489_v9  ;;  %4469 = vmatpush1.bf16.msra.mxu0 %v8492_v10 }
 0xe17   :  { %4429 = vmatprep.subr.bf16.mxu1 %v8495_v11  ;;  %4470 = vmatprep.subr.bf16.mxu0 %v8498_v12 }
 0xe1a   :  { %4430 = vmatpush1.bf16.msra.mxu1 %v8501_v13  ;;  %4471 = vmatpush1.bf16.msra.mxu0 %v8504_v14 }
 0xe1b   :  { %4530 = vmatprep.subr.bf16.mxu1 %v6976_v15  ;;  %4571 = vmatprep.subr.bf16.mxu0 %v6977_v16 }
 0xed0   :  { %v4334_v18 = vpop.f32.mrb[84].mxu1  ;;  %v4375_v22 = vpop.f32.mrb[88].mxu0 }
 0xed1   :  { %v4382_v31 = vadd.f32 %v4334_v18, %v3410_v28  ;;  %v4384_v39 = vadd.f32 %v4375_v22, %v3483_v54  ;;  %v4336_v20 = vpop.f32.mrb[85].mxu1  ;;  %v4377_v2 = vpop.f32.mrb[89].mxu0 }
 0xed2   :  { %v4383_v33 = vadd.f32 %v4336_v20, %v3412_v32  ;;  %v4385_v52 = vadd.f32 %v4377_v2, %v3485_v62  ;;  %v4338_v1 = vpop.f32.mrb[86].mxu1  ;;  %v4379_v49 = vpop.f32.mrb[90].mxu0 }
 0xed3   :  { %v6029_v51 = vmul.f32 -1.442695, %v4382_v31  ;;  %v4339_v25 = vpop.f32.mrb[87].mxu1  ;;  %v4380_v4 = vpop.f32.mrb[91].mxu0  ;;  %v6031_v45 = vmul.f32 -1.442695, %v4384_v39 }
 0xed4   :  { %v6030_v56 = vmul.f32 -1.442695, %v4383_v33  ;;  %v6534_v4 = vld [vmem:[%s8773_s9] ss:$20 sps:$4 sm:$0xff]  }
 0xed5   :  { %6862 = vpow2.f32 %v6029_v51 }
 0xed6   :  { %6864 = vpow2.f32 %v6030_v56  ;;  %v6537_v56 = vld [vmem:[%s8773_s9 + $0x8] ss:$20 sps:$4 sm:$0xff]  }
 0xed7   :  { %6866 = vtanh.f32 %v4385_v52 }
 0xed8   :  { %6868 = vpow2.f32 %v6031_v45 }
 0xedf   :  { %v6863_v8 = vpop.eup %6862 }
 0xee0   :  { %v4395_v36 = vadd.f32 1.0, %v6863_v8  ;;  %v6865_v58 = vpop.eup %6864  ;;  %v6542_v8 = vld [vmem:[%s8773_s9 + $0x2c] ss:$20 sps:$4 sm:$0xff]  }
 0xee1   :  { %v4396_v15 = vadd.f32 1.0, %v6865_v58  ;;  %v6867_v16 = vpop.eup %6866  ;;  %v6540_v58 = vld [vmem:[%s8773_s9 + $0x28] ss:$20 sps:$4 sm:$0xff]  }
 0xee2   :  { %6870 = vrcp.f32 %v4395_v36  ;;  %v6869_v57 = vpop.eup %6868  ;;  %v6545_v36 = vld [vmem:[%s8773_s9 + $0x34] ss:$20 sps:$4 sm:$0xff]  }
 0xee3   :  { %6872 = vrcp.f32 %v4396_v15  ;;  %v4397_v17 = vadd.f32 1.0, %v6869_v57  ;;  %v6543_v15 = vld [vmem:[%s8773_s9 + $0x30] ss:$20 sps:$4 sm:$0xff]  }
 0xee4   :  { %v6551_v57 = vld [vmem:[%s8773_s9 + $0x5c] ss:$20 sps:$4 sm:$0xff]  }
 0xee5   :  { %6874 = vrcp.f32 %v4397_v17  ;;  %v6557_v17 = vld [vmem:[%s8773_s9 + $0x84] ss:$20 sps:$4 sm:$0xff]  }
 0xeec   :  { %v6871_v28 = vpop.eup %6870 }
 0xeed   :  { %v4406_v44 = vmul.f32 %v6871_v28, %v6867_v16  ;;  %v6873_v54 = vpop.eup %6872  ;;  %v6548_v16 = vld [vmem:[%s8773_s9 + $0x54] ss:$20 sps:$4 sm:$0xff]   ;;  %v6546_v28 = vld [vmem:[%s8773_s9 + $0x50] ss:$20 sps:$4 sm:$0xff]  }
 0xeee   :  { %v4405_v32 = vmul.f32 %v6873_v54, %v8412_v3  ;;  %v6536_v3 = vld [vmem:[%s8773_s9 + $0x4] ss:$20 sps:$4 sm:$0xff]   ;;  %v6554_v54 = vld [vmem:[%s8773_s9 + $0x7c] ss:$20 sps:$4 sm:$0xff]  }
 0xeef   :  { %v6875_v62 = vpop.eup %6874 }
 0xef0   :  { %v8516_v29 = vadd.f32 %v4406_v44, %v4405_v32  ;;  %v6549_v44 = vld [vmem:[%s8773_s9 + $0x58] ss:$20 sps:$4 sm:$0xff]  }
 0xef1   :  { %v6552_v32 = vld [vmem:[%s8773_s9 + $0x78] ss:$20 sps:$4 sm:$0xff]  }
 0xef2   :  { %6876 = vtanh.f32 %v8516_v29 }
 0xefc   :  { %v6877_v18 = vpop.eup %6876 }
 0xefd   :  { %v4409_v22 = vmul.f32 %v6877_v18, %v6875_v62  ;;  %v6560_v62 = vld [vmem:[%s8773_s9 + $0xa4] ss:$20 sps:$4 sm:$0xff]   ;;  %v6563_v18 = vld [vmem:[%s8773_s9 + $0xac] ss:$20 sps:$4 sm:$0xff]  }
 0xeff   :  { %v4414_v31 = vpack.c.bf16 %v4409_v22, %v4409_v22  ;;  %v6558_v22 = vld [vmem:[%s8773_s9 + $0xa0] ss:$20 sps:$4 sm:$0xff]  }
 0xf01   :  { %4448 = vmatmul.mubr.bf16.vlgmr.msra.gmra.mrb[88].mxu1 %v4414_v31  ;;  %4489 = vmatmul.mubr.bf16.vlgmr.msra.gmra.mrb[92].mxu0 %v4414_v31  ;;  %v6561_v31 = vld [vmem:[%s8773_s9 + $0xa8] ss:$20 sps:$4 sm:$0xff]  }
 0xf02   :  { %4531 = vmatpush1.bf16.msra.mxu1 %v8415_v53  ;;  %4572 = vmatpush1.bf16.msra.mxu0 %v8418_v48  ;;  %v6539_v53 = vld [vmem:[%s8773_s9 + $0xc] ss:$20 sps:$4 sm:$0xff]  }
 0xf03   :  { %4532 = vmatprep.subr.bf16.mxu1 %v8421_v50  ;;  %4573 = vmatprep.subr.bf16.mxu0 %v8424_v55  ;;  %v8869_v48 = vld [vmem:[#allocation39_spill] sm:$0xff]  ;;  %v8870_v55 = vld [vmem:[#allocation40_spill] sm:$0xff] }
 0xf04   :  { %4562 = vmatprep.mubr.bf16.mxu1 %v8813_v19  ;;  %4603 = vmatprep.mubr.bf16.mxu0 %v8813_v19  ;;  %v3416_v50 = vadd.f32 %v8869_v48, %v8205_v7  ;;  %v6564_v48 = vld [vmem:[%s8773_s9 + $0xc8] ss:$20 sps:$4 sm:$0xff]  }
 0xf06   :  { %4533 = vmatpush1.bf16.msra.mxu1 %v8429_v34  ;;  %4574 = vmatpush1.bf16.msra.mxu0 %v8432_v46  ;;  %v3489_v34 = vadd.f32 %v8870_v55, %v8208_v5  ;;  %v8871_v46 = vld [vmem:[#allocation41_spill] sm:$0xff]  ;;  %v6572_v55 = vld [vmem:[%s8773_s9 + $0xf4] ss:$20 sps:$4 sm:$0xff]  }
 0xf07   :  { %4534 = vmatprep.subr.bf16.mxu1 %v8435_v6  ;;  %4575 = vmatprep.subr.bf16.mxu0 %v8438_v23  ;;  %v3418_v6 = vadd.f32 %v8871_v46, %v8215_v38  ;;  %v8872_v23 = vld [vmem:[#allocation42_spill] sm:$0xff] }
 0xf08   :  { %v6570_v46 = vld [vmem:[%s8773_s9 + $0xf0] ss:$20 sps:$4 sm:$0xff]  }
 0xf0a   :  { %4535 = vmatpush1.bf16.msra.mxu1 %v8441_v26  ;;  %4576 = vmatpush1.bf16.msra.mxu0 %v8444_v42  ;;  %v3491_v26 = vadd.f32 %v8872_v23, %v8218_v35  ;;  %v6578_v23 = vld [vmem:[%s8773_s9 + $0x11c] ss:$20 sps:$4 sm:$0xff]  }
 0xf0b   :  { %4536 = vmatprep.subr.bf16.mxu1 %v8447_v47  ;;  %4577 = vmatprep.subr.bf16.mxu0 %v8450_v60 }
 0xf0e   :  { %4537 = vmatpush1.bf16.msra.mxu1 %v8453_v41  ;;  %4578 = vmatpush1.bf16.msra.mxu0 %v8456_v43 }
 0xf0f   :  { %4538 = vmatprep.subr.bf16.mxu1 %v8459_v63  ;;  %4579 = vmatprep.subr.bf16.mxu0 %v8462_v0 }
 0xf12   :  { %4539 = vmatpush1.bf16.msra.mxu1 %v8465_v37  ;;  %4580 = vmatpush1.bf16.msra.mxu0 %v8468_v40 }
 0xf13   :  { %4540 = vmatprep.subr.bf16.mxu1 %v8471_v59  ;;  %4581 = vmatprep.subr.bf16.mxu0 %v8474_v61 }
 0xf16   :  { %4541 = vmatpush1.bf16.msra.mxu1 %v8477_v21  ;;  %4582 = vmatpush1.bf16.msra.mxu0 %v8480_v30 }
 0xf17   :  { %4542 = vmatprep.subr.bf16.mxu1 %v8483_v24  ;;  %4583 = vmatprep.subr.bf16.mxu0 %v8486_v27 }
 0xf1a   :  { %4543 = vmatpush1.bf16.msra.mxu1 %v8489_v9  ;;  %4584 = vmatpush1.bf16.msra.mxu0 %v8492_v10 }
 0xf1b   :  { %4544 = vmatprep.subr.bf16.mxu1 %v8495_v11  ;;  %4585 = vmatprep.subr.bf16.mxu0 %v8498_v12 }
 0xf1e   :  { %4545 = vmatpush1.bf16.msra.mxu1 %v8501_v13  ;;  %4586 = vmatpush1.bf16.msra.mxu0 %v8504_v14 }
 0xf1f   :  { %4924 = vmatprep.subr.bf16.mxu1 %v6536_v3  ;;  %4965 = vmatprep.subr.bf16.mxu0 %v6539_v53  ;;  %v6566_v3 = vld [vmem:[%s8773_s9 + $0xcc] ss:$20 sps:$4 sm:$0xff]   ;;  %v6569_v53 = vld [vmem:[%s8773_s9 + $0xd4] ss:$20 sps:$4 sm:$0xff]  }
 0xfd4   :  { %v4449_v42 = vpop.f32.mrb[88].mxu1  ;;  %v4490_v47 = vpop.f32.mrb[92].mxu0 }
 0xfd5   :  { %v4497_v60 = vadd.f32 %v4449_v42, %v3416_v50  ;;  %v4499_v41 = vadd.f32 %v4490_v47, %v3489_v34  ;;  %v4451_v43 = vpop.f32.mrb[89].mxu1  ;;  %v4492_v63 = vpop.f32.mrb[93].mxu0  ;;  %v6567_v50 = vld [vmem:[%s8773_s9 + $0xd0] ss:$20 sps:$4 sm:$0xff]   ;;  %v6576_v42 = vld [vmem:[%s8773_s9 + $0x118] ss:$20 sps:$4 sm:$0xff]  }
 0xfd6   :  { %v4498_v0 = vadd.f32 %v4451_v43, %v3418_v6  ;;  %v4500_v37 = vadd.f32 %v4492_v63, %v3491_v26  ;;  %v4453_v40 = vpop.f32.mrb[90].mxu1  ;;  %v4494_v59 = vpop.f32.mrb[94].mxu0  ;;  %v6575_v34 = vld [vmem:[%s8773_s9 + $0xfc] ss:$20 sps:$4 sm:$0xff]   ;;  %v6573_v6 = vld [vmem:[%s8773_s9 + $0xf8] ss:$20 sps:$4 sm:$0xff]  }
 0xfd7   :  { %v6032_v61 = vmul.f32 -1.442695, %v4497_v60  ;;  %v4454_v21 = vpop.f32.mrb[91].mxu1  ;;  %v4495_v30 = vpop.f32.mrb[95].mxu0  ;;  %v6034_v27 = vmul.f32 -1.442695, %v4499_v41 }
 0xfd8   :  { %v6033_v24 = vmul.f32 -1.442695, %v4498_v0  ;;  %v6581_v26 = vld [vmem:[%s8773_s9 + $0x124] ss:$20 sps:$4 sm:$0xff]   ;;  %v6579_v47 = vld [vmem:[%s8773_s9 + $0x120] ss:$20 sps:$4 sm:$0xff]  }
 0xfd9   :  { %6878 = vpow2.f32 %v6032_v61  ;;  %v6582_v60 = vld [vmem:[%s8773_s9 + $0x10] ss:$20 sps:$4 sm:$0xff]   ;;  %v8873_v41 = vld [vmem:[#allocation21_spill] sm:$0xff]  ;;  %v8874_v63 = vmov 0.0   ;;  %v6588_v21 = vld [vmem:[%s8773_s9 + $0x100] ss:$20 sps:$4 sm:$0xff]  }
 0xfda   :  { %6880 = vpow2.f32 %v6033_v24  ;;  %v4640_v43 = vpack.c.bf16 %v8873_v41, %v8873_v41  ;;  %v6583_v0 = vld [vmem:[%s8773_s9 + $0x38] ss:$20 sps:$4 sm:$0xff]   ;;  %v6585_v40 = vld [vmem:[%s8773_s9 + $0x88] ss:$20 sps:$4 sm:$0xff]   ;;  %v6586_v59 = vld [vmem:[%s8773_s9 + $0xb0] ss:$20 sps:$4 sm:$0xff]  }
 0xfdb   :  { %6882 = vtanh.f32 %v4500_v37  ;;  %v6584_v37 = vld [vmem:[%s8773_s9 + $0x60] ss:$20 sps:$4 sm:$0xff]   ;;  %v6587_v61 = vld [vmem:[%s8773_s9 + $0xd8] ss:$20 sps:$4 sm:$0xff]   ;;  %v6589_v30 = vld [vmem:[%s8773_s9 + $0x128] ss:$20 sps:$4 sm:$0xff]  }
 0xfdc   :  { %6884 = vpow2.f32 %v6034_v27  ;;  %v6592_v24 = vld [vmem:[#allocation11 + $0x4] ss:$20 sps:$4 sm:$0xff]   ;;  %v6590_v27 = vld [vmem:[#allocation11] ss:$20 sps:$4 sm:$0xff]  }
 0xfe3   :  { %v6879_v9 = vpop.eup %6878 }
 0xfe4   :  { %v4510_v10 = vadd.f32 1.0, %v6879_v9  ;;  %v6881_v11 = vpop.eup %6880  ;;  %v6595_v9 = vld [vmem:[#allocation11 + $0xc] ss:$20 sps:$4 sm:$0xff]  }
 0xfe5   :  { %v4511_v12 = vadd.f32 1.0, %v6881_v11  ;;  %v6883_v13 = vpop.eup %6882  ;;  %v6598_v11 = vld [vmem:[#allocation11 + $0x2c] ss:$20 sps:$4 sm:$0xff]  }
 0xfe6   :  { %6886 = vrcp.f32 %v4510_v10  ;;  %v6885_v14 = vpop.eup %6884  ;;  %v6593_v10 = vld [vmem:[#allocation11 + $0x8] ss:$20 sps:$4 sm:$0xff]  }
 0xfe7   :  { %6888 = vrcp.f32 %v4511_v12  ;;  %v4512_v33 = vadd.f32 1.0, %v6885_v14  ;;  %v6596_v12 = vld [vmem:[#allocation11 + $0x28] ss:$20 sps:$4 sm:$0xff]   ;;  %v6599_v14 = vld [vmem:[#allocation11 + $0x30] ss:$20 sps:$4 sm:$0xff]  }
 0xfe9   :  { %6890 = vrcp.f32 %v4512_v33  ;;  %v6610_v33 = vld [vmem:[#allocation11 + $0x7c] ss:$20 sps:$4 sm:$0xff]  }
 0xff0   :  { %v6887_v39 = vpop.eup %6886 }
 0xff1   :  { %v4521_v20 = vmul.f32 %v6887_v39, %v6883_v13  ;;  %v6889_v2 = vpop.eup %6888  ;;  %v6601_v13 = vld [vmem:[#allocation11 + $0x34] ss:$20 sps:$4 sm:$0xff]  }
 0xff2   :  { %v4520_v52 = vmul.f32 %v6889_v2, %v8516_v29  ;;  %v6555_v29 = vld [vmem:[%s8773_s9 + $0x80] ss:$20 sps:$4 sm:$0xff]   ;;  %v6607_v2 = vld [vmem:[#allocation11 + $0x5c] ss:$20 sps:$4 sm:$0xff]  }
 0xff3   :  { %v6891_v49 = vpop.eup %6890  ;;  %v6604_v39 = vld [vmem:[#allocation11 + $0x54] ss:$20 sps:$4 sm:$0xff]  }
 0xff4   :  { %v8566_v1 = vadd.f32 %v4521_v20, %v4520_v52  ;;  %v6602_v20 = vld [vmem:[#allocation11 + $0x50] ss:$20 sps:$4 sm:$0xff]   ;;  %v6608_v52 = vld [vmem:[#allocation11 + $0x78] ss:$20 sps:$4 sm:$0xff]  }
 0xff6   :  { %6892 = vtanh.f32 %v8566_v1 }
0x1000   :  { %v6893_v51 = vpop.eup %6892 }
0x1001   :  { %v4524_v25 = vmul.f32 %v6893_v51, %v6891_v49  ;;  %v6613_v49 = vld [vmem:[#allocation11 + $0x84] ss:$20 sps:$4 sm:$0xff]   ;;  %v6611_v51 = vld [vmem:[#allocation11 + $0x80] ss:$20 sps:$4 sm:$0xff]  }
0x1003   :  { %v4529_v45 = vpack.c.bf16 %v4524_v25, %v4524_v25  ;;  %v6616_v25 = vld [vmem:[#allocation11 + $0xa4] ss:$20 sps:$4 sm:$0xff]  }
0x1005   :  { %4563 = vmatmul.mubr.bf16.vlgmr.msra.gmra.mrb[92].mxu1 %v4529_v45  ;;  %4604 = vmatmul.mubr.bf16.vlgmr.msra.gmra.mrb[96].mxu0 %v4529_v45  ;;  %v6617_v45 = vld [vmem:[#allocation11 + $0xa8] ss:$20 sps:$4 sm:$0xff]  }
0x1006   :  { %4925 = vmatpush1.bf16.msra.mxu1 %v6534_v4  ;;  %4966 = vmatpush1.bf16.msra.mxu0 %v6537_v56  ;;  %v6614_v4 = vld [vmem:[#allocation11 + $0xa0] ss:$20 sps:$4 sm:$0xff]  }
0x1007   :  { %4926 = vmatprep.subr.bf16.mxu1 %v6542_v8  ;;  %4967 = vmatprep.subr.bf16.mxu0 %v6545_v36  ;;  %v6619_v56 = vld [vmem:[#allocation11 + $0xac] ss:$20 sps:$4 sm:$0xff]   ;;  %v6620_v36 = vld [vmem:[#allocation11 + $0xc8] ss:$20 sps:$4 sm:$0xff]  }
0x1008   :  { %4956 = vmatprep.mubr.bf16.mxu1 %v8813_v19  ;;  %4997 = vmatprep.mubr.bf16.mxu0 %v8813_v19  ;;  %v6622_v8 = vld [vmem:[#allocation11 + $0xcc] ss:$20 sps:$4 sm:$0xff]  }
0x100a   :  { %4927 = vmatpush1.bf16.msra.mxu1 %v6540_v58  ;;  %4968 = vmatpush1.bf16.msra.mxu0 %v6543_v15  ;;  %v6623_v58 = vld [vmem:[#allocation11 + $0xd0] ss:$20 sps:$4 sm:$0xff]   ;;  %v6625_v15 = vld [vmem:[#allocation11 + $0xd4] ss:$20 sps:$4 sm:$0xff]  }
0x100b   :  { %4928 = vmatprep.subr.bf16.mxu1 %v6548_v16  ;;  %4969 = vmatprep.subr.bf16.mxu0 %v6551_v57  ;;  %v6628_v16 = vld [vmem:[#allocation11 + $0xf4] ss:$20 sps:$4 sm:$0xff]   ;;  %v6626_v57 = vld [vmem:[#allocation11 + $0xf0] ss:$20 sps:$4 sm:$0xff]  }
0x100e   :  { %4929 = vmatpush1.bf16.msra.mxu1 %v6546_v28  ;;  %4970 = vmatpush1.bf16.msra.mxu0 %v6549_v44  ;;  %v6631_v28 = vld [vmem:[#allocation11 + $0xfc] ss:$20 sps:$4 sm:$0xff]   ;;  %v6629_v44 = vld [vmem:[#allocation11 + $0xf8] ss:$20 sps:$4 sm:$0xff]  }
0x100f   :  { %4930 = vmatprep.subr.bf16.mxu1 %v6554_v54  ;;  %4971 = vmatprep.subr.bf16.mxu0 %v6557_v17  ;;  %v6634_v54 = vld [vmem:[#allocation11 + $0x11c] ss:$20 sps:$4 sm:$0xff]   ;;  %v6637_v17 = vld [vmem:[#allocation11 + $0x124] ss:$20 sps:$4 sm:$0xff]  }
0x1012   :  { %4931 = vmatpush1.bf16.msra.mxu1 %v6552_v32  ;;  %4972 = vmatpush1.bf16.msra.mxu0 %v6555_v29  ;;  %v6632_v32 = vld [vmem:[#allocation11 + $0x118] ss:$20 sps:$4 sm:$0xff]   ;;  %v6635_v29 = vld [vmem:[#allocation11 + $0x120] ss:$20 sps:$4 sm:$0xff]  }
0x1013   :  { %4932 = vmatprep.subr.bf16.mxu1 %v6560_v62  ;;  %4973 = vmatprep.subr.bf16.mxu0 %v6563_v18  ;;  %v8875_v62 = vld [vmem:[#allocation43_spill] sm:$0xff] }
0x1014   :  { %v3420_v18 = vadd.f32 %v8875_v62, %v8205_v7  ;;  %v4689_v62 = vld [vmem:[%s8774_s10] sm:$0x1f] }
0x1016   :  { %4933 = vmatpush1.bf16.msra.mxu1 %v6558_v22  ;;  %4974 = vmatpush1.bf16.msra.mxu0 %v6561_v31  ;;  %v8876_v22 = vld [vmem:[#allocation44_spill] sm:$0xff] }
0x1017   :  { %4934 = vmatprep.subr.bf16.mxu1 %v6566_v3  ;;  %4975 = vmatprep.subr.bf16.mxu0 %v6569_v53  ;;  %v3493_v31 = vadd.f32 %v8876_v22, %v8208_v5  ;;  %v8877_v3 = vld [vmem:[#allocation45_spill] sm:$0xff] }
0x1018   :  { %v3422_v53 = vadd.f32 %v8877_v3, %v8215_v38 }
0x101a   :  { %4935 = vmatpush1.bf16.msra.mxu1 %v6564_v48  ;;  %4976 = vmatpush1.bf16.msra.mxu0 %v6567_v50  ;;  %v8878_v48 = vld [vmem:[#allocation46_spill] sm:$0xff] }
0x101b   :  { %4936 = vmatprep.subr.bf16.mxu1 %v6572_v55  ;;  %4977 = vmatprep.subr.bf16.mxu0 %v6575_v34  ;;  %v3495_v50 = vadd.f32 %v8878_v48, %v8218_v35 }
0x101e   :  { %4937 = vmatpush1.bf16.msra.mxu1 %v6570_v46  ;;  %4978 = vmatpush1.bf16.msra.mxu0 %v6573_v6 }
0x101f   :  { %4938 = vmatprep.subr.bf16.mxu1 %v6578_v23  ;;  %4979 = vmatprep.subr.bf16.mxu0 %v6581_v26 }
0x1022   :  { %4939 = vmatpush1.bf16.msra.mxu1 %v6576_v42  ;;  %4980 = vmatpush1.bf16.msra.mxu0 %v6579_v47 }
0x1023   :  { %6183 = vmatprep.subr.bf16.mxu1 %v8874_v63  ;;  %5335 = vmatprep.subr.bf16.mxu0 %v6592_v24 }
0x1025   :  { %4957 = vmatmul.mubr.bf16.vlgmr.msra.gmra.mrb[96].mxu1 %v4640_v43  ;;  %4998 = vmatmul.mubr.bf16.vlgmr.msra.gmra.mrb[100].mxu0 %v4640_v43 }
0x1026   :  { %6184 = vmatpush3.bf16.msra.mxu1 %v6582_v60  ;;  %6199 = vmatprep.mubr.msk.bf16.mxu1 %vm7131_vm0, %v8874_v63 }
0x1027   :  { %6185 = vmatprep.subr.bf16.mxu1 %v8874_v63  ;;  %5367 = vmatprep.mubr.bf16.mxu0 %v8813_v19 }
0x1028   :  { %5336 = vmatpush1.bf16.msra.mxu0 %v6590_v27 }
0x1029   :  { %5337 = vmatprep.subr.bf16.mxu0 %v6598_v11 }
0x102a   :  { %6186 = vmatpush3.bf16.msra.mxu1 %v6583_v0 }
0x102b   :  { %6187 = vmatprep.subr.bf16.mxu1 %v8874_v63 }
0x102c   :  { %5338 = vmatpush1.bf16.msra.mxu0 %v6596_v12 }
0x102d   :  { %5339 = vmatprep.subr.bf16.mxu0 %v6604_v39 }
0x102e   :  { %6188 = vmatpush3.bf16.msra.mxu1 %v6584_v37 }
0x102f   :  { %6189 = vmatprep.subr.bf16.mxu1 %v8874_v63 }
0x1030   :  { %5340 = vmatpush1.bf16.msra.mxu0 %v6602_v20 }
0x1031   :  { %5341 = vmatprep.subr.bf16.mxu0 %v6610_v33 }
0x1032   :  { %6190 = vmatpush3.bf16.msra.mxu1 %v6585_v40 }
0x1033   :  { %6191 = vmatprep.subr.bf16.mxu1 %v8874_v63 }
0x1034   :  { %5342 = vmatpush1.bf16.msra.mxu0 %v6608_v52 }
0x1035   :  { %5343 = vmatprep.subr.bf16.mxu0 %v6616_v25  ;;  %v6638_v25 = vld [vmem:[#allocation11 + $0x10] ss:$20 sps:$4 sm:$0xff]  }
0x1036   :  { %6192 = vmatpush3.bf16.msra.mxu1 %v6586_v59 }
0x1037   :  { %6193 = vmatprep.subr.bf16.mxu1 %v8874_v63 }
0x1038   :  { %5344 = vmatpush1.bf16.msra.mxu0 %v6614_v4  ;;  %v6639_v4 = vld [vmem:[#allocation11 + $0x38] ss:$20 sps:$4 sm:$0xff]  }
0x1039   :  { %5345 = vmatprep.subr.bf16.mxu0 %v6622_v8  ;;  %v6642_v8 = vld [vmem:[#allocation11 + $0xb0] ss:$20 sps:$4 sm:$0xff]  }
0x103a   :  { %6194 = vmatpush3.bf16.msra.mxu1 %v6587_v61 }
0x103b   :  { %6195 = vmatprep.subr.bf16.mxu1 %v8874_v63 }
0x103c   :  { %5346 = vmatpush1.bf16.msra.mxu0 %v6620_v36 }
0x103d   :  { %5347 = vmatprep.subr.bf16.mxu0 %v6628_v16 }
0x103e   :  { %6196 = vmatpush3.bf16.msra.mxu1 %v6588_v21 }
0x103f   :  { %6197 = vmatprep.subr.bf16.mxu1 %v8874_v63 }
0x1040   :  { %5348 = vmatpush1.bf16.msra.mxu0 %v6626_v57  ;;  %v6643_v57 = vld [vmem:[#allocation11 + $0xd8] ss:$20 sps:$4 sm:$0xff]  }
0x1041   :  { %5349 = vmatprep.subr.bf16.mxu0 %v6634_v54  ;;  %v6646_v54 = vld [vmem:[#allocation12] sm:$0xff]  }
0x1042   :  { %6198 = vmatpush3.bf16.msra.mxu1 %v6589_v30 }
0x1043   :  { %5376 = vmatprep.subr.bf16.mxu1 %v6595_v9 }
0x1044   :  { %5350 = vmatpush1.bf16.msra.mxu0 %v6632_v32  ;;  %v6648_v32 = vld [vmem:[#allocation12 + $0x10] sm:$0xff]  }
0x1045   :  { %6200 = vmatmul.mubr.bf16.vlgmr.msra.gmra.mrb[100].mxu1 %v4640_v43  ;;  %6203 = vmatprep.subr.bf16.mxu0 %v8874_v63 }
0x1046   :  { %5408 = vmatprep.mubr.bf16.mxu1 %v8813_v19  ;;  %5377 = vmatpush1.bf16.msra.mxu1 %v6593_v10  ;;  %v6605_v19 = vld [vmem:[#allocation11 + $0x58] ss:$20 sps:$4 sm:$0xff]  }
0x1047   :  { %5378 = vmatprep.subr.bf16.mxu1 %v6601_v13 }
0x104a   :  { %5379 = vmatpush1.bf16.msra.mxu1 %v6599_v14 }
0x104b   :  { %5380 = vmatprep.subr.bf16.mxu1 %v6607_v2 }
0x104e   :  { %5381 = vmatpush1.bf16.msra.mxu1 %v6605_v19 }
0x104f   :  { %5382 = vmatprep.subr.bf16.mxu1 %v6613_v49 }
0x1052   :  { %5383 = vmatpush1.bf16.msra.mxu1 %v6611_v51 }
0x1053   :  { %5384 = vmatprep.subr.bf16.mxu1 %v6619_v56  ;;  %v6640_v56 = vld [vmem:[#allocation11 + $0x60] ss:$20 sps:$4 sm:$0xff]  }
0x1056   :  { %5385 = vmatpush1.bf16.msra.mxu1 %v6617_v45  ;;  %v6641_v45 = vld [vmem:[#allocation11 + $0x88] ss:$20 sps:$4 sm:$0xff]  }
0x1057   :  { %5386 = vmatprep.subr.bf16.mxu1 %v6625_v15 }
0x105a   :  { %5387 = vmatpush1.bf16.msra.mxu1 %v6623_v58 }
0x105b   :  { %5388 = vmatprep.subr.bf16.mxu1 %v6631_v28  ;;  %v6644_v28 = vld [vmem:[#allocation11 + $0x100] ss:$20 sps:$4 sm:$0xff]  }
0x105e   :  { %5389 = vmatpush1.bf16.msra.mxu1 %v6629_v44  ;;  %v6645_v44 = vld [vmem:[#allocation11 + $0x128] ss:$20 sps:$4 sm:$0xff]  }
0x105f   :  { %5390 = vmatprep.subr.bf16.mxu1 %v6637_v17  ;;  %v6647_v17 = vld [vmem:[#allocation12 + $0x8] sm:$0xff]  }
0x1062   :  { %5391 = vmatpush1.bf16.msra.mxu1 %v6635_v29  ;;  %v6649_v29 = vld [vmem:[#allocation12 + $0x18] sm:$0xff]  }
0x1063   :  { %6223 = vmatprep.subr.bf16.mxu1 %v8874_v63 }
0x10d8   :  { %v4564_v55 = vpop.f32.mrb[92].mxu1  ;;  %v4605_v34 = vpop.f32.mrb[96].mxu0 }
0x10d9   :  { %v4612_v46 = vadd.f32 %v4564_v55, %v3420_v18  ;;  %v4614_v6 = vadd.f32 %v4605_v34, %v3493_v31  ;;  %v4566_v23 = vpop.f32.mrb[93].mxu1  ;;  %v4607_v26 = vpop.f32.mrb[97].mxu0  ;;  %v8879_v18 = vld [vmem:[#allocation19_spill] sm:$0xff]  ;;  %v5100_v34 = vld [vmem:[%s8776_s12] sm:$0x1f] }
0x10da   :  { %v4613_v42 = vadd.f32 %v4566_v23, %v3422_v53  ;;  %v4615_v47 = vadd.f32 %v4607_v26, %v3495_v50  ;;  %v4568_v60 = vpop.f32.mrb[94].mxu1  ;;  %v4609_v41 = vpop.f32.mrb[98].mxu0  ;;  %v4694_v22 = vrot.slane %v4689_v62, %v8879_v18  ;;  %v8880_v31 = vld [vmem:[#allocation27_spill] sm:$0xff]  ;;  %v8881_v53 = vld [vmem:[#allocation20_spill] sm:$0xff]  ;;  %v8882_v50 = vld [vmem:[#allocation29_spill] sm:$0xff]  ;;  %v5105_v26 = vrot.slane %v5100_v34, %v8879_v18 }
0x10db   :  { %v6035_v7 = vmul.f32 -1.442695, %v4612_v46  ;;  %v4569_v43 = vpop.f32.mrb[95].mxu1  ;;  %v4610_v0 = vpop.f32.mrb[99].mxu0  ;;  %v6037_v38 = vmul.f32 -1.442695, %v4614_v6  ;;  %v4702_v3 = vrot.slane %v4689_v62, %v8880_v31  ;;  %v4698_v48 = vrot.slane %v4689_v62, %v8881_v53 }
0x10dc   :  { %v6036_v5 = vmul.f32 -1.442695, %v4613_v42  ;;  %v4706_v55 = vrot.slane %v4689_v62, %v8882_v50  ;;  %v5113_v42 = vrot.slane %v5100_v34, %v8880_v31  ;;  %v5109_v60 = vrot.slane %v5100_v34, %v8881_v53 }
0x10dd   :  { %6894 = vpow2.f32 %v6035_v7  ;;  %v5117_v41 = vrot.slane %v5100_v34, %v8882_v50 }
0x10de   :  { %6896 = vpow2.f32 %v6036_v5 }
0x10df   :  { %6898 = vtanh.f32 %v4615_v47 }
0x10e0   :  { %6900 = vpow2.f32 %v6037_v38 }
0x10e7   :  { %v6895_v37 = vpop.eup %6894 }
0x10e8   :  { %v4625_v40 = vadd.f32 1.0, %v6895_v37  ;;  %v6897_v35 = vpop.eup %6896 }
0x10e9   :  { %v4626_v59 = vadd.f32 1.0, %v6897_v35  ;;  %v6899_v61 = vpop.eup %6898 }
0x10ea   :  { %6902 = vrcp.f32 %v4625_v40  ;;  %v6901_v21 = vpop.eup %6900 }
0x10eb   :  { %6904 = vrcp.f32 %v4626_v59  ;;  %v4627_v9 = vadd.f32 1.0, %v6901_v21 }
0x10ed   :  { %6906 = vrcp.f32 %v4627_v9 }
0x10f4   :  { %v6903_v30 = vpop.eup %6902 }
0x10f5   :  { %v4636_v24 = vmul.f32 %v6903_v30, %v6899_v61  ;;  %v6905_v27 = vpop.eup %6904 }
0x10f6   :  { %v4635_v10 = vmul.f32 %v6905_v27, %v8566_v1 }
0x10f7   :  { %v6907_v52 = vpop.eup %6906 }
0x10f8   :  { %v8710_v11 = vpop.f32.mrb[96].mxu1  ;;  %v8712_v12 = vpop.f32.mrb[100].mxu0  ;;  %v4637_v13 = vadd.f32 %v4636_v24, %v4635_v10 }
0x10f9   :  { %v8714_v14 = vpop.f32.mrb[97].mxu1  ;;  %v8716_v39 = vpop.f32.mrb[101].mxu0  ;;  %v4959_v46 = vadd.f32 %v8710_v11, %v4694_v22  ;;  %v5000_v6 = vadd.f32 %v8712_v12, %v4702_v3 }
0x10fa   :  { %v4962_v20 = vpop.f32.mrb[98].mxu1  ;;  %v5003_v2 = vpop.f32.mrb[102].mxu0  ;;  %6908 = vtanh.f32 %v4637_v13  ;;  %v4961_v23 = vadd.f32 %v8714_v14, %v4698_v48  ;;  %v5002_v47 = vadd.f32 %v8716_v39, %v4706_v55 }
0x10fb   :  { %v4963_v19 = vpop.f32.mrb[99].mxu1  ;;  %v5004_v33 = vpop.f32.mrb[103].mxu0  ;;  %6910 = vtanh.f32 %v4959_v46 }
0x10fc   :  { %6912 = vtanh.f32 %v5000_v6 }
0x10fd   :  { %6914 = vtanh.f32 %v4961_v23  ;;  %v6650_v23 = vld [vmem:[#allocation12 + $0x20] sm:$0xff]  }
0x10fe   :  { %6916 = vtanh.f32 %v5002_v47  ;;  %v6653_v47 = vld [vmem:[#allocation12 + $0x38] sm:$0xff]  }
0x1104   :  { %v6909_v49 = vpop.eup %6908 }
0x1105   :  { %v4639_v51 = vmul.f32 %v6909_v49, %v6907_v52  ;;  %v6911_v24 = vpop.eup %6910  ;;  %v8883_v49 = vld [vmem:[#allocation18_spill] sm:$0xff] }
0x1106   :  { %v6913_v27 = vpop.eup %6912 }
0x1107   :  { %v5051_v1 = vpack.c.bf16 %v4639_v51, %v4639_v51  ;;  %v6915_v9 = vpop.eup %6914  ;;  %v4709_v51 = vsub.s32 4, %v8883_v49 }
0x1108   :  { %v6917_v10 = vpop.eup %6916 }
0x1109   :  { %5368 = vmatmul.mubr.bf16.vlgmr.msra.gmra.mrb[104].mxu0 %v5051_v1  ;;  %5409 = vmatmul.mubr.bf16.vlgmr.msra.gmra.mrb[104].mxu1 %v5051_v1 }
0x110a   :  { %6204 = vmatpush3.bf16.msra.mxu0 %v6638_v25  ;;  %6219 = vmatprep.mubr.msk.bf16.mxu0 %vm7131_vm0, %v8874_v63 }
0x110b   :  { %6205 = vmatprep.subr.bf16.mxu0 %v8874_v63  ;;  %6239 = vmatprep.mubr.msk.bf16.mxu1 %vm7131_vm0, %v8874_v63 }
0x110c   :  { %6224 = vmatpush3.bf16.msra.mxu1 %v6646_v54 }
0x110d   :  { %6225 = vmatprep.subr.bf16.mxu1 %v8874_v63 }
0x110e   :  { %6206 = vmatpush3.bf16.msra.mxu0 %v6639_v4  ;;  %v5121_v4 = vrot.slane %v5100_v34, %v4709_v51 }
0x110f   :  { %6207 = vmatprep.subr.bf16.mxu0 %v8874_v63 }
0x1110   :  { %6226 = vmatpush3.bf16.msra.mxu1 %v6647_v17 }
0x1111   :  { %6227 = vmatprep.subr.bf16.mxu1 %v8874_v63 }
0x1112   :  { %6208 = vmatpush3.bf16.msra.mxu0 %v6640_v56 }
0x1113   :  { %6209 = vmatprep.subr.bf16.mxu0 %v8874_v63 }
0x1114   :  { %6228 = vmatpush3.bf16.msra.mxu1 %v6648_v32 }
0x1115   :  { %6229 = vmatprep.subr.bf16.mxu1 %v8874_v63 }
0x1116   :  { %6210 = vmatpush3.bf16.msra.mxu0 %v6641_v45 }
0x1117   :  { %6211 = vmatprep.subr.bf16.mxu0 %v8874_v63 }
0x1118   :  { %v8725_v36 = vpop.f32.mrb[100].mxu1  ;;  %6230 = vmatpush3.bf16.msra.mxu1 %v6649_v29 }
0x1119   :  { %v6201_v58 = vpop.f32.mrb[101].mxu1  ;;  %6231 = vmatprep.subr.bf16.mxu1 %v8874_v63 }
0x111a   :  { %v5043_v15 = vpop.f32.mrb[102].mxu1  ;;  %6212 = vmatpush3.bf16.msra.mxu0 %v6642_v8 }
0x111b   :  { %v6202_v16 = vpop.f32.mrb[103].mxu1  ;;  %6213 = vmatprep.subr.bf16.mxu0 %v8874_v63 }
0x111c   :  { %6232 = vmatpush3.bf16.msra.mxu1 %v6650_v23 }
0x111d   :  { %6233 = vmatprep.subr.bf16.mxu1 %v8874_v63 }
0x111e   :  { %6214 = vmatpush3.bf16.msra.mxu0 %v6643_v57 }
0x111f   :  { %6215 = vmatprep.subr.bf16.mxu0 %v8874_v63 }
0x1122   :  { %6216 = vmatpush3.bf16.msra.mxu0 %v6644_v28 }
0x1123   :  { %6217 = vmatprep.subr.bf16.mxu0 %v8874_v63 }
0x1126   :  { %6218 = vmatpush3.bf16.msra.mxu0 %v6645_v44 }
0x1129   :  { %6220 = vmatmul.mubr.bf16.vlgmr.msra.gmra.mrb[108].mxu0 %v5051_v1  ;;  %v4710_v1 = vrot.slane %v4689_v62, %v4709_v51 }
0x112b   :  { %v5041_v56 = vadd.f32 %v8725_v36, %v4710_v1 }
0x11dc   :  { %v5369_v7 = vpop.f32.mrb[104].mxu0  ;;  %v5410_v43 = vpop.f32.mrb[104].mxu1 }
0x11dd   :  { %v5370_v0 = vadd.f32 %v5369_v7, %v5105_v26  ;;  %v5411_v5 = vadd.f32 %v5410_v43, %v5113_v42  ;;  %v5371_v38 = vpop.f32.mrb[105].mxu0  ;;  %v5412_v37 = vpop.f32.mrb[105].mxu1  ;;  %v6651_v26 = vld [vmem:[#allocation12 + $0x28] sm:$0xff]   ;;  %v6652_v42 = vld [vmem:[#allocation12 + $0x30] sm:$0xff]  }
0x11de   :  { %v5372_v40 = vadd.f32 %v5371_v38, %v5109_v60  ;;  %v5413_v35 = vadd.f32 %v5412_v37, %v5117_v41  ;;  %v5373_v59 = vpop.f32.mrb[106].mxu0  ;;  %v5414_v61 = vpop.f32.mrb[106].mxu1  ;;  %6234 = vmatpush3.bf16.msra.mxu1 %v6651_v26 }
0x11df   :  { %6918 = vtanh.f32 %v5370_v0  ;;  %v5374_v21 = vpop.f32.mrb[107].mxu0  ;;  %v5415_v30 = vpop.f32.mrb[107].mxu1  ;;  %6235 = vmatprep.subr.bf16.mxu1 %v8874_v63 }
0x11e0   :  { %6920 = vtanh.f32 %v5411_v5  ;;  %v6118_v5 = vld [vmem:[%s8778_s14] ss:$0 sm:$0xff] }
0x11e1   :  { %6922 = vtanh.f32 %v5372_v40 }
0x11e2   :  { %6924 = vtanh.f32 %v5413_v35  ;;  %6236 = vmatpush3.bf16.msra.mxu1 %v6652_v42 }
0x11e3   :  { %6926 = vtanh.f32 %v5041_v56  ;;  %6237 = vmatprep.subr.bf16.mxu1 %v8874_v63 }
0x11e6   :  { %6238 = vmatpush3.bf16.msra.mxu1 %v6653_v47 }
0x11e9   :  { %v6919_v11 = vpop.eup %6918 }
0x11ea   :  { %v6921_v12 = vpop.eup %6920  ;;  %v5462_v13 = vmul.f32 %v6919_v11, %v6911_v24 }
0x11eb   :  { %v6923_v14 = vpop.eup %6922  ;;  %v5464_v39 = vmul.f32 %v6921_v12, %v6913_v27 }
0x11ec   :  { %v6925_v20 = vpop.eup %6924  ;;  %v5463_v2 = vmul.f32 %v6923_v14, %v6915_v9 }
0x11ed   :  { %v5465_v19 = vmul.f32 %v6925_v20, %v6917_v10  ;;  %v6927_v57 = vpop.eup %6926 }
0x11ee   :  { %v5467_v33 = vadd.f32 %v5463_v2, %v5462_v13 }
0x11f0   :  { %v5468_v52 = vadd.f32 %v5467_v33, %v5464_v39 }
0x11f2   :  { %v5469_v25 = vadd.f32 %v5468_v52, %v5465_v19 }
0x11fc   :  { %v5451_v45 = vpop.f32.mrb[108].mxu0 }
0x11fd   :  { %v5452_v8 = vadd.f32 %v5451_v45, %v5121_v4  ;;  %v6221_v58 = vpop.f32.mrb[109].mxu0 }
0x11fe   :  { %v5454_v15 = vpop.f32.mrb[110].mxu0 }
0x11ff   :  { %6928 = vtanh.f32 %v5452_v8  ;;  %v6222_v16 = vpop.f32.mrb[111].mxu0 }
0x1209   :  { %v6929_v28 = vpop.eup %6928 }
0x120a   :  { %v5466_v44 = vmul.f32 %v6929_v28, %v6927_v57 }
0x120c   :  { %v5470_v54 = vadd.f32 %v5469_v25, %v5466_v44 }
0x120e   :  { %6930 = vtanh.f32 %v5470_v54 }
0x1218   :  { %v6931_v17 = vpop.eup %6930 }
0x1219   :  { %v5472_v32 = vmax.f32 %v6931_v17, 0.0  ;;  %v5480_v29 = vsub.f32 0.0, %v6931_v17 }
0x121b   :  { %6932 = vrsqrt.f32 %v5472_v32  ;;  %v5481_v62 = vmax.f32 %v5480_v29, 0.0  ;;  %vm5475_vm1 = vcmp.eq.f32.partialorder %v5472_v32, inf  ;;  %v5478_v53 = vand.u32 2147483648, %v5472_v32 }
0x121c   :  { %vm5477_vm3 = vcmp.eq.f32.partialorder %v5472_v32, 0.0 }
0x121d   :  { %6934 = vrsqrt.f32 %v5481_v62  ;;  %vm5484_vm2 = vcmp.eq.f32.partialorder %v5481_v62, inf  ;;  %v5487_v48 = vand.u32 2147483648, %v5481_v62  ;;  %vm5486_vm4 = vcmp.eq.f32.partialorder %v5481_v62, 0.0 }
0x1225   :  { %v6933_v18 = vpop.eup %6932 }
0x1226   :  { %v5474_v36 = vmul.f32 %v6933_v18, %v5472_v32 }
0x1227   :  { %v6935_v22 = vpop.eup %6934 }
0x1228   :  { %v5476_v31 = vsel %vm5475_vm1, %v5472_v32, %v5474_v36  ;;  %v5483_v3 = vmul.f32 %v6935_v22, %v5481_v62 }
0x1229   :  { %v5479_v55 = vsel %vm5477_vm3, %v5478_v53, %v5476_v31 }
0x122a   :  { %v5485_v50 = vsel %vm5484_vm2, %v5481_v62, %v5483_v3 }
0x122b   :  { %v5488_v34 = vsel %vm5486_vm4, %v5487_v48, %v5485_v50 }
0x122c   :  { %v5489_v46 = vsub.f32 %v5479_v55, %v5488_v34 }
0x122e   :  { %v5490_v6 = vmul.f32 %v5489_v46, %v5489_v46 }
0x1230   :  { %5491 = vadd.xlane.f32.xlu0 %v5490_v6 }
0x12bd   :  { %v5492_v60 = vpop.xlane.xlu0 %5491 }
0x12be   :  { %v5493_v41 = vmax.f32 %v5492_v60, 1e-24 }
0x12c0   :  { %6936 = vrsqrt.f32 %v5493_v41 }
0x12ca   :  { %v6937_v7 = vpop.eup %6936 }
0x12cb   :  { %v5495_v43 = vmul.f32 %v6937_v7, %v5489_v46 }
0x12cd   :  { %v5496_v0 = vpack.c.bf16 %v5495_v43, %v5495_v43 }
0x12cf   :  { %6240 = vmatmul.mubr.bf16.vlgmr.msra.gmra.mrb[108].mxu1 %v5496_v0 }
0x13a2   :  { %v5602_v38 = vpop.f32.mrb[108].mxu1 }
0x13a3   :  { %v5603_v37 = vadd.f32 %v6118_v5, %v5602_v38  ;;  %v6241_v40 = vpop.f32.mrb[109].mxu1 }
0x13a4   :  { %v5605_v35 = vpop.f32.mrb[110].mxu1 }
0x13a5   :  { %5608 = vmax.xlane.f32.xlu0 %v5603_v37  ;;  %v6242_v59 = vpop.f32.mrb[111].mxu1 }
0x1432   :  { %v5609_v61 = vpop.xlane.xlu0 %5608 }
0x1433   :  { %v5610_v63 = vsub.f32 %v5603_v37, %v5609_v61 }
0x1435   :  { %v5611_v21 = vmul.f32 1.442695, %v5610_v63 }
0x1437   :  { %6938 = vpow2.f32 %v5611_v21 }
0x1441   :  { %v6939_v30 = vpop.eup %6938 }
0x1442   :  { %5613 = vadd.xlane.f32.xlu1 %v6939_v30 }
0x14cf   :  { %v5614_v24 = vpop.xlane.xlu1 %5613 }
0x14d0   :  { %6940 = vrcp.f32 %v5614_v24 }
0x14da   :  { %v6941_v27 = vpop.eup %6940 }
0x14db   :  { %v5616_v9 = vmul.f32 %v6941_v27, %v6939_v30 }
0x14dd   :  { %5617 = vst [vmem:[%s8884_s24] sm:$0xff] %v5616_v9 }
0x14de   :  { %5622 = vsyncpa [#allocation5], 1 }
0x14df   :  { %5623 = vsyncpa [#allocation7], 1 }
0x14e0   :  { %5624 = vsyncpa [#allocation10], 1 }
0x14e1   :  { %5625 = vsyncpa [#allocation13], 1 }

</bundles_post_ra>
